<compile_context>
chip_gen: v7x
topology: tpu7x:2x2x1
jax: 0.10.0
libtpu: 0.0.40
codegen_flags: <defaults>
</compile_context>

<pallas_src>
import functools

import jax
import jax.numpy as jnp
from jax import lax
from jax.experimental import pallas as pl
from jax.experimental.pallas import tpu as pltpu

VMEM = pltpu.MemorySpace.VMEM
LANE = 128
SUBLANE = 8


def _round_up(n, m):
    return ((n + m - 1) // m) * m


# ----------------------------------------------------------------------------
# Fused forward kernel
# ----------------------------------------------------------------------------
def vqa_fused_kernel(ximg_ref, xqst_ref,
                     wb_ref, bb_ref, wfc_ref, bfc_ref,
                     wih0_ref, whh0_ref, b0_ref,
                     wih1_ref, whh1_ref, b1_ref,
                     wq_ref, bq_ref,
                     w1_ref, fb1_ref, w2_ref, fb2_ref,
                     o_ref,
                     *, seq_len, batch, hidden_pad):
    f32, bf16 = jnp.float32, jnp.bfloat16
    T, B, Hp = seq_len, batch, hidden_pad

    def bdot(a, w):
        # bf16 x bf16 MXU matmul with f32 accumulation (weights stored bf16).
        return jnp.dot(a.astype(bf16), w, preferred_element_type=f32)

    # ---------------- image branch ----------------
    # TODO(synk): the pretrained VGG19/ResNet backbone cannot be reproduced
    # here; it is replaced by one deterministic linear projection of the
    # flattened image.  For a production-size backbone (in_features ~25088)
    # wb must NOT be VMEM-resident: give this matmul its own K-tiled grid axis
    # ('arbitrary', f32 VMEM accumulator, double-buffered bf16 weight tiles).
    feat = bdot(ximg_ref[...], wb_ref[...]) + bb_ref[...]
    img_emb = bdot(feat, wfc_ref[...]) + bfc_ref[...]
    # img_feature.norm(p=2, dim=1, keepdim=True); div   (rsqrt -> EUP slot;
    # tiny eps guard vs. the eps-free torch reference, numerically negligible)
    inv_norm = lax.rsqrt(jnp.sum(img_emb * img_emb, axis=1, keepdims=True)
                         + 1e-12)
    img_feature = img_emb * inv_norm

    # ---------------- question branch (2-layer LSTM) ----------------
    # Layer-0 input projection hoisted out of the recurrence: one batched
    # matmul for all timesteps (includes the word2vec tanh and combined bias).
    gx = bdot(jnp.tanh(xqst_ref[...]), wih0_ref[...]) + b0_ref[...]   # (T*B,4Hp)

    whh0 = whh0_ref[...]
    wih1 = wih1_ref[...]
    whh1 = whh1_ref[...]
    # Hoisted bias broadcast (JAX does not CSE broadcast_in_dim).
    b1b = jnp.broadcast_to(b1_ref[...], (B, 4 * Hp))

    def sig(x):
        # sigmoid via tanh keeps the nonlinearity on the EUP slot.
        return 0.5 * (jnp.tanh(0.5 * x) + 1.0)

    def cell(g, c):
        # PyTorch gate order i, f, g, o; each gate block is lane-aligned (Hp).
        i = sig(g[:, 0 * Hp:1 * Hp])
        f = sig(g[:, 1 * Hp:2 * Hp])
        gg = jnp.tanh(g[:, 2 * Hp:3 * Hp])
        o = sig(g[:, 3 * Hp:4 * Hp])
        c_new = f * c + i * gg
        return o * jnp.tanh(c_new), c_new

    c0 = jnp.zeros((B, Hp), f32)
    h1 = jnp.zeros((B, Hp), f32)
    c1 = jnp.zeros((B, Hp), f32)

    # Prologue: layer-0 step 0 (h0_init == 0, so the h@Whh0 term vanishes).
    h0, c0 = cell(gx[0:B, :], c0)

    # Skewed steady state: at iteration t we run layer-0 step t and layer-1
    # step t-1.  Both read the SAME (already available) h0, so their matmuls
    # are independent and the scheduler can keep two vmatmuls in flight.
    # T is a compile-time constant -> static full unroll.
    # TODO(synk): for production T (20-30+) switch to
    # lax.fori_loop(..., unroll=True) with pl.ds/pl.multiple_of slicing of gx
    # to bound vreg live ranges.
    for t in range(1, T):
        g0 = gx[t * B:(t + 1) * B, :] + bdot(h0, whh0)        # layer-0 step t
        g1 = bdot(h0, wih1) + bdot(h1, whh1) + b1b            # layer-1 step t-1
        h0, c0 = cell(g0, c0)
        h1, c1 = cell(g1, c1)

    # Epilogue: layer-1 step T-1 (consumes the final h0).
    g1 = bdot(h0, wih1) + bdot(h1, whh1) + b1b
    h1, c1 = cell(g1, c1)

    # QstEncoder tail: tanh(cat((hidden, cell), 2).transpose(0,1).reshape) @ Wq
    # (tanh is elementwise, so tanh(concat) == concat(tanh)).
    qcat = jnp.concatenate([jnp.tanh(h0), jnp.tanh(c0),
                            jnp.tanh(h1), jnp.tanh(c1)], axis=1)  # (B, 4Hp)
    qst_feature = bdot(qcat, wq_ref[...]) + bq_ref[...]

    # ---------------- classifier head ----------------
    # dropout(p=0.5) is identity in eval mode.
    combined = jnp.tanh(img_feature * qst_feature)
    combined = jnp.tanh(bdot(combined, w1_ref[...]) + fb1_ref[...])
    o_ref[...] = bdot(combined, w2_ref[...]) + fb2_ref[...]


# ----------------------------------------------------------------------------
# Wrapper: embedding gather (XLA glue), batch padding, single fused pallas_call
# ----------------------------------------------------------------------------
def vqa_forward(img, qst, pp, *, seq_len, hidden_pad, ans_vocab):
    B = img.shape[0]
    Bp = _round_up(max(B, 1), SUBLANE)        # dense sublanes / dense vst

    x_img = img.reshape(B, -1).astype(jnp.float32)
    x_img = jnp.pad(x_img, ((0, Bp - B), (0, 0)))

    # embedding lookup: (B,T) ids -> (T,Bp,Ewp) -> (T*Bp, Ewp); row t*Bp+b==(t,b)
    # TODO(synk): fuse this gather into the kernel via
    # PrefetchScalarGridSpec(num_scalar_prefetch=1) + pl.Element row gather once
    # T*B is large enough for the extra HBM round trip to matter.
    emb = jnp.take(pp["word2vec"], jnp.transpose(qst), axis=0)
    emb = jnp.pad(emb, ((0, 0), (0, Bp - B), (0, 0)))
    x_qst = emb.reshape(seq_len * Bp, -1).astype(jnp.float32)

    a_pad = pp["w2"].shape[1]
    kern = functools.partial(vqa_fused_kernel, seq_len=seq_len, batch=Bp,
                             hidden_pad=hidden_pad)
    # TODO(synk): for large batch on v7x add a leading 'parallel' grid axis over
    # batch tiles (dimension_semantics=("parallel",)) so both TensorCores are
    # used; at Bp=8 a single invocation is optimal.
    out_pad = pl.pallas_call(
        kern,
        out_shape=jax.ShapeDtypeStruct((Bp, a_pad), jnp.float32),
        in_specs=[pl.BlockSpec(memory_space=VMEM)] * 18,
        out_specs=pl.BlockSpec(memory_space=VMEM),
    )(x_img, x_qst,
      pp["wb"], pp["bb"], pp["wfc"], pp["bfc"],
      pp["wih0"], pp["whh0"], pp["b0"],
      pp["wih1"], pp["whh1"], pp["b1"],
      pp["wq"], pp["bq"],
      pp["w1"], pp["fb1"], pp["w2"], pp["fb2"])
    return out_pad[:B, :ans_vocab]


# ----------------------------------------------------------------------------
# Weight preparation: lane-align hidden / embed / word-embed / backbone /
# answer widths with zeros; weights -> bf16, biases stay f32.
# Padded positions provably stay zero through the whole forward (zero padded
# weight rows/cols and zero padded bias entries), so real outputs are
# unchanged; padding is sliced off in the wrapper.
# ----------------------------------------------------------------------------
def make_padded_params(p):
    hidden = p["whh0"].shape[0]
    word_embed = p["word2vec"].shape[1]
    backbone_feat = p["wb"].shape[1]
    embed = p["wfc"].shape[1]
    ans = p["fc1_w"].shape[1]

    hp = _round_up(hidden, LANE)
    ep = _round_up(embed, LANE)
    ap = _round_up(ans, LANE)
    ewp = _round_up(word_embed, LANE)
    fp = _round_up(backbone_feat, LANE)

    bf16, f32 = jnp.bfloat16, jnp.float32

    def pad2(w, rows, cols, dtype):
        return jnp.pad(w, ((0, rows - w.shape[0]),
                           (0, cols - w.shape[1]))).astype(dtype)

    def gate_pad(w, row_pad, dtype):
        """(rows, 4h) i,f,g,o layout -> (row_pad, 4hp), each gate lane-aligned."""
        parts = [jnp.pad(w[:, g * hidden:(g + 1) * hidden],
                         ((0, row_pad - w.shape[0]), (0, hp - hidden)))
                 for g in range(4)]
        return jnp.concatenate(parts, axis=1).astype(dtype)

    # wq rows are ordered [h0, c0, h1, c1] (each `hidden` wide) to match
    # cat((hidden, cell), 2).transpose(0,1).reshape(B, -1)
    n_chunks = p["wq"].shape[0] // hidden
    wq = jnp.concatenate(
        [jnp.pad(p["wq"][k * hidden:(k + 1) * hidden, :],
                 ((0, hp - hidden), (0, ep - embed)))
         for k in range(n_chunks)], axis=0).astype(bf16)              # (4hp, ep)

    params = {
        "word2vec": pad2(p["word2vec"], p["word2vec"].shape[0], ewp, f32),
        "wb": pad2(p["wb"], p["wb"].shape[0], fp, bf16),
        "bb": pad2(p["bb"], 1, fp, f32),
        "wfc": pad2(p["wfc"], fp, ep, bf16),
        "bfc": pad2(p["bfc"], 1, ep, f32),
        "wih0": gate_pad(p["wih0"], ewp, bf16),
        "whh0": gate_pad(p["whh0"], hp, bf16),
        "b0": gate_pad(p["lstm_b0"], 1, f32),
        "wih1": gate_pad(p["wih1"], hp, bf16),
        "whh1": gate_pad(p["whh1"], hp, bf16),
        "b1": gate_pad(p["lstm_b1"], 1, f32),
        "wq": wq,
        "bq": pad2(p["bq"], 1, ep, f32),
        "w1": pad2(p["fc1_w"], ep, ap, bf16),
        "fb1": pad2(p["fc1_b"], 1, ap, f32),
        "w2": pad2(p["fc2_w"], ap, ap, bf16),
        "fb2": pad2(p["fc2_b"], 1, ap, f32),
    }
    return params, hp


# ----------------------------------------------------------------------------
# Pure-JAX reference (unpadded, f32 everywhere) for correctness checking
# ----------------------------------------------------------------------------
def reference_forward(img, qst, p, *, hidden, num_layers):
    B = img.shape[0]
    T = qst.shape[1]
    x = img.reshape(B, -1).astype(jnp.float32)
    feat = x @ p["wb"] + p["bb"]
    emb = feat @ p["wfc"] + p["bfc"]
    img_f = emb / jnp.sqrt(jnp.sum(emb * emb, axis=1, keepdims=True))

    qv = jnp.tanh(jnp.take(p["word2vec"], qst, axis=0))     # (B,T,Ew)
    qv = jnp.transpose(qv, (1, 0, 2))                        # (T,B,Ew)
    wih = [p["wih0"], p["wih1"]]
    whh = [p["whh0"], p["whh1"]]
    bias = [p["lstm_b0"], p["lstm_b1"]]
    h = [jnp.zeros((B, hidden), jnp.float32) for _ in range(num_layers)]
    c = [jnp.zeros((B, hidden), jnp.float32) for _ in range(num_layers)]
    for t in range(T):
        inp = qv[t]
        for l in range(num_layers):
            g = inp @ wih[l] + h[l] @ whh[l] + bias[l]
            i = jax.nn.sigmoid(g[:, :hidden])
            f = jax.nn.sigmoid(g[:, hidden:2 * hidden])
            gg = jnp.tanh(g[:, 2 * hidden:3 * hidden])
            o = jax.nn.sigmoid(g[:, 3 * hidden:])
            c[l] = f * c[l] + i * gg
            h[l] = o * jnp.tanh(c[l])
            inp = h[l]
    qcat = jnp.concatenate([jnp.stack(h, 0), jnp.stack(c, 0)], axis=2)  # (L,B,2H)
    qcat = jnp.transpose(qcat, (1, 0, 2)).reshape(B, -1)
    qst_f = jnp.tanh(qcat) @ p["wq"] + p["bq"]

    comb = jnp.tanh(img_f * qst_f)
    comb = jnp.tanh(comb @ p["fc1_w"] + p["fc1_b"])
    return comb @ p["fc2_w"] + p["fc2_b"]


# ----------------------------------------------------------------------------
if __name__ == "__main__":
    # small, forward-consistent shapes
    B, C, Himg, Wimg = 2, 3, 16, 16
    T = 8
    embed_size = 32
    qst_vocab_size = 50
    ans_vocab_size = 40
    word_embed_size = 16
    num_layers = 2
    hidden_size = 16
    backbone_feat = 64        # stand-in for the pretrained model's in_features

    key = jax.random.PRNGKey(0)
    ks = jax.random.split(key, 20)

    def rn(k, shape, scale=0.1):
        return (scale * jax.random.normal(k, shape)).astype(jnp.float32)

    # distinct, collision-free parameter names; weights stored (in, out)
    raw = {
        "wb": rn(ks[0], (C * Himg * Wimg, backbone_feat)),
        "bb": rn(ks[1], (1, backbone_feat)),
        "wfc": rn(ks[2], (backbone_feat, embed_size)),
        "bfc": rn(ks[3], (1, embed_size)),
        "word2vec": rn(ks[4], (qst_vocab_size, word_embed_size), 1.0),
        "wih0": rn(ks[5], (word_embed_size, 4 * hidden_size)),
        "whh0": rn(ks[6], (hidden_size, 4 * hidden_size)),
        "lstm_b0": rn(ks[7], (1, 4 * hidden_size)),   # b_ih + b_hh combined
        "wih1": rn(ks[8], (hidden_size, 4 * hidden_size)),
        "whh1": rn(ks[9], (hidden_size, 4 * hidden_size)),
        "lstm_b1": rn(ks[10], (1, 4 * hidden_size)),
        "wq": rn(ks[11], (2 * num_layers * hidden_size, embed_size)),
        "bq": rn(ks[12], (1, embed_size)),
        "fc1_w": rn(ks[13], (embed_size, ans_vocab_size)),
        "fc1_b": rn(ks[14], (1, ans_vocab_size)),
        "fc2_w": rn(ks[15], (ans_vocab_size, ans_vocab_size)),
        "fc2_b": rn(ks[16], (1, ans_vocab_size)),
    }

    padded, H_PAD = make_padded_params(raw)

    img = jax.random.normal(jax.random.PRNGKey(1), (B, C, Himg, Wimg),
                            dtype=jnp.float32)
    qst = jax.random.randint(jax.random.PRNGKey(2), (B, T), 0, qst_vocab_size)

    fwd = jax.jit(functools.partial(vqa_forward, seq_len=T,
                                    hidden_pad=H_PAD,
                                    ans_vocab=ans_vocab_size))
    out = fwd(img, qst, padded)
    out = jax.block_until_ready(out)

    ref = reference_forward(img, qst, raw, hidden=hidden_size,
                            num_layers=num_layers)

    assert out.shape == (B, ans_vocab_size), out.shape
    assert bool(jnp.all(jnp.isfinite(out)))
    # bf16 weight storage / bf16 MXU inputs (f32 accumulate) vs f32 reference:
    # expected max deviation is ~1e-3 at these magnitudes.
    assert bool(jnp.allclose(out, ref, atol=5e-3, rtol=5e-3)), (
        float(jnp.max(jnp.abs(out - ref))))
    print("KERNEL_OK")
</pallas_src>

<mosaic_0001>
module attributes {stable_mosaic.version = 11 : i64} {
  func.func @vqa_fused_kernel(%arg0: memref<8x768xf32, #tpu.memory_space<vmem>>, %arg1: memref<64x128xf32, #tpu.memory_space<vmem>>, %arg2: memref<768x128xbf16, #tpu.memory_space<vmem>>, %arg3: memref<1x128xf32, #tpu.memory_space<vmem>>, %arg4: memref<128x128xbf16, #tpu.memory_space<vmem>>, %arg5: memref<1x128xf32, #tpu.memory_space<vmem>>, %arg6: memref<128x512xbf16, #tpu.memory_space<vmem>>, %arg7: memref<128x512xbf16, #tpu.memory_space<vmem>>, %arg8: memref<1x512xf32, #tpu.memory_space<vmem>>, %arg9: memref<128x512xbf16, #tpu.memory_space<vmem>>, %arg10: memref<128x512xbf16, #tpu.memory_space<vmem>>, %arg11: memref<1x512xf32, #tpu.memory_space<vmem>>, %arg12: memref<512x128xbf16, #tpu.memory_space<vmem>>, %arg13: memref<1x128xf32, #tpu.memory_space<vmem>>, %arg14: memref<128x128xbf16, #tpu.memory_space<vmem>>, %arg15: memref<1x128xf32, #tpu.memory_space<vmem>>, %arg16: memref<128x128xbf16, #tpu.memory_space<vmem>>, %arg17: memref<1x128xf32, #tpu.memory_space<vmem>>, %arg18: memref<8x128xf32, #tpu.memory_space<vmem>>) attributes {dimension_semantics = [], scalar_prefetch = 0 : i64, scratch_operands = 0 : i64, tpu.core_type = #tpu.core_type<tc>} {
    %c0 = arith.constant 0 : index
    %c0_0 = arith.constant 0 : index
    %0 = vector.load %arg0[%c0, %c0_0] : memref<8x768xf32, #tpu.memory_space<vmem>>, vector<8x768xf32>
    %c0_1 = arith.constant 0 : index
    %c0_2 = arith.constant 0 : index
    %1 = vector.load %arg2[%c0_1, %c0_2] : memref<768x128xbf16, #tpu.memory_space<vmem>>, vector<768x128xbf16>
    %2 = arith.truncf %0 : vector<8x768xf32> to vector<8x768xbf16>
    %cst = arith.constant dense<0.000000e+00> : vector<8x128xf32>
    %3 = tpu.matmul %2, %1, %cst {dimension_numbers = #tpu.dot_dimension_numbers<[1], [0], [0], [1], [0, 0, 1, 1], [], []>} : vector<8x768xbf16>, vector<768x128xbf16>, vector<8x128xf32> -> vector<8x128xf32>
    %c0_3 = arith.constant 0 : index
    %c0_4 = arith.constant 0 : index
    %4 = vector.load %arg3[%c0_3, %c0_4] : memref<1x128xf32, #tpu.memory_space<vmem>>, vector<1x128xf32>
    %5 = vector.broadcast %4 : vector<1x128xf32> to vector<8x128xf32>
    %6 = arith.addf %3, %5 : vector<8x128xf32>
    %c0_5 = arith.constant 0 : index
    %c0_6 = arith.constant 0 : index
    %7 = vector.load %arg4[%c0_5, %c0_6] : memref<128x128xbf16, #tpu.memory_space<vmem>>, vector<128x128xbf16>
    %8 = arith.truncf %6 : vector<8x128xf32> to vector<8x128xbf16>
    %cst_7 = arith.constant dense<0.000000e+00> : vector<8x128xf32>
    %9 = tpu.matmul %8, %7, %cst_7 {dimension_numbers = #tpu.dot_dimension_numbers<[1], [0], [0], [1], [0, 0, 1, 1], [], []>} : vector<8x128xbf16>, vector<128x128xbf16>, vector<8x128xf32> -> vector<8x128xf32>
    %c0_8 = arith.constant 0 : index
    %c0_9 = arith.constant 0 : index
    %10 = vector.load %arg5[%c0_8, %c0_9] : memref<1x128xf32, #tpu.memory_space<vmem>>, vector<1x128xf32>
    %11 = vector.broadcast %10 : vector<1x128xf32> to vector<8x128xf32>
    %12 = arith.addf %9, %11 : vector<8x128xf32>
    %13 = arith.mulf %12, %12 : vector<8x128xf32>
    %cst_10 = arith.constant dense<0.000000e+00> : vector<8xf32>
    %14 = vector.multi_reduction <add>, %13, %cst_10 [1] : vector<8x128xf32> to vector<8xf32>
    %15 = vector.shape_cast %14 : vector<8xf32> to vector<8x1xf32>
    %cst_11 = arith.constant 9.99999996E-13 : f32
    %16 = vector.broadcast %cst_11 : f32 to vector<8x1xf32>
    %17 = arith.addf %15, %16 : vector<8x1xf32>
    %18 = math.rsqrt %17 : vector<8x1xf32>
    %19 = vector.broadcast %18 : vector<8x1xf32> to vector<8x128xf32>
    %20 = arith.mulf %12, %19 : vector<8x128xf32>
    %c0_12 = arith.constant 0 : index
    %c0_13 = arith.constant 0 : index
    %21 = vector.load %arg1[%c0_12, %c0_13] : memref<64x128xf32, #tpu.memory_space<vmem>>, vector<64x128xf32>
    %22 = math.tanh %21 : vector<64x128xf32>
    %c0_14 = arith.constant 0 : index
    %c0_15 = arith.constant 0 : index
    %23 = vector.load %arg6[%c0_14, %c0_15] : memref<128x512xbf16, #tpu.memory_space<vmem>>, vector<128x512xbf16>
    %24 = arith.truncf %22 : vector<64x128xf32> to vector<64x128xbf16>
    %cst_16 = arith.constant dense<0.000000e+00> : vector<64x512xf32>
    %25 = tpu.matmul %24, %23, %cst_16 {dimension_numbers = #tpu.dot_dimension_numbers<[1], [0], [0], [1], [0, 0, 1, 1], [], []>} : vector<64x128xbf16>, vector<128x512xbf16>, vector<64x512xf32> -> vector<64x512xf32>
    %c0_17 = arith.constant 0 : index
    %c0_18 = arith.constant 0 : index
    %26 = vector.load %arg8[%c0_17, %c0_18] : memref<1x512xf32, #tpu.memory_space<vmem>>, vector<1x512xf32>
    %27 = vector.broadcast %26 : vector<1x512xf32> to vector<64x512xf32>
    %28 = arith.addf %25, %27 : vector<64x512xf32>
    %c0_19 = arith.constant 0 : index
    %c0_20 = arith.constant 0 : index
    %29 = vector.load %arg7[%c0_19, %c0_20] : memref<128x512xbf16, #tpu.memory_space<vmem>>, vector<128x512xbf16>
    %c0_21 = arith.constant 0 : index
    %c0_22 = arith.constant 0 : index
    %30 = vector.load %arg9[%c0_21, %c0_22] : memref<128x512xbf16, #tpu.memory_space<vmem>>, vector<128x512xbf16>
    %c0_23 = arith.constant 0 : index
    %c0_24 = arith.constant 0 : index
    %31 = vector.load %arg10[%c0_23, %c0_24] : memref<128x512xbf16, #tpu.memory_space<vmem>>, vector<128x512xbf16>
    %c0_25 = arith.constant 0 : index
    %c0_26 = arith.constant 0 : index
    %32 = vector.load %arg11[%c0_25, %c0_26] : memref<1x512xf32, #tpu.memory_space<vmem>>, vector<1x512xf32>
    %33 = vector.shape_cast %32 : vector<1x512xf32> to vector<1x512xf32>
    %34 = vector.broadcast %33 : vector<1x512xf32> to vector<8x512xf32>
    %cst_27 = arith.constant 0.000000e+00 : f32
    %35 = vector.broadcast %cst_27 : f32 to vector<8x128xf32>
    %cst_28 = arith.constant 0.000000e+00 : f32
    %36 = vector.broadcast %cst_28 : f32 to vector<8x128xf32>
    %cst_29 = arith.constant 0.000000e+00 : f32
    %37 = vector.broadcast %cst_29 : f32 to vector<8x128xf32>
    %38 = vector.extract_strided_slice %28 {offsets = [0, 0], sizes = [8, 512], strides = [1, 1]} : vector<64x512xf32> to vector<8x512xf32>
    %39 = vector.extract_strided_slice %38 {offsets = [0, 0], sizes = [8, 128], strides = [1, 1]} : vector<8x512xf32> to vector<8x128xf32>
    %cst_30 = arith.constant 5.000000e-01 : f32
    %40 = vector.broadcast %cst_30 : f32 to vector<8x128xf32>
    %41 = arith.mulf %40, %39 : vector<8x128xf32>
    %42 = math.tanh %41 : vector<8x128xf32>
    %cst_31 = arith.constant 1.000000e+00 : f32
    %43 = vector.broadcast %cst_31 : f32 to vector<8x128xf32>
    %44 = arith.addf %42, %43 : vector<8x128xf32>
    %cst_32 = arith.constant 5.000000e-01 : f32
    %45 = vector.broadcast %cst_32 : f32 to vector<8x128xf32>
    %46 = arith.mulf %45, %44 : vector<8x128xf32>
    %47 = vector.extract_strided_slice %38 {offsets = [0, 128], sizes = [8, 128], strides = [1, 1]} : vector<8x512xf32> to vector<8x128xf32>
    %cst_33 = arith.constant 5.000000e-01 : f32
    %48 = vector.broadcast %cst_33 : f32 to vector<8x128xf32>
    %49 = arith.mulf %48, %47 : vector<8x128xf32>
    %50 = math.tanh %49 : vector<8x128xf32>
    %cst_34 = arith.constant 1.000000e+00 : f32
    %51 = vector.broadcast %cst_34 : f32 to vector<8x128xf32>
    %52 = arith.addf %50, %51 : vector<8x128xf32>
    %cst_35 = arith.constant 5.000000e-01 : f32
    %53 = vector.broadcast %cst_35 : f32 to vector<8x128xf32>
    %54 = arith.mulf %53, %52 : vector<8x128xf32>
    %55 = vector.extract_strided_slice %38 {offsets = [0, 256], sizes = [8, 128], strides = [1, 1]} : vector<8x512xf32> to vector<8x128xf32>
    %56 = math.tanh %55 : vector<8x128xf32>
    %57 = vector.extract_strided_slice %38 {offsets = [0, 384], sizes = [8, 128], strides = [1, 1]} : vector<8x512xf32> to vector<8x128xf32>
    %cst_36 = arith.constant 5.000000e-01 : f32
    %58 = vector.broadcast %cst_36 : f32 to vector<8x128xf32>
    %59 = arith.mulf %58, %57 : vector<8x128xf32>
    %60 = math.tanh %59 : vector<8x128xf32>
    %cst_37 = arith.constant 1.000000e+00 : f32
    %61 = vector.broadcast %cst_37 : f32 to vector<8x128xf32>
    %62 = arith.addf %60, %61 : vector<8x128xf32>
    %cst_38 = arith.constant 5.000000e-01 : f32
    %63 = vector.broadcast %cst_38 : f32 to vector<8x128xf32>
    %64 = arith.mulf %63, %62 : vector<8x128xf32>
    %65 = arith.mulf %54, %35 : vector<8x128xf32>
    %66 = arith.mulf %46, %56 : vector<8x128xf32>
    %67 = arith.addf %65, %66 : vector<8x128xf32>
    %68 = math.tanh %67 : vector<8x128xf32>
    %69 = arith.mulf %64, %68 : vector<8x128xf32>
    %70 = vector.extract_strided_slice %28 {offsets = [8, 0], sizes = [8, 512], strides = [1, 1]} : vector<64x512xf32> to vector<8x512xf32>
    %71 = arith.truncf %69 : vector<8x128xf32> to vector<8x128xbf16>
    %cst_39 = arith.constant dense<0.000000e+00> : vector<8x512xf32>
    %72 = tpu.matmul %71, %29, %cst_39 {dimension_numbers = #tpu.dot_dimension_numbers<[1], [0], [0], [1], [0, 0, 1, 1], [], []>} : vector<8x128xbf16>, vector<128x512xbf16>, vector<8x512xf32> -> vector<8x512xf32>
    %73 = arith.addf %70, %72 : vector<8x512xf32>
    %74 = arith.truncf %69 : vector<8x128xf32> to vector<8x128xbf16>
    %cst_40 = arith.constant dense<0.000000e+00> : vector<8x512xf32>
    %75 = tpu.matmul %74, %30, %cst_40 {dimension_numbers = #tpu.dot_dimension_numbers<[1], [0], [0], [1], [0, 0, 1, 1], [], []>} : vector<8x128xbf16>, vector<128x512xbf16>, vector<8x512xf32> -> vector<8x512xf32>
    %76 = arith.truncf %36 : vector<8x128xf32> to vector<8x128xbf16>
    %cst_41 = arith.constant dense<0.000000e+00> : vector<8x512xf32>
    %77 = tpu.matmul %76, %31, %cst_41 {dimension_numbers = #tpu.dot_dimension_numbers<[1], [0], [0], [1], [0, 0, 1, 1], [], []>} : vector<8x128xbf16>, vector<128x512xbf16>, vector<8x512xf32> -> vector<8x512xf32>
    %78 = arith.addf %75, %77 : vector<8x512xf32>
    %79 = arith.addf %78, %34 : vector<8x512xf32>
    %80 = vector.extract_strided_slice %73 {offsets = [0, 0], sizes = [8, 128], strides = [1, 1]} : vector<8x512xf32> to vector<8x128xf32>
    %cst_42 = arith.constant 5.000000e-01 : f32
    %81 = vector.broadcast %cst_42 : f32 to vector<8x128xf32>
    %82 = arith.mulf %81, %80 : vector<8x128xf32>
    %83 = math.tanh %82 : vector<8x128xf32>
    %cst_43 = arith.constant 1.000000e+00 : f32
    %84 = vector.broadcast %cst_43 : f32 to vector<8x128xf32>
    %85 = arith.addf %83, %84 : vector<8x128xf32>
    %cst_44 = arith.constant 5.000000e-01 : f32
    %86 = vector.broadcast %cst_44 : f32 to vector<8x128xf32>
    %87 = arith.mulf %86, %85 : vector<8x128xf32>
    %88 = vector.extract_strided_slice %73 {offsets = [0, 128], sizes = [8, 128], strides = [1, 1]} : vector<8x512xf32> to vector<8x128xf32>
    %cst_45 = arith.constant 5.000000e-01 : f32
    %89 = vector.broadcast %cst_45 : f32 to vector<8x128xf32>
    %90 = arith.mulf %89, %88 : vector<8x128xf32>
    %91 = math.tanh %90 : vector<8x128xf32>
    %cst_46 = arith.constant 1.000000e+00 : f32
    %92 = vector.broadcast %cst_46 : f32 to vector<8x128xf32>
    %93 = arith.addf %91, %92 : vector<8x128xf32>
    %cst_47 = arith.constant 5.000000e-01 : f32
    %94 = vector.broadcast %cst_47 : f32 to vector<8x128xf32>
    %95 = arith.mulf %94, %93 : vector<8x128xf32>
    %96 = vector.extract_strided_slice %73 {offsets = [0, 256], sizes = [8, 128], strides = [1, 1]} : vector<8x512xf32> to vector<8x128xf32>
    %97 = math.tanh %96 : vector<8x128xf32>
    %98 = vector.extract_strided_slice %73 {offsets = [0, 384], sizes = [8, 128], strides = [1, 1]} : vector<8x512xf32> to vector<8x128xf32>
    %cst_48 = arith.constant 5.000000e-01 : f32
    %99 = vector.broadcast %cst_48 : f32 to vector<8x128xf32>
    %100 = arith.mulf %99, %98 : vector<8x128xf32>
    %101 = math.tanh %100 : vector<8x128xf32>
    %cst_49 = arith.constant 1.000000e+00 : f32
    %102 = vector.broadcast %cst_49 : f32 to vector<8x128xf32>
    %103 = arith.addf %101, %102 : vector<8x128xf32>
    %cst_50 = arith.constant 5.000000e-01 : f32
    %104 = vector.broadcast %cst_50 : f32 to vector<8x128xf32>
    %105 = arith.mulf %104, %103 : vector<8x128xf32>
    %106 = arith.mulf %95, %67 : vector<8x128xf32>
    %107 = arith.mulf %87, %97 : vector<8x128xf32>
    %108 = arith.addf %106, %107 : vector<8x128xf32>
    %109 = math.tanh %108 : vector<8x128xf32>
    %110 = arith.mulf %105, %109 : vector<8x128xf32>
    %111 = vector.extract_strided_slice %79 {offsets = [0, 0], sizes = [8, 128], strides = [1, 1]} : vector<8x512xf32> to vector<8x128xf32>
    %cst_51 = arith.constant 5.000000e-01 : f32
    %112 = vector.broadcast %cst_51 : f32 to vector<8x128xf32>
    %113 = arith.mulf %112, %111 : vector<8x128xf32>
    %114 = math.tanh %113 : vector<8x128xf32>
    %cst_52 = arith.constant 1.000000e+00 : f32
    %115 = vector.broadcast %cst_52 : f32 to vector<8x128xf32>
    %116 = arith.addf %114, %115 : vector<8x128xf32>
    %cst_53 = arith.constant 5.000000e-01 : f32
    %117 = vector.broadcast %cst_53 : f32 to vector<8x128xf32>
    %118 = arith.mulf %117, %116 : vector<8x128xf32>
    %119 = vector.extract_strided_slice %79 {offsets = [0, 128], sizes = [8, 128], strides = [1, 1]} : vector<8x512xf32> to vector<8x128xf32>
    %cst_54 = arith.constant 5.000000e-01 : f32
    %120 = vector.broadcast %cst_54 : f32 to vector<8x128xf32>
    %121 = arith.mulf %120, %119 : vector<8x128xf32>
    %122 = math.tanh %121 : vector<8x128xf32>
    %cst_55 = arith.constant 1.000000e+00 : f32
    %123 = vector.broadcast %cst_55 : f32 to vector<8x128xf32>
    %124 = arith.addf %122, %123 : vector<8x128xf32>
    %cst_56 = arith.constant 5.000000e-01 : f32
    %125 = vector.broadcast %cst_56 : f32 to vector<8x128xf32>
    %126 = arith.mulf %125, %124 : vector<8x128xf32>
    %127 = vector.extract_strided_slice %79 {offsets = [0, 256], sizes = [8, 128], strides = [1, 1]} : vector<8x512xf32> to vector<8x128xf32>
    %128 = math.tanh %127 : vector<8x128xf32>
    %129 = vector.extract_strided_slice %79 {offsets = [0, 384], sizes = [8, 128], strides = [1, 1]} : vector<8x512xf32> to vector<8x128xf32>
    %cst_57 = arith.constant 5.000000e-01 : f32
    %130 = vector.broadcast %cst_57 : f32 to vector<8x128xf32>
    %131 = arith.mulf %130, %129 : vector<8x128xf32>
    %132 = math.tanh %131 : vector<8x128xf32>
    %cst_58 = arith.constant 1.000000e+00 : f32
    %133 = vector.broadcast %cst_58 : f32 to vector<8x128xf32>
    %134 = arith.addf %132, %133 : vector<8x128xf32>
    %cst_59 = arith.constant 5.000000e-01 : f32
    %135 = vector.broadcast %cst_59 : f32 to vector<8x128xf32>
    %136 = arith.mulf %135, %134 : vector<8x128xf32>
    %137 = arith.mulf %126, %37 : vector<8x128xf32>
    %138 = arith.mulf %118, %128 : vector<8x128xf32>
    %139 = arith.addf %137, %138 : vector<8x128xf32>
    %140 = math.tanh %139 : vector<8x128xf32>
    %141 = arith.mulf %136, %140 : vector<8x128xf32>
    %142 = vector.extract_strided_slice %28 {offsets = [16, 0], sizes = [8, 512], strides = [1, 1]} : vector<64x512xf32> to vector<8x512xf32>
    %143 = arith.truncf %110 : vector<8x128xf32> to vector<8x128xbf16>
    %cst_60 = arith.constant dense<0.000000e+00> : vector<8x512xf32>
    %144 = tpu.matmul %143, %29, %cst_60 {dimension_numbers = #tpu.dot_dimension_numbers<[1], [0], [0], [1], [0, 0, 1, 1], [], []>} : vector<8x128xbf16>, vector<128x512xbf16>, vector<8x512xf32> -> vector<8x512xf32>
    %145 = arith.addf %142, %144 : vector<8x512xf32>
    %146 = arith.truncf %110 : vector<8x128xf32> to vector<8x128xbf16>
    %cst_61 = arith.constant dense<0.000000e+00> : vector<8x512xf32>
    %147 = tpu.matmul %146, %30, %cst_61 {dimension_numbers = #tpu.dot_dimension_numbers<[1], [0], [0], [1], [0, 0, 1, 1], [], []>} : vector<8x128xbf16>, vector<128x512xbf16>, vector<8x512xf32> -> vector<8x512xf32>
    %148 = arith.truncf %141 : vector<8x128xf32> to vector<8x128xbf16>
    %cst_62 = arith.constant dense<0.000000e+00> : vector<8x512xf32>
    %149 = tpu.matmul %148, %31, %cst_62 {dimension_numbers = #tpu.dot_dimension_numbers<[1], [0], [0], [1], [0, 0, 1, 1], [], []>} : vector<8x128xbf16>, vector<128x512xbf16>, vector<8x512xf32> -> vector<8x512xf32>
    %150 = arith.addf %147, %149 : vector<8x512xf32>
    %151 = arith.addf %150, %34 : vector<8x512xf32>
    %152 = vector.extract_strided_slice %145 {offsets = [0, 0], sizes = [8, 128], strides = [1, 1]} : vector<8x512xf32> to vector<8x128xf32>
    %cst_63 = arith.constant 5.000000e-01 : f32
    %153 = vector.broadcast %cst_63 : f32 to vector<8x128xf32>
    %154 = arith.mulf %153, %152 : vector<8x128xf32>
    %155 = math.tanh %154 : vector<8x128xf32>
    %cst_64 = arith.constant 1.000000e+00 : f32
    %156 = vector.broadcast %cst_64 : f32 to vector<8x128xf32>
    %157 = arith.addf %155, %156 : vector<8x128xf32>
    %cst_65 = arith.constant 5.000000e-01 : f32
    %158 = vector.broadcast %cst_65 : f32 to vector<8x128xf32>
    %159 = arith.mulf %158, %157 : vector<8x128xf32>
    %160 = vector.extract_strided_slice %145 {offsets = [0, 128], sizes = [8, 128], strides = [1, 1]} : vector<8x512xf32> to vector<8x128xf32>
    %cst_66 = arith.constant 5.000000e-01 : f32
    %161 = vector.broadcast %cst_66 : f32 to vector<8x128xf32>
    %162 = arith.mulf %161, %160 : vector<8x128xf32>
    %163 = math.tanh %162 : vector<8x128xf32>
    %cst_67 = arith.constant 1.000000e+00 : f32
    %164 = vector.broadcast %cst_67 : f32 to vector<8x128xf32>
    %165 = arith.addf %163, %164 : vector<8x128xf32>
    %cst_68 = arith.constant 5.000000e-01 : f32
    %166 = vector.broadcast %cst_68 : f32 to vector<8x128xf32>
    %167 = arith.mulf %166, %165 : vector<8x128xf32>
    %168 = vector.extract_strided_slice %145 {offsets = [0, 256], sizes = [8, 128], strides = [1, 1]} : vector<8x512xf32> to vector<8x128xf32>
    %169 = math.tanh %168 : vector<8x128xf32>
    %170 = vector.extract_strided_slice %145 {offsets = [0, 384], sizes = [8, 128], strides = [1, 1]} : vector<8x512xf32> to vector<8x128xf32>
    %cst_69 = arith.constant 5.000000e-01 : f32
    %171 = vector.broadcast %cst_69 : f32 to vector<8x128xf32>
    %172 = arith.mulf %171, %170 : vector<8x128xf32>
    %173 = math.tanh %172 : vector<8x128xf32>
    %cst_70 = arith.constant 1.000000e+00 : f32
    %174 = vector.broadcast %cst_70 : f32 to vector<8x128xf32>
    %175 = arith.addf %173, %174 : vector<8x128xf32>
    %cst_71 = arith.constant 5.000000e-01 : f32
    %176 = vector.broadcast %cst_71 : f32 to vector<8x128xf32>
    %177 = arith.mulf %176, %175 : vector<8x128xf32>
    %178 = arith.mulf %167, %108 : vector<8x128xf32>
    %179 = arith.mulf %159, %169 : vector<8x128xf32>
    %180 = arith.addf %178, %179 : vector<8x128xf32>
    %181 = math.tanh %180 : vector<8x128xf32>
    %182 = arith.mulf %177, %181 : vector<8x128xf32>
    %183 = vector.extract_strided_slice %151 {offsets = [0, 0], sizes = [8, 128], strides = [1, 1]} : vector<8x512xf32> to vector<8x128xf32>
    %cst_72 = arith.constant 5.000000e-01 : f32
    %184 = vector.broadcast %cst_72 : f32 to vector<8x128xf32>
    %185 = arith.mulf %184, %183 : vector<8x128xf32>
    %186 = math.tanh %185 : vector<8x128xf32>
    %cst_73 = arith.constant 1.000000e+00 : f32
    %187 = vector.broadcast %cst_73 : f32 to vector<8x128xf32>
    %188 = arith.addf %186, %187 : vector<8x128xf32>
    %cst_74 = arith.constant 5.000000e-01 : f32
    %189 = vector.broadcast %cst_74 : f32 to vector<8x128xf32>
    %190 = arith.mulf %189, %188 : vector<8x128xf32>
    %191 = vector.extract_strided_slice %151 {offsets = [0, 128], sizes = [8, 128], strides = [1, 1]} : vector<8x512xf32> to vector<8x128xf32>
    %cst_75 = arith.constant 5.000000e-01 : f32
    %192 = vector.broadcast %cst_75 : f32 to vector<8x128xf32>
    %193 = arith.mulf %192, %191 : vector<8x128xf32>
    %194 = math.tanh %193 : vector<8x128xf32>
    %cst_76 = arith.constant 1.000000e+00 : f32
    %195 = vector.broadcast %cst_76 : f32 to vector<8x128xf32>
    %196 = arith.addf %194, %195 : vector<8x128xf32>
    %cst_77 = arith.constant 5.000000e-01 : f32
    %197 = vector.broadcast %cst_77 : f32 to vector<8x128xf32>
    %198 = arith.mulf %197, %196 : vector<8x128xf32>
    %199 = vector.extract_strided_slice %151 {offsets = [0, 256], sizes = [8, 128], strides = [1, 1]} : vector<8x512xf32> to vector<8x128xf32>
    %200 = math.tanh %199 : vector<8x128xf32>
    %201 = vector.extract_strided_slice %151 {offsets = [0, 384], sizes = [8, 128], strides = [1, 1]} : vector<8x512xf32> to vector<8x128xf32>
    %cst_78 = arith.constant 5.000000e-01 : f32
    %202 = vector.broadcast %cst_78 : f32 to vector<8x128xf32>
    %203 = arith.mulf %202, %201 : vector<8x128xf32>
    %204 = math.tanh %203 : vector<8x128xf32>
    %cst_79 = arith.constant 1.000000e+00 : f32
    %205 = vector.broadcast %cst_79 : f32 to vector<8x128xf32>
    %206 = arith.addf %204, %205 : vector<8x128xf32>
    %cst_80 = arith.constant 5.000000e-01 : f32
    %207 = vector.broadcast %cst_80 : f32 to vector<8x128xf32>
    %208 = arith.mulf %207, %206 : vector<8x128xf32>
    %209 = arith.mulf %198, %139 : vector<8x128xf32>
    %210 = arith.mulf %190, %200 : vector<8x128xf32>
    %211 = arith.addf %209, %210 : vector<8x128xf32>
    %212 = math.tanh %211 : vector<8x128xf32>
    %213 = arith.mulf %208, %212 : vector<8x128xf32>
    %214 = vector.extract_strided_slice %28 {offsets = [24, 0], sizes = [8, 512], strides = [1, 1]} : vector<64x512xf32> to vector<8x512xf32>
    %215 = arith.truncf %182 : vector<8x128xf32> to vector<8x128xbf16>
    %cst_81 = arith.constant dense<0.000000e+00> : vector<8x512xf32>
    %216 = tpu.matmul %215, %29, %cst_81 {dimension_numbers = #tpu.dot_dimension_numbers<[1], [0], [0], [1], [0, 0, 1, 1], [], []>} : vector<8x128xbf16>, vector<128x512xbf16>, vector<8x512xf32> -> vector<8x512xf32>
    %217 = arith.addf %214, %216 : vector<8x512xf32>
    %218 = arith.truncf %182 : vector<8x128xf32> to vector<8x128xbf16>
    %cst_82 = arith.constant dense<0.000000e+00> : vector<8x512xf32>
    %219 = tpu.matmul %218, %30, %cst_82 {dimension_numbers = #tpu.dot_dimension_numbers<[1], [0], [0], [1], [0, 0, 1, 1], [], []>} : vector<8x128xbf16>, vector<128x512xbf16>, vector<8x512xf32> -> vector<8x512xf32>
    %220 = arith.truncf %213 : vector<8x128xf32> to vector<8x128xbf16>
    %cst_83 = arith.constant dense<0.000000e+00> : vector<8x512xf32>
    %221 = tpu.matmul %220, %31, %cst_83 {dimension_numbers = #tpu.dot_dimension_numbers<[1], [0], [0], [1], [0, 0, 1, 1], [], []>} : vector<8x128xbf16>, vector<128x512xbf16>, vector<8x512xf32> -> vector<8x512xf32>
    %222 = arith.addf %219, %221 : vector<8x512xf32>
    %223 = arith.addf %222, %34 : vector<8x512xf32>
    %224 = vector.extract_strided_slice %217 {offsets = [0, 0], sizes = [8, 128], strides = [1, 1]} : vector<8x512xf32> to vector<8x128xf32>
    %cst_84 = arith.constant 5.000000e-01 : f32
    %225 = vector.broadcast %cst_84 : f32 to vector<8x128xf32>
    %226 = arith.mulf %225, %224 : vector<8x128xf32>
    %227 = math.tanh %226 : vector<8x128xf32>
    %cst_85 = arith.constant 1.000000e+00 : f32
    %228 = vector.broadcast %cst_85 : f32 to vector<8x128xf32>
    %229 = arith.addf %227, %228 : vector<8x128xf32>
    %cst_86 = arith.constant 5.000000e-01 : f32
    %230 = vector.broadcast %cst_86 : f32 to vector<8x128xf32>
    %231 = arith.mulf %230, %229 : vector<8x128xf32>
    %232 = vector.extract_strided_slice %217 {offsets = [0, 128], sizes = [8, 128], strides = [1, 1]} : vector<8x512xf32> to vector<8x128xf32>
    %cst_87 = arith.constant 5.000000e-01 : f32
    %233 = vector.broadcast %cst_87 : f32 to vector<8x128xf32>
    %234 = arith.mulf %233, %232 : vector<8x128xf32>
    %235 = math.tanh %234 : vector<8x128xf32>
    %cst_88 = arith.constant 1.000000e+00 : f32
    %236 = vector.broadcast %cst_88 : f32 to vector<8x128xf32>
    %237 = arith.addf %235, %236 : vector<8x128xf32>
    %cst_89 = arith.constant 5.000000e-01 : f32
    %238 = vector.broadcast %cst_89 : f32 to vector<8x128xf32>
    %239 = arith.mulf %238, %237 : vector<8x128xf32>
    %240 = vector.extract_strided_slice %217 {offsets = [0, 256], sizes = [8, 128], strides = [1, 1]} : vector<8x512xf32> to vector<8x128xf32>
    %241 = math.tanh %240 : vector<8x128xf32>
    %242 = vector.extract_strided_slice %217 {offsets = [0, 384], sizes = [8, 128], strides = [1, 1]} : vector<8x512xf32> to vector<8x128xf32>
    %cst_90 = arith.constant 5.000000e-01 : f32
    %243 = vector.broadcast %cst_90 : f32 to vector<8x128xf32>
    %244 = arith.mulf %243, %242 : vector<8x128xf32>
    %245 = math.tanh %244 : vector<8x128xf32>
    %cst_91 = arith.constant 1.000000e+00 : f32
    %246 = vector.broadcast %cst_91 : f32 to vector<8x128xf32>
    %247 = arith.addf %245, %246 : vector<8x128xf32>
    %cst_92 = arith.constant 5.000000e-01 : f32
    %248 = vector.broadcast %cst_92 : f32 to vector<8x128xf32>
    %249 = arith.mulf %248, %247 : vector<8x128xf32>
    %250 = arith.mulf %239, %180 : vector<8x128xf32>
    %251 = arith.mulf %231, %241 : vector<8x128xf32>
    %252 = arith.addf %250, %251 : vector<8x128xf32>
    %253 = math.tanh %252 : vector<8x128xf32>
    %254 = arith.mulf %249, %253 : vector<8x128xf32>
    %255 = vector.extract_strided_slice %223 {offsets = [0, 0], sizes = [8, 128], strides = [1, 1]} : vector<8x512xf32> to vector<8x128xf32>
    %cst_93 = arith.constant 5.000000e-01 : f32
    %256 = vector.broadcast %cst_93 : f32 to vector<8x128xf32>
    %257 = arith.mulf %256, %255 : vector<8x128xf32>
    %258 = math.tanh %257 : vector<8x128xf32>
    %cst_94 = arith.constant 1.000000e+00 : f32
    %259 = vector.broadcast %cst_94 : f32 to vector<8x128xf32>
    %260 = arith.addf %258, %259 : vector<8x128xf32>
    %cst_95 = arith.constant 5.000000e-01 : f32
    %261 = vector.broadcast %cst_95 : f32 to vector<8x128xf32>
    %262 = arith.mulf %261, %260 : vector<8x128xf32>
    %263 = vector.extract_strided_slice %223 {offsets = [0, 128], sizes = [8, 128], strides = [1, 1]} : vector<8x512xf32> to vector<8x128xf32>
    %cst_96 = arith.constant 5.000000e-01 : f32
    %264 = vector.broadcast %cst_96 : f32 to vector<8x128xf32>
    %265 = arith.mulf %264, %263 : vector<8x128xf32>
    %266 = math.tanh %265 : vector<8x128xf32>
    %cst_97 = arith.constant 1.000000e+00 : f32
    %267 = vector.broadcast %cst_97 : f32 to vector<8x128xf32>
    %268 = arith.addf %266, %267 : vector<8x128xf32>
    %cst_98 = arith.constant 5.000000e-01 : f32
    %269 = vector.broadcast %cst_98 : f32 to vector<8x128xf32>
    %270 = arith.mulf %269, %268 : vector<8x128xf32>
    %271 = vector.extract_strided_slice %223 {offsets = [0, 256], sizes = [8, 128], strides = [1, 1]} : vector<8x512xf32> to vector<8x128xf32>
    %272 = math.tanh %271 : vector<8x128xf32>
    %273 = vector.extract_strided_slice %223 {offsets = [0, 384], sizes = [8, 128], strides = [1, 1]} : vector<8x512xf32> to vector<8x128xf32>
    %cst_99 = arith.constant 5.000000e-01 : f32
    %274 = vector.broadcast %cst_99 : f32 to vector<8x128xf32>
    %275 = arith.mulf %274, %273 : vector<8x128xf32>
    %276 = math.tanh %275 : vector<8x128xf32>
    %cst_100 = arith.constant 1.000000e+00 : f32
    %277 = vector.broadcast %cst_100 : f32 to vector<8x128xf32>
    %278 = arith.addf %276, %277 : vector<8x128xf32>
    %cst_101 = arith.constant 5.000000e-01 : f32
    %279 = vector.broadcast %cst_101 : f32 to vector<8x128xf32>
    %280 = arith.mulf %279, %278 : vector<8x128xf32>
    %281 = arith.mulf %270, %211 : vector<8x128xf32>
    %282 = arith.mulf %262, %272 : vector<8x128xf32>
    %283 = arith.addf %281, %282 : vector<8x128xf32>
    %284 = math.tanh %283 : vector<8x128xf32>
    %285 = arith.mulf %280, %284 : vector<8x128xf32>
    %286 = vector.extract_strided_slice %28 {offsets = [32, 0], sizes = [8, 512], strides = [1, 1]} : vector<64x512xf32> to vector<8x512xf32>
    %287 = arith.truncf %254 : vector<8x128xf32> to vector<8x128xbf16>
    %cst_102 = arith.constant dense<0.000000e+00> : vector<8x512xf32>
    %288 = tpu.matmul %287, %29, %cst_102 {dimension_numbers = #tpu.dot_dimension_numbers<[1], [0], [0], [1], [0, 0, 1, 1], [], []>} : vector<8x128xbf16>, vector<128x512xbf16>, vector<8x512xf32> -> vector<8x512xf32>
    %289 = arith.addf %286, %288 : vector<8x512xf32>
    %290 = arith.truncf %254 : vector<8x128xf32> to vector<8x128xbf16>
    %cst_103 = arith.constant dense<0.000000e+00> : vector<8x512xf32>
    %291 = tpu.matmul %290, %30, %cst_103 {dimension_numbers = #tpu.dot_dimension_numbers<[1], [0], [0], [1], [0, 0, 1, 1], [], []>} : vector<8x128xbf16>, vector<128x512xbf16>, vector<8x512xf32> -> vector<8x512xf32>
    %292 = arith.truncf %285 : vector<8x128xf32> to vector<8x128xbf16>
    %cst_104 = arith.constant dense<0.000000e+00> : vector<8x512xf32>
    %293 = tpu.matmul %292, %31, %cst_104 {dimension_numbers = #tpu.dot_dimension_numbers<[1], [0], [0], [1], [0, 0, 1, 1], [], []>} : vector<8x128xbf16>, vector<128x512xbf16>, vector<8x512xf32> -> vector<8x512xf32>
    %294 = arith.addf %291, %293 : vector<8x512xf32>
    %295 = arith.addf %294, %34 : vector<8x512xf32>
    %296 = vector.extract_strided_slice %289 {offsets = [0, 0], sizes = [8, 128], strides = [1, 1]} : vector<8x512xf32> to vector<8x128xf32>
    %cst_105 = arith.constant 5.000000e-01 : f32
    %297 = vector.broadcast %cst_105 : f32 to vector<8x128xf32>
    %298 = arith.mulf %297, %296 : vector<8x128xf32>
    %299 = math.tanh %298 : vector<8x128xf32>
    %cst_106 = arith.constant 1.000000e+00 : f32
    %300 = vector.broadcast %cst_106 : f32 to vector<8x128xf32>
    %301 = arith.addf %299, %300 : vector<8x128xf32>
    %cst_107 = arith.constant 5.000000e-01 : f32
    %302 = vector.broadcast %cst_107 : f32 to vector<8x128xf32>
    %303 = arith.mulf %302, %301 : vector<8x128xf32>
    %304 = vector.extract_strided_slice %289 {offsets = [0, 128], sizes = [8, 128], strides = [1, 1]} : vector<8x512xf32> to vector<8x128xf32>
    %cst_108 = arith.constant 5.000000e-01 : f32
    %305 = vector.broadcast %cst_108 : f32 to vector<8x128xf32>
    %306 = arith.mulf %305, %304 : vector<8x128xf32>
    %307 = math.tanh %306 : vector<8x128xf32>
    %cst_109 = arith.constant 1.000000e+00 : f32
    %308 = vector.broadcast %cst_109 : f32 to vector<8x128xf32>
    %309 = arith.addf %307, %308 : vector<8x128xf32>
    %cst_110 = arith.constant 5.000000e-01 : f32
    %310 = vector.broadcast %cst_110 : f32 to vector<8x128xf32>
    %311 = arith.mulf %310, %309 : vector<8x128xf32>
    %312 = vector.extract_strided_slice %289 {offsets = [0, 256], sizes = [8, 128], strides = [1, 1]} : vector<8x512xf32> to vector<8x128xf32>
    %313 = math.tanh %312 : vector<8x128xf32>
    %314 = vector.extract_strided_slice %289 {offsets = [0, 384], sizes = [8, 128], strides = [1, 1]} : vector<8x512xf32> to vector<8x128xf32>
    %cst_111 = arith.constant 5.000000e-01 : f32
    %315 = vector.broadcast %cst_111 : f32 to vector<8x128xf32>
    %316 = arith.mulf %315, %314 : vector<8x128xf32>
    %317 = math.tanh %316 : vector<8x128xf32>
    %cst_112 = arith.constant 1.000000e+00 : f32
    %318 = vector.broadcast %cst_112 : f32 to vector<8x128xf32>
    %319 = arith.addf %317, %318 : vector<8x128xf32>
    %cst_113 = arith.constant 5.000000e-01 : f32
    %320 = vector.broadcast %cst_113 : f32 to vector<8x128xf32>
    %321 = arith.mulf %320, %319 : vector<8x128xf32>
    %322 = arith.mulf %311, %252 : vector<8x128xf32>
    %323 = arith.mulf %303, %313 : vector<8x128xf32>
    %324 = arith.addf %322, %323 : vector<8x128xf32>
    %325 = math.tanh %324 : vector<8x128xf32>
    %326 = arith.mulf %321, %325 : vector<8x128xf32>
    %327 = vector.extract_strided_slice %295 {offsets = [0, 0], sizes = [8, 128], strides = [1, 1]} : vector<8x512xf32> to vector<8x128xf32>
    %cst_114 = arith.constant 5.000000e-01 : f32
    %328 = vector.broadcast %cst_114 : f32 to vector<8x128xf32>
    %329 = arith.mulf %328, %327 : vector<8x128xf32>
    %330 = math.tanh %329 : vector<8x128xf32>
    %cst_115 = arith.constant 1.000000e+00 : f32
    %331 = vector.broadcast %cst_115 : f32 to vector<8x128xf32>
    %332 = arith.addf %330, %331 : vector<8x128xf32>
    %cst_116 = arith.constant 5.000000e-01 : f32
    %333 = vector.broadcast %cst_116 : f32 to vector<8x128xf32>
    %334 = arith.mulf %333, %332 : vector<8x128xf32>
    %335 = vector.extract_strided_slice %295 {offsets = [0, 128], sizes = [8, 128], strides = [1, 1]} : vector<8x512xf32> to vector<8x128xf32>
    %cst_117 = arith.constant 5.000000e-01 : f32
    %336 = vector.broadcast %cst_117 : f32 to vector<8x128xf32>
    %337 = arith.mulf %336, %335 : vector<8x128xf32>
    %338 = math.tanh %337 : vector<8x128xf32>
    %cst_118 = arith.constant 1.000000e+00 : f32
    %339 = vector.broadcast %cst_118 : f32 to vector<8x128xf32>
    %340 = arith.addf %338, %339 : vector<8x128xf32>
    %cst_119 = arith.constant 5.000000e-01 : f32
    %341 = vector.broadcast %cst_119 : f32 to vector<8x128xf32>
    %342 = arith.mulf %341, %340 : vector<8x128xf32>
    %343 = vector.extract_strided_slice %295 {offsets = [0, 256], sizes = [8, 128], strides = [1, 1]} : vector<8x512xf32> to vector<8x128xf32>
    %344 = math.tanh %343 : vector<8x128xf32>
    %345 = vector.extract_strided_slice %295 {offsets = [0, 384], sizes = [8, 128], strides = [1, 1]} : vector<8x512xf32> to vector<8x128xf32>
    %cst_120 = arith.constant 5.000000e-01 : f32
    %346 = vector.broadcast %cst_120 : f32 to vector<8x128xf32>
    %347 = arith.mulf %346, %345 : vector<8x128xf32>
    %348 = math.tanh %347 : vector<8x128xf32>
    %cst_121 = arith.constant 1.000000e+00 : f32
    %349 = vector.broadcast %cst_121 : f32 to vector<8x128xf32>
    %350 = arith.addf %348, %349 : vector<8x128xf32>
    %cst_122 = arith.constant 5.000000e-01 : f32
    %351 = vector.broadcast %cst_122 : f32 to vector<8x128xf32>
    %352 = arith.mulf %351, %350 : vector<8x128xf32>
    %353 = arith.mulf %342, %283 : vector<8x128xf32>
    %354 = arith.mulf %334, %344 : vector<8x128xf32>
    %355 = arith.addf %353, %354 : vector<8x128xf32>
    %356 = math.tanh %355 : vector<8x128xf32>
    %357 = arith.mulf %352, %356 : vector<8x128xf32>
    %358 = vector.extract_strided_slice %28 {offsets = [40, 0], sizes = [8, 512], strides = [1, 1]} : vector<64x512xf32> to vector<8x512xf32>
    %359 = arith.truncf %326 : vector<8x128xf32> to vector<8x128xbf16>
    %cst_123 = arith.constant dense<0.000000e+00> : vector<8x512xf32>
    %360 = tpu.matmul %359, %29, %cst_123 {dimension_numbers = #tpu.dot_dimension_numbers<[1], [0], [0], [1], [0, 0, 1, 1], [], []>} : vector<8x128xbf16>, vector<128x512xbf16>, vector<8x512xf32> -> vector<8x512xf32>
    %361 = arith.addf %358, %360 : vector<8x512xf32>
    %362 = arith.truncf %326 : vector<8x128xf32> to vector<8x128xbf16>
    %cst_124 = arith.constant dense<0.000000e+00> : vector<8x512xf32>
    %363 = tpu.matmul %362, %30, %cst_124 {dimension_numbers = #tpu.dot_dimension_numbers<[1], [0], [0], [1], [0, 0, 1, 1], [], []>} : vector<8x128xbf16>, vector<128x512xbf16>, vector<8x512xf32> -> vector<8x512xf32>
    %364 = arith.truncf %357 : vector<8x128xf32> to vector<8x128xbf16>
    %cst_125 = arith.constant dense<0.000000e+00> : vector<8x512xf32>
    %365 = tpu.matmul %364, %31, %cst_125 {dimension_numbers = #tpu.dot_dimension_numbers<[1], [0], [0], [1], [0, 0, 1, 1], [], []>} : vector<8x128xbf16>, vector<128x512xbf16>, vector<8x512xf32> -> vector<8x512xf32>
    %366 = arith.addf %363, %365 : vector<8x512xf32>
    %367 = arith.addf %366, %34 : vector<8x512xf32>
    %368 = vector.extract_strided_slice %361 {offsets = [0, 0], sizes = [8, 128], strides = [1, 1]} : vector<8x512xf32> to vector<8x128xf32>
    %cst_126 = arith.constant 5.000000e-01 : f32
    %369 = vector.broadcast %cst_126 : f32 to vector<8x128xf32>
    %370 = arith.mulf %369, %368 : vector<8x128xf32>
    %371 = math.tanh %370 : vector<8x128xf32>
    %cst_127 = arith.constant 1.000000e+00 : f32
    %372 = vector.broadcast %cst_127 : f32 to vector<8x128xf32>
    %373 = arith.addf %371, %372 : vector<8x128xf32>
    %cst_128 = arith.constant 5.000000e-01 : f32
    %374 = vector.broadcast %cst_128 : f32 to vector<8x128xf32>
    %375 = arith.mulf %374, %373 : vector<8x128xf32>
    %376 = vector.extract_strided_slice %361 {offsets = [0, 128], sizes = [8, 128], strides = [1, 1]} : vector<8x512xf32> to vector<8x128xf32>
    %cst_129 = arith.constant 5.000000e-01 : f32
    %377 = vector.broadcast %cst_129 : f32 to vector<8x128xf32>
    %378 = arith.mulf %377, %376 : vector<8x128xf32>
    %379 = math.tanh %378 : vector<8x128xf32>
    %cst_130 = arith.constant 1.000000e+00 : f32
    %380 = vector.broadcast %cst_130 : f32 to vector<8x128xf32>
    %381 = arith.addf %379, %380 : vector<8x128xf32>
    %cst_131 = arith.constant 5.000000e-01 : f32
    %382 = vector.broadcast %cst_131 : f32 to vector<8x128xf32>
    %383 = arith.mulf %382, %381 : vector<8x128xf32>
    %384 = vector.extract_strided_slice %361 {offsets = [0, 256], sizes = [8, 128], strides = [1, 1]} : vector<8x512xf32> to vector<8x128xf32>
    %385 = math.tanh %384 : vector<8x128xf32>
    %386 = vector.extract_strided_slice %361 {offsets = [0, 384], sizes = [8, 128], strides = [1, 1]} : vector<8x512xf32> to vector<8x128xf32>
    %cst_132 = arith.constant 5.000000e-01 : f32
    %387 = vector.broadcast %cst_132 : f32 to vector<8x128xf32>
    %388 = arith.mulf %387, %386 : vector<8x128xf32>
    %389 = math.tanh %388 : vector<8x128xf32>
    %cst_133 = arith.constant 1.000000e+00 : f32
    %390 = vector.broadcast %cst_133 : f32 to vector<8x128xf32>
    %391 = arith.addf %389, %390 : vector<8x128xf32>
    %cst_134 = arith.constant 5.000000e-01 : f32
    %392 = vector.broadcast %cst_134 : f32 to vector<8x128xf32>
    %393 = arith.mulf %392, %391 : vector<8x128xf32>
    %394 = arith.mulf %383, %324 : vector<8x128xf32>
    %395 = arith.mulf %375, %385 : vector<8x128xf32>
    %396 = arith.addf %394, %395 : vector<8x128xf32>
    %397 = math.tanh %396 : vector<8x128xf32>
    %398 = arith.mulf %393, %397 : vector<8x128xf32>
    %399 = vector.extract_strided_slice %367 {offsets = [0, 0], sizes = [8, 128], strides = [1, 1]} : vector<8x512xf32> to vector<8x128xf32>
    %cst_135 = arith.constant 5.000000e-01 : f32
    %400 = vector.broadcast %cst_135 : f32 to vector<8x128xf32>
    %401 = arith.mulf %400, %399 : vector<8x128xf32>
    %402 = math.tanh %401 : vector<8x128xf32>
    %cst_136 = arith.constant 1.000000e+00 : f32
    %403 = vector.broadcast %cst_136 : f32 to vector<8x128xf32>
    %404 = arith.addf %402, %403 : vector<8x128xf32>
    %cst_137 = arith.constant 5.000000e-01 : f32
    %405 = vector.broadcast %cst_137 : f32 to vector<8x128xf32>
    %406 = arith.mulf %405, %404 : vector<8x128xf32>
    %407 = vector.extract_strided_slice %367 {offsets = [0, 128], sizes = [8, 128], strides = [1, 1]} : vector<8x512xf32> to vector<8x128xf32>
    %cst_138 = arith.constant 5.000000e-01 : f32
    %408 = vector.broadcast %cst_138 : f32 to vector<8x128xf32>
    %409 = arith.mulf %408, %407 : vector<8x128xf32>
    %410 = math.tanh %409 : vector<8x128xf32>
    %cst_139 = arith.constant 1.000000e+00 : f32
    %411 = vector.broadcast %cst_139 : f32 to vector<8x128xf32>
    %412 = arith.addf %410, %411 : vector<8x128xf32>
    %cst_140 = arith.constant 5.000000e-01 : f32
    %413 = vector.broadcast %cst_140 : f32 to vector<8x128xf32>
    %414 = arith.mulf %413, %412 : vector<8x128xf32>
    %415 = vector.extract_strided_slice %367 {offsets = [0, 256], sizes = [8, 128], strides = [1, 1]} : vector<8x512xf32> to vector<8x128xf32>
    %416 = math.tanh %415 : vector<8x128xf32>
    %417 = vector.extract_strided_slice %367 {offsets = [0, 384], sizes = [8, 128], strides = [1, 1]} : vector<8x512xf32> to vector<8x128xf32>
    %cst_141 = arith.constant 5.000000e-01 : f32
    %418 = vector.broadcast %cst_141 : f32 to vector<8x128xf32>
    %419 = arith.mulf %418, %417 : vector<8x128xf32>
    %420 = math.tanh %419 : vector<8x128xf32>
    %cst_142 = arith.constant 1.000000e+00 : f32
    %421 = vector.broadcast %cst_142 : f32 to vector<8x128xf32>
    %422 = arith.addf %420, %421 : vector<8x128xf32>
    %cst_143 = arith.constant 5.000000e-01 : f32
    %423 = vector.broadcast %cst_143 : f32 to vector<8x128xf32>
    %424 = arith.mulf %423, %422 : vector<8x128xf32>
    %425 = arith.mulf %414, %355 : vector<8x128xf32>
    %426 = arith.mulf %406, %416 : vector<8x128xf32>
    %427 = arith.addf %425, %426 : vector<8x128xf32>
    %428 = math.tanh %427 : vector<8x128xf32>
    %429 = arith.mulf %424, %428 : vector<8x128xf32>
    %430 = vector.extract_strided_slice %28 {offsets = [48, 0], sizes = [8, 512], strides = [1, 1]} : vector<64x512xf32> to vector<8x512xf32>
    %431 = arith.truncf %398 : vector<8x128xf32> to vector<8x128xbf16>
    %cst_144 = arith.constant dense<0.000000e+00> : vector<8x512xf32>
    %432 = tpu.matmul %431, %29, %cst_144 {dimension_numbers = #tpu.dot_dimension_numbers<[1], [0], [0], [1], [0, 0, 1, 1], [], []>} : vector<8x128xbf16>, vector<128x512xbf16>, vector<8x512xf32> -> vector<8x512xf32>
    %433 = arith.addf %430, %432 : vector<8x512xf32>
    %434 = arith.truncf %398 : vector<8x128xf32> to vector<8x128xbf16>
    %cst_145 = arith.constant dense<0.000000e+00> : vector<8x512xf32>
    %435 = tpu.matmul %434, %30, %cst_145 {dimension_numbers = #tpu.dot_dimension_numbers<[1], [0], [0], [1], [0, 0, 1, 1], [], []>} : vector<8x128xbf16>, vector<128x512xbf16>, vector<8x512xf32> -> vector<8x512xf32>
    %436 = arith.truncf %429 : vector<8x128xf32> to vector<8x128xbf16>
    %cst_146 = arith.constant dense<0.000000e+00> : vector<8x512xf32>
    %437 = tpu.matmul %436, %31, %cst_146 {dimension_numbers = #tpu.dot_dimension_numbers<[1], [0], [0], [1], [0, 0, 1, 1], [], []>} : vector<8x128xbf16>, vector<128x512xbf16>, vector<8x512xf32> -> vector<8x512xf32>
    %438 = arith.addf %435, %437 : vector<8x512xf32>
    %439 = arith.addf %438, %34 : vector<8x512xf32>
    %440 = vector.extract_strided_slice %433 {offsets = [0, 0], sizes = [8, 128], strides = [1, 1]} : vector<8x512xf32> to vector<8x128xf32>
    %cst_147 = arith.constant 5.000000e-01 : f32
    %441 = vector.broadcast %cst_147 : f32 to vector<8x128xf32>
    %442 = arith.mulf %441, %440 : vector<8x128xf32>
    %443 = math.tanh %442 : vector<8x128xf32>
    %cst_148 = arith.constant 1.000000e+00 : f32
    %444 = vector.broadcast %cst_148 : f32 to vector<8x128xf32>
    %445 = arith.addf %443, %444 : vector<8x128xf32>
    %cst_149 = arith.constant 5.000000e-01 : f32
    %446 = vector.broadcast %cst_149 : f32 to vector<8x128xf32>
    %447 = arith.mulf %446, %445 : vector<8x128xf32>
    %448 = vector.extract_strided_slice %433 {offsets = [0, 128], sizes = [8, 128], strides = [1, 1]} : vector<8x512xf32> to vector<8x128xf32>
    %cst_150 = arith.constant 5.000000e-01 : f32
    %449 = vector.broadcast %cst_150 : f32 to vector<8x128xf32>
    %450 = arith.mulf %449, %448 : vector<8x128xf32>
    %451 = math.tanh %450 : vector<8x128xf32>
    %cst_151 = arith.constant 1.000000e+00 : f32
    %452 = vector.broadcast %cst_151 : f32 to vector<8x128xf32>
    %453 = arith.addf %451, %452 : vector<8x128xf32>
    %cst_152 = arith.constant 5.000000e-01 : f32
    %454 = vector.broadcast %cst_152 : f32 to vector<8x128xf32>
    %455 = arith.mulf %454, %453 : vector<8x128xf32>
    %456 = vector.extract_strided_slice %433 {offsets = [0, 256], sizes = [8, 128], strides = [1, 1]} : vector<8x512xf32> to vector<8x128xf32>
    %457 = math.tanh %456 : vector<8x128xf32>
    %458 = vector.extract_strided_slice %433 {offsets = [0, 384], sizes = [8, 128], strides = [1, 1]} : vector<8x512xf32> to vector<8x128xf32>
    %cst_153 = arith.constant 5.000000e-01 : f32
    %459 = vector.broadcast %cst_153 : f32 to vector<8x128xf32>
    %460 = arith.mulf %459, %458 : vector<8x128xf32>
    %461 = math.tanh %460 : vector<8x128xf32>
    %cst_154 = arith.constant 1.000000e+00 : f32
    %462 = vector.broadcast %cst_154 : f32 to vector<8x128xf32>
    %463 = arith.addf %461, %462 : vector<8x128xf32>
    %cst_155 = arith.constant 5.000000e-01 : f32
    %464 = vector.broadcast %cst_155 : f32 to vector<8x128xf32>
    %465 = arith.mulf %464, %463 : vector<8x128xf32>
    %466 = arith.mulf %455, %396 : vector<8x128xf32>
    %467 = arith.mulf %447, %457 : vector<8x128xf32>
    %468 = arith.addf %466, %467 : vector<8x128xf32>
    %469 = math.tanh %468 : vector<8x128xf32>
    %470 = arith.mulf %465, %469 : vector<8x128xf32>
    %471 = vector.extract_strided_slice %439 {offsets = [0, 0], sizes = [8, 128], strides = [1, 1]} : vector<8x512xf32> to vector<8x128xf32>
    %cst_156 = arith.constant 5.000000e-01 : f32
    %472 = vector.broadcast %cst_156 : f32 to vector<8x128xf32>
    %473 = arith.mulf %472, %471 : vector<8x128xf32>
    %474 = math.tanh %473 : vector<8x128xf32>
    %cst_157 = arith.constant 1.000000e+00 : f32
    %475 = vector.broadcast %cst_157 : f32 to vector<8x128xf32>
    %476 = arith.addf %474, %475 : vector<8x128xf32>
    %cst_158 = arith.constant 5.000000e-01 : f32
    %477 = vector.broadcast %cst_158 : f32 to vector<8x128xf32>
    %478 = arith.mulf %477, %476 : vector<8x128xf32>
    %479 = vector.extract_strided_slice %439 {offsets = [0, 128], sizes = [8, 128], strides = [1, 1]} : vector<8x512xf32> to vector<8x128xf32>
    %cst_159 = arith.constant 5.000000e-01 : f32
    %480 = vector.broadcast %cst_159 : f32 to vector<8x128xf32>
    %481 = arith.mulf %480, %479 : vector<8x128xf32>
    %482 = math.tanh %481 : vector<8x128xf32>
    %cst_160 = arith.constant 1.000000e+00 : f32
    %483 = vector.broadcast %cst_160 : f32 to vector<8x128xf32>
    %484 = arith.addf %482, %483 : vector<8x128xf32>
    %cst_161 = arith.constant 5.000000e-01 : f32
    %485 = vector.broadcast %cst_161 : f32 to vector<8x128xf32>
    %486 = arith.mulf %485, %484 : vector<8x128xf32>
    %487 = vector.extract_strided_slice %439 {offsets = [0, 256], sizes = [8, 128], strides = [1, 1]} : vector<8x512xf32> to vector<8x128xf32>
    %488 = math.tanh %487 : vector<8x128xf32>
    %489 = vector.extract_strided_slice %439 {offsets = [0, 384], sizes = [8, 128], strides = [1, 1]} : vector<8x512xf32> to vector<8x128xf32>
    %cst_162 = arith.constant 5.000000e-01 : f32
    %490 = vector.broadcast %cst_162 : f32 to vector<8x128xf32>
    %491 = arith.mulf %490, %489 : vector<8x128xf32>
    %492 = math.tanh %491 : vector<8x128xf32>
    %cst_163 = arith.constant 1.000000e+00 : f32
    %493 = vector.broadcast %cst_163 : f32 to vector<8x128xf32>
    %494 = arith.addf %492, %493 : vector<8x128xf32>
    %cst_164 = arith.constant 5.000000e-01 : f32
    %495 = vector.broadcast %cst_164 : f32 to vector<8x128xf32>
    %496 = arith.mulf %495, %494 : vector<8x128xf32>
    %497 = arith.mulf %486, %427 : vector<8x128xf32>
    %498 = arith.mulf %478, %488 : vector<8x128xf32>
    %499 = arith.addf %497, %498 : vector<8x128xf32>
    %500 = math.tanh %499 : vector<8x128xf32>
    %501 = arith.mulf %496, %500 : vector<8x128xf32>
    %502 = vector.extract_strided_slice %28 {offsets = [56, 0], sizes = [8, 512], strides = [1, 1]} : vector<64x512xf32> to vector<8x512xf32>
    %503 = arith.truncf %470 : vector<8x128xf32> to vector<8x128xbf16>
    %cst_165 = arith.constant dense<0.000000e+00> : vector<8x512xf32>
    %504 = tpu.matmul %503, %29, %cst_165 {dimension_numbers = #tpu.dot_dimension_numbers<[1], [0], [0], [1], [0, 0, 1, 1], [], []>} : vector<8x128xbf16>, vector<128x512xbf16>, vector<8x512xf32> -> vector<8x512xf32>
    %505 = arith.addf %502, %504 : vector<8x512xf32>
    %506 = arith.truncf %470 : vector<8x128xf32> to vector<8x128xbf16>
    %cst_166 = arith.constant dense<0.000000e+00> : vector<8x512xf32>
    %507 = tpu.matmul %506, %30, %cst_166 {dimension_numbers = #tpu.dot_dimension_numbers<[1], [0], [0], [1], [0, 0, 1, 1], [], []>} : vector<8x128xbf16>, vector<128x512xbf16>, vector<8x512xf32> -> vector<8x512xf32>
    %508 = arith.truncf %501 : vector<8x128xf32> to vector<8x128xbf16>
    %cst_167 = arith.constant dense<0.000000e+00> : vector<8x512xf32>
    %509 = tpu.matmul %508, %31, %cst_167 {dimension_numbers = #tpu.dot_dimension_numbers<[1], [0], [0], [1], [0, 0, 1, 1], [], []>} : vector<8x128xbf16>, vector<128x512xbf16>, vector<8x512xf32> -> vector<8x512xf32>
    %510 = arith.addf %507, %509 : vector<8x512xf32>
    %511 = arith.addf %510, %34 : vector<8x512xf32>
    %512 = vector.extract_strided_slice %505 {offsets = [0, 0], sizes = [8, 128], strides = [1, 1]} : vector<8x512xf32> to vector<8x128xf32>
    %cst_168 = arith.constant 5.000000e-01 : f32
    %513 = vector.broadcast %cst_168 : f32 to vector<8x128xf32>
    %514 = arith.mulf %513, %512 : vector<8x128xf32>
    %515 = math.tanh %514 : vector<8x128xf32>
    %cst_169 = arith.constant 1.000000e+00 : f32
    %516 = vector.broadcast %cst_169 : f32 to vector<8x128xf32>
    %517 = arith.addf %515, %516 : vector<8x128xf32>
    %cst_170 = arith.constant 5.000000e-01 : f32
    %518 = vector.broadcast %cst_170 : f32 to vector<8x128xf32>
    %519 = arith.mulf %518, %517 : vector<8x128xf32>
    %520 = vector.extract_strided_slice %505 {offsets = [0, 128], sizes = [8, 128], strides = [1, 1]} : vector<8x512xf32> to vector<8x128xf32>
    %cst_171 = arith.constant 5.000000e-01 : f32
    %521 = vector.broadcast %cst_171 : f32 to vector<8x128xf32>
    %522 = arith.mulf %521, %520 : vector<8x128xf32>
    %523 = math.tanh %522 : vector<8x128xf32>
    %cst_172 = arith.constant 1.000000e+00 : f32
    %524 = vector.broadcast %cst_172 : f32 to vector<8x128xf32>
    %525 = arith.addf %523, %524 : vector<8x128xf32>
    %cst_173 = arith.constant 5.000000e-01 : f32
    %526 = vector.broadcast %cst_173 : f32 to vector<8x128xf32>
    %527 = arith.mulf %526, %525 : vector<8x128xf32>
    %528 = vector.extract_strided_slice %505 {offsets = [0, 256], sizes = [8, 128], strides = [1, 1]} : vector<8x512xf32> to vector<8x128xf32>
    %529 = math.tanh %528 : vector<8x128xf32>
    %530 = vector.extract_strided_slice %505 {offsets = [0, 384], sizes = [8, 128], strides = [1, 1]} : vector<8x512xf32> to vector<8x128xf32>
    %cst_174 = arith.constant 5.000000e-01 : f32
    %531 = vector.broadcast %cst_174 : f32 to vector<8x128xf32>
    %532 = arith.mulf %531, %530 : vector<8x128xf32>
    %533 = math.tanh %532 : vector<8x128xf32>
    %cst_175 = arith.constant 1.000000e+00 : f32
    %534 = vector.broadcast %cst_175 : f32 to vector<8x128xf32>
    %535 = arith.addf %533, %534 : vector<8x128xf32>
    %cst_176 = arith.constant 5.000000e-01 : f32
    %536 = vector.broadcast %cst_176 : f32 to vector<8x128xf32>
    %537 = arith.mulf %536, %535 : vector<8x128xf32>
    %538 = arith.mulf %527, %468 : vector<8x128xf32>
    %539 = arith.mulf %519, %529 : vector<8x128xf32>
    %540 = arith.addf %538, %539 : vector<8x128xf32>
    %541 = math.tanh %540 : vector<8x128xf32>
    %542 = arith.mulf %537, %541 : vector<8x128xf32>
    %543 = vector.extract_strided_slice %511 {offsets = [0, 0], sizes = [8, 128], strides = [1, 1]} : vector<8x512xf32> to vector<8x128xf32>
    %cst_177 = arith.constant 5.000000e-01 : f32
    %544 = vector.broadcast %cst_177 : f32 to vector<8x128xf32>
    %545 = arith.mulf %544, %543 : vector<8x128xf32>
    %546 = math.tanh %545 : vector<8x128xf32>
    %cst_178 = arith.constant 1.000000e+00 : f32
    %547 = vector.broadcast %cst_178 : f32 to vector<8x128xf32>
    %548 = arith.addf %546, %547 : vector<8x128xf32>
    %cst_179 = arith.constant 5.000000e-01 : f32
    %549 = vector.broadcast %cst_179 : f32 to vector<8x128xf32>
    %550 = arith.mulf %549, %548 : vector<8x128xf32>
    %551 = vector.extract_strided_slice %511 {offsets = [0, 128], sizes = [8, 128], strides = [1, 1]} : vector<8x512xf32> to vector<8x128xf32>
    %cst_180 = arith.constant 5.000000e-01 : f32
    %552 = vector.broadcast %cst_180 : f32 to vector<8x128xf32>
    %553 = arith.mulf %552, %551 : vector<8x128xf32>
    %554 = math.tanh %553 : vector<8x128xf32>
    %cst_181 = arith.constant 1.000000e+00 : f32
    %555 = vector.broadcast %cst_181 : f32 to vector<8x128xf32>
    %556 = arith.addf %554, %555 : vector<8x128xf32>
    %cst_182 = arith.constant 5.000000e-01 : f32
    %557 = vector.broadcast %cst_182 : f32 to vector<8x128xf32>
    %558 = arith.mulf %557, %556 : vector<8x128xf32>
    %559 = vector.extract_strided_slice %511 {offsets = [0, 256], sizes = [8, 128], strides = [1, 1]} : vector<8x512xf32> to vector<8x128xf32>
    %560 = math.tanh %559 : vector<8x128xf32>
    %561 = vector.extract_strided_slice %511 {offsets = [0, 384], sizes = [8, 128], strides = [1, 1]} : vector<8x512xf32> to vector<8x128xf32>
    %cst_183 = arith.constant 5.000000e-01 : f32
    %562 = vector.broadcast %cst_183 : f32 to vector<8x128xf32>
    %563 = arith.mulf %562, %561 : vector<8x128xf32>
    %564 = math.tanh %563 : vector<8x128xf32>
    %cst_184 = arith.constant 1.000000e+00 : f32
    %565 = vector.broadcast %cst_184 : f32 to vector<8x128xf32>
    %566 = arith.addf %564, %565 : vector<8x128xf32>
    %cst_185 = arith.constant 5.000000e-01 : f32
    %567 = vector.broadcast %cst_185 : f32 to vector<8x128xf32>
    %568 = arith.mulf %567, %566 : vector<8x128xf32>
    %569 = arith.mulf %558, %499 : vector<8x128xf32>
    %570 = arith.mulf %550, %560 : vector<8x128xf32>
    %571 = arith.addf %569, %570 : vector<8x128xf32>
    %572 = math.tanh %571 : vector<8x128xf32>
    %573 = arith.mulf %568, %572 : vector<8x128xf32>
    %574 = arith.truncf %542 : vector<8x128xf32> to vector<8x128xbf16>
    %cst_186 = arith.constant dense<0.000000e+00> : vector<8x512xf32>
    %575 = tpu.matmul %574, %30, %cst_186 {dimension_numbers = #tpu.dot_dimension_numbers<[1], [0], [0], [1], [0, 0, 1, 1], [], []>} : vector<8x128xbf16>, vector<128x512xbf16>, vector<8x512xf32> -> vector<8x512xf32>
    %576 = arith.truncf %573 : vector<8x128xf32> to vector<8x128xbf16>
    %cst_187 = arith.constant dense<0.000000e+00> : vector<8x512xf32>
    %577 = tpu.matmul %576, %31, %cst_187 {dimension_numbers = #tpu.dot_dimension_numbers<[1], [0], [0], [1], [0, 0, 1, 1], [], []>} : vector<8x128xbf16>, vector<128x512xbf16>, vector<8x512xf32> -> vector<8x512xf32>
    %578 = arith.addf %575, %577 : vector<8x512xf32>
    %579 = arith.addf %578, %34 : vector<8x512xf32>
    %580 = vector.extract_strided_slice %579 {offsets = [0, 0], sizes = [8, 128], strides = [1, 1]} : vector<8x512xf32> to vector<8x128xf32>
    %cst_188 = arith.constant 5.000000e-01 : f32
    %581 = vector.broadcast %cst_188 : f32 to vector<8x128xf32>
    %582 = arith.mulf %581, %580 : vector<8x128xf32>
    %583 = math.tanh %582 : vector<8x128xf32>
    %cst_189 = arith.constant 1.000000e+00 : f32
    %584 = vector.broadcast %cst_189 : f32 to vector<8x128xf32>
    %585 = arith.addf %583, %584 : vector<8x128xf32>
    %cst_190 = arith.constant 5.000000e-01 : f32
    %586 = vector.broadcast %cst_190 : f32 to vector<8x128xf32>
    %587 = arith.mulf %586, %585 : vector<8x128xf32>
    %588 = vector.extract_strided_slice %579 {offsets = [0, 128], sizes = [8, 128], strides = [1, 1]} : vector<8x512xf32> to vector<8x128xf32>
    %cst_191 = arith.constant 5.000000e-01 : f32
    %589 = vector.broadcast %cst_191 : f32 to vector<8x128xf32>
    %590 = arith.mulf %589, %588 : vector<8x128xf32>
    %591 = math.tanh %590 : vector<8x128xf32>
    %cst_192 = arith.constant 1.000000e+00 : f32
    %592 = vector.broadcast %cst_192 : f32 to vector<8x128xf32>
    %593 = arith.addf %591, %592 : vector<8x128xf32>
    %cst_193 = arith.constant 5.000000e-01 : f32
    %594 = vector.broadcast %cst_193 : f32 to vector<8x128xf32>
    %595 = arith.mulf %594, %593 : vector<8x128xf32>
    %596 = vector.extract_strided_slice %579 {offsets = [0, 256], sizes = [8, 128], strides = [1, 1]} : vector<8x512xf32> to vector<8x128xf32>
    %597 = math.tanh %596 : vector<8x128xf32>
    %598 = vector.extract_strided_slice %579 {offsets = [0, 384], sizes = [8, 128], strides = [1, 1]} : vector<8x512xf32> to vector<8x128xf32>
    %cst_194 = arith.constant 5.000000e-01 : f32
    %599 = vector.broadcast %cst_194 : f32 to vector<8x128xf32>
    %600 = arith.mulf %599, %598 : vector<8x128xf32>
    %601 = math.tanh %600 : vector<8x128xf32>
    %cst_195 = arith.constant 1.000000e+00 : f32
    %602 = vector.broadcast %cst_195 : f32 to vector<8x128xf32>
    %603 = arith.addf %601, %602 : vector<8x128xf32>
    %cst_196 = arith.constant 5.000000e-01 : f32
    %604 = vector.broadcast %cst_196 : f32 to vector<8x128xf32>
    %605 = arith.mulf %604, %603 : vector<8x128xf32>
    %606 = arith.mulf %595, %571 : vector<8x128xf32>
    %607 = arith.mulf %587, %597 : vector<8x128xf32>
    %608 = arith.addf %606, %607 : vector<8x128xf32>
    %609 = math.tanh %608 : vector<8x128xf32>
    %610 = arith.mulf %605, %609 : vector<8x128xf32>
    %611 = math.tanh %542 : vector<8x128xf32>
    %612 = math.tanh %540 : vector<8x128xf32>
    %613 = math.tanh %610 : vector<8x128xf32>
    %614 = math.tanh %608 : vector<8x128xf32>
    %615 = tpu.concatenate %611, %612, %613, %614 in 1 : vector<8x128xf32>, vector<8x128xf32>, vector<8x128xf32>, vector<8x128xf32> -> vector<8x512xf32>
    %c0_197 = arith.constant 0 : index
    %c0_198 = arith.constant 0 : index
    %616 = vector.load %arg12[%c0_197, %c0_198] : memref<512x128xbf16, #tpu.memory_space<vmem>>, vector<512x128xbf16>
    %617 = arith.truncf %615 : vector<8x512xf32> to vector<8x512xbf16>
    %cst_199 = arith.constant dense<0.000000e+00> : vector<8x128xf32>
    %618 = tpu.matmul %617, %616, %cst_199 {dimension_numbers = #tpu.dot_dimension_numbers<[1], [0], [0], [1], [0, 0, 1, 1], [], []>} : vector<8x512xbf16>, vector<512x128xbf16>, vector<8x128xf32> -> vector<8x128xf32>
    %c0_200 = arith.constant 0 : index
    %c0_201 = arith.constant 0 : index
    %619 = vector.load %arg13[%c0_200, %c0_201] : memref<1x128xf32, #tpu.memory_space<vmem>>, vector<1x128xf32>
    %620 = vector.broadcast %619 : vector<1x128xf32> to vector<8x128xf32>
    %621 = arith.addf %618, %620 : vector<8x128xf32>
    %622 = arith.mulf %20, %621 : vector<8x128xf32>
    %623 = math.tanh %622 : vector<8x128xf32>
    %c0_202 = arith.constant 0 : index
    %c0_203 = arith.constant 0 : index
    %624 = vector.load %arg14[%c0_202, %c0_203] : memref<128x128xbf16, #tpu.memory_space<vmem>>, vector<128x128xbf16>
    %625 = arith.truncf %623 : vector<8x128xf32> to vector<8x128xbf16>
    %cst_204 = arith.constant dense<0.000000e+00> : vector<8x128xf32>
    %626 = tpu.matmul %625, %624, %cst_204 {dimension_numbers = #tpu.dot_dimension_numbers<[1], [0], [0], [1], [0, 0, 1, 1], [], []>} : vector<8x128xbf16>, vector<128x128xbf16>, vector<8x128xf32> -> vector<8x128xf32>
    %c0_205 = arith.constant 0 : index
    %c0_206 = arith.constant 0 : index
    %627 = vector.load %arg15[%c0_205, %c0_206] : memref<1x128xf32, #tpu.memory_space<vmem>>, vector<1x128xf32>
    %628 = vector.broadcast %627 : vector<1x128xf32> to vector<8x128xf32>
    %629 = arith.addf %626, %628 : vector<8x128xf32>
    %630 = math.tanh %629 : vector<8x128xf32>
    %c0_207 = arith.constant 0 : index
    %c0_208 = arith.constant 0 : index
    %631 = vector.load %arg16[%c0_207, %c0_208] : memref<128x128xbf16, #tpu.memory_space<vmem>>, vector<128x128xbf16>
    %632 = arith.truncf %630 : vector<8x128xf32> to vector<8x128xbf16>
    %cst_209 = arith.constant dense<0.000000e+00> : vector<8x128xf32>
    %633 = tpu.matmul %632, %631, %cst_209 {dimension_numbers = #tpu.dot_dimension_numbers<[1], [0], [0], [1], [0, 0, 1, 1], [], []>} : vector<8x128xbf16>, vector<128x128xbf16>, vector<8x128xf32> -> vector<8x128xf32>
    %c0_210 = arith.constant 0 : index
    %c0_211 = arith.constant 0 : index
    %634 = vector.load %arg17[%c0_210, %c0_211] : memref<1x128xf32, #tpu.memory_space<vmem>>, vector<1x128xf32>
    %635 = vector.broadcast %634 : vector<1x128xf32> to vector<8x128xf32>
    %636 = arith.addf %633, %635 : vector<8x128xf32>
    %c0_212 = arith.constant 0 : index
    %c0_213 = arith.constant 0 : index
    %637 = vector.load %arg18[%c0_212, %c0_213] : memref<8x128xf32, #tpu.memory_space<vmem>>, vector<8x128xf32>
    tpu.vector_store %arg18[%c0_212, %c0_213], %636 {strides = array<i32>} : memref<8x128xf32, #tpu.memory_space<vmem>>, vector<8x128xf32>,
    return
  }
}

</mosaic_0001>

<bundles_post_ra>
// kernel: vqa_forward.1
= control target key start
LH: loop header
LB: loop body
LE: loop exit
PB: predicated region body
PF: predicated region fallthrough
CT: control target
= control target key end

     0   :  { %s8000_s0 = inlined_call_operand.vmem [shape: f32[8,768], index: 0, kind: input, shape index: {}]   ;;  %s8001_s1 = inlined_call_operand.vmem [shape: f32[64,128], index: 1, kind: input, shape index: {}]   ;;  %s8002_s2 = inlined_call_operand.vmem [shape: bf16[768,128], index: 2, kind: input, shape index: {}]   ;;  %s8003_s3 = inlined_call_operand.vmem [shape: f32[1,128], index: 3, kind: input, shape index: {}]   ;;  %s8004_s4 = inlined_call_operand.hbm [shape: bf16[128,128], index: 4, kind: input, shape index: {}]   ;;  %s8005_s5 = inlined_call_operand.vmem [shape: f32[1,128], index: 5, kind: input, shape index: {}]   ;;  %s8006_s6 = inlined_call_operand.hbm [shape: bf16[128,512], index: 6, kind: input, shape index: {}]   ;;  %s8007_s7 = inlined_call_operand.hbm [shape: bf16[128,512], index: 7, kind: input, shape index: {}]   ;;  %s8008_s8 = inlined_call_operand.vmem [shape: f32[1,512], index: 8, kind: input, shape index: {}]   ;;  %s8009_s9 = inlined_call_operand.hbm [shape: bf16[128,512], index: 9, kind: input, shape index: {}]   ;;  %s8010_s10 = inlined_call_operand.hbm [shape: bf16[128,512], index: 10, kind: input, shape index: {}]   ;;  %s8011_s11 = inlined_call_operand.vmem [shape: f32[1,512], index: 11, kind: input, shape index: {}]   ;;  %s8012_s12 = inlined_call_operand.hbm [shape: bf16[512,128], index: 12, kind: input, shape index: {}]   ;;  %s8013_s13 = inlined_call_operand.vmem [shape: f32[1,128], index: 13, kind: input, shape index: {}]   ;;  %s8014_s14 = inlined_call_operand.hbm [shape: bf16[128,128], index: 14, kind: input, shape index: {}]   ;;  %s8015_s15 = inlined_call_operand.vmem [shape: f32[1,128], index: 15, kind: input, shape index: {}]   ;;  %s8016_s16 = inlined_call_operand.hbm [shape: bf16[128,128], index: 16, kind: input, shape index: {}]   ;;  %s8017_s17 = inlined_call_operand.vmem [shape: f32[1,128], index: 17, kind: input, shape index: {}]   ;;  %s8018_s18 = inlined_call_operand.vmem [shape: f32[8,128], index: 18, kind: output, shape index: {}]  }
   0x1   :  { %8271 = sst [smem:[#allocation110_spill]] %s8000_s0 }
   0x2   :  { %8272 = sst [smem:[#allocation111_spill]] %s8001_s1 }
   0x3   :  { %8273 = sst [smem:[#allocation112_spill]] %s8002_s2 }
   0x4   :  { %23 = vsyncpa [#allocation3], 0 }
   0x5   :  { %24 = vsyncpa [#allocation5], 0 }
   0x6   :  { %25 = vsyncpa [#allocation8], 0 }
   0x7   :  { %26 = vsyncpa [#allocation11], 0 }
   0x8   :  { %27 = vsyncpa [#allocation14], 0  ;;  %s5932_s27 = smov [#allocation4]   ;;  %s5746_s0 = scalar_lea.hbm %s8006_s6, 4096 }
   0x9   :  { %s55_s28 = sshll.u32 %s5932_s27, 4  ;;  %p5747_p0 = scmp.ne.s32.totalorder %s8006_s6, %s5746_s0  ;;  %s56_s28 = int_to_ptr.vmem [resolvable:$true] %s55_s28 }
   0xa   :  { %p5750_p1 = scmp.lt.u32.totalorder %s5746_s0, %s8006_s6 }
   0xc   :  { %p5752_p2 = pnand %p5750_p1, %p5747_p0 }
   0xe   :  { %5755 = shalt.err (!%p5752_p2)
}
   0xf   :  { %s5756_s22 = scalar_lea.vmem %s56_s28, 4096  ;;  %p5761_p4 = scmp.lt.s32.totalorder %s56_s28, %s56_s28 }
  0x10   :  { %p5757_p3 = scmp.ne.s32.totalorder %s56_s28, %s5756_s22  ;;  %p5762_p5 = scmp.lt.s32.totalorder %s5756_s22, %s5756_s22 }
  0x12   :  { %p5763_p6 = por %p5762_p5, %p5761_p4 }
  0x14   :  { %p5764_p7 = pnand %p5763_p6, %p5757_p3 }
  0x16   :  { %5767 = shalt.err (!%p5764_p7)
}
  0x17   :  { %s5933_s2 = smov 256   ;;  %s5934_s23 = smov 16  }
  0x18   :  { %61 = dma.hbm_to_vmem [thread:$0]  %s8006_s6, 4096, %s56_s28, [#allocation5], %s5933_s2, %s5933_s2, %s5934_s23  }
  0x19   :  { %s5935_s26 = smov [#allocation7]   ;;  %s5768_s0 = scalar_lea.hbm %s8009_s9, 4096 }
  0x1a   :  { %s81_s27 = sshll.u32 %s5935_s26, 4  ;;  %p5769_p8 = scmp.ne.s32.totalorder %s8009_s9, %s5768_s0  ;;  %s82_s27 = int_to_ptr.vmem [resolvable:$true] %s81_s27 }
  0x1b   :  { %p5772_p9 = scmp.lt.u32.totalorder %s5768_s0, %s8009_s9 }
  0x1d   :  { %p5774_p10 = pnand %p5772_p9, %p5769_p8 }
  0x1f   :  { %5777 = shalt.err (!%p5774_p10)
}
  0x20   :  { %s5778_s22 = scalar_lea.vmem %s82_s27, 4096  ;;  %p5783_p12 = scmp.lt.s32.totalorder %s82_s27, %s82_s27 }
  0x21   :  { %p5779_p11 = scmp.ne.s32.totalorder %s82_s27, %s5778_s22  ;;  %p5784_p13 = scmp.lt.s32.totalorder %s5778_s22, %s5778_s22 }
  0x23   :  { %p5785_p0 = por %p5784_p13, %p5783_p12 }
  0x25   :  { %p5786_p1 = pnand %p5785_p0, %p5779_p11 }
  0x27   :  { %5789 = shalt.err (!%p5786_p1)
}
  0x28   :  { %87 = dma.hbm_to_vmem [thread:$0]  %s8009_s9, 4096, %s82_s27, [#allocation8], %s5933_s2, %s5933_s2, %s5934_s23  }
  0x29   :  { %s5936_s24 = smov [#allocation10]   ;;  %s5937_s26 = smov [#allocation2]  }
  0x2a   :  { %s107_s25 = sshll.u32 %s5936_s24, 4  ;;  %s41_s29 = sshll.u32 %s5937_s26, 4  ;;  %s108_s25 = int_to_ptr.vmem [resolvable:$true] %s107_s25  ;;  %s6072_s29 = int_to_ptr.vmem [resolvable:$true] %s41_s29 }
  0x2b   :  { %s5790_s19 = scalar_lea.hbm %s8012_s12, 4096 }
  0x2c   :  { %p5791_p2 = scmp.ne.s32.totalorder %s8012_s12, %s5790_s19  ;;  %p5794_p3 = scmp.lt.u32.totalorder %s5790_s19, %s8012_s12 }
  0x2e   :  { %p5796_p4 = pnand %p5794_p3, %p5791_p2 }
  0x30   :  { %5799 = shalt.err (!%p5796_p4)
}
  0x31   :  { %s5800_s9 = scalar_lea.vmem %s108_s25, 4096  ;;  %p5805_p6 = scmp.lt.s32.totalorder %s108_s25, %s108_s25 }
  0x32   :  { %p5801_p5 = scmp.ne.s32.totalorder %s108_s25, %s5800_s9  ;;  %p5806_p7 = scmp.lt.s32.totalorder %s5800_s9, %s5800_s9 }
  0x34   :  { %p5807_p8 = por %p5806_p7, %p5805_p6 }
  0x36   :  { %p5808_p9 = pnand %p5807_p8, %p5801_p5 }
  0x38   :  { %5811 = shalt.err (!%p5808_p9)
}
  0x39   :  { %s5938_s27 = smov 64   ;;  %s5939_s6 = smov 4  }
  0x3a   :  { %113 = dma.hbm_to_vmem [thread:$0]  %s8012_s12, 4096, %s108_s25, [#allocation11], %s5938_s27, %s5938_s27, %s5939_s6  }
  0x3b   :  { %s5812_s0 = scalar_lea.hbm %s8004_s4, 1024 }
  0x3c   :  { %p5813_p10 = scmp.ne.s32.totalorder %s8004_s4, %s5812_s0  ;;  %p5816_p11 = scmp.lt.u32.totalorder %s5812_s0, %s8004_s4 }
  0x3e   :  { %p5818_p12 = pnand %p5816_p11, %p5813_p10 }
  0x40   :  { %5821 = shalt.err (!%p5818_p12)
}
  0x41   :  { %s5822_s22 = scalar_lea.vmem %s6072_s29, 1024  ;;  %p5827_p0 = scmp.lt.s32.totalorder %s6072_s29, %s6072_s29 }
  0x42   :  { %p5823_p13 = scmp.ne.s32.totalorder %s6072_s29, %s5822_s22  ;;  %p5828_p1 = scmp.lt.s32.totalorder %s5822_s22, %s5822_s22 }
  0x44   :  { %p5829_p2 = por %p5828_p1, %p5827_p0 }
  0x46   :  { %p5830_p3 = pnand %p5829_p2, %p5823_p13 }
  0x48   :  { %5833 = shalt.err (!%p5830_p3)
}
  0x49   :  { %47 = dma.hbm_to_vmem [thread:$0]  %s8004_s4, 1024, %s6072_s29, [#allocation3], %s5938_s27, %s5938_s27, %s5939_s6  }
  0x4a   :  { %s5940_s9 = smov [#allocation6]   ;;  %s5941_s24 = smov [#allocation9]  }
  0x4b   :  { %s67_s28 = sshll.u32 %s5940_s9, 4  ;;  %s93_s26 = sshll.u32 %s5941_s24, 4  ;;  %s68_s28 = int_to_ptr.vmem [resolvable:$true] %s67_s28  ;;  %s6109_s26 = int_to_ptr.vmem [resolvable:$true] %s93_s26 }
  0x4c   :  { %s5834_s19 = scalar_lea.hbm %s8007_s7, 4096 }
  0x4d   :  { %p5835_p4 = scmp.ne.s32.totalorder %s8007_s7, %s5834_s19  ;;  %p5838_p5 = scmp.lt.u32.totalorder %s5834_s19, %s8007_s7 }
  0x4f   :  { %p5840_p6 = pnand %p5838_p5, %p5835_p4 }
  0x51   :  { %5843 = shalt.err (!%p5840_p6)
}
  0x52   :  { %s5844_s4 = scalar_lea.vmem %s68_s28, 4096  ;;  %p5849_p8 = scmp.lt.s32.totalorder %s68_s28, %s68_s28 }
  0x53   :  { %p5845_p7 = scmp.ne.s32.totalorder %s68_s28, %s5844_s4  ;;  %p5850_p9 = scmp.lt.s32.totalorder %s5844_s4, %s5844_s4 }
  0x55   :  { %p5851_p10 = por %p5850_p9, %p5849_p8 }
  0x57   :  { %p5852_p11 = pnand %p5851_p10, %p5845_p7 }
  0x59   :  { %5855 = shalt.err (!%p5852_p11)
}
  0x5a   :  { %73 = dma.hbm_to_vmem [thread:$0]  %s8007_s7, 4096, %s68_s28, [#allocation5], %s5933_s2, %s5933_s2, %s5934_s23  }
  0x5b   :  { %s5856_s24 = scalar_lea.hbm %s8010_s10, 4096 }
  0x5c   :  { %p5857_p12 = scmp.ne.s32.totalorder %s8010_s10, %s5856_s24  ;;  %p5860_p13 = scmp.lt.u32.totalorder %s5856_s24, %s8010_s10 }
  0x5e   :  { %p5862_p0 = pnand %p5860_p13, %p5857_p12 }
  0x60   :  { %5865 = shalt.err (!%p5862_p0)
}
  0x61   :  { %s5866_s20 = scalar_lea.vmem %s6109_s26, 4096  ;;  %p5871_p2 = scmp.lt.s32.totalorder %s6109_s26, %s6109_s26 }
  0x62   :  { %p5867_p1 = scmp.ne.s32.totalorder %s6109_s26, %s5866_s20  ;;  %p5872_p3 = scmp.lt.s32.totalorder %s5866_s20, %s5866_s20 }
  0x64   :  { %p5873_p4 = por %p5872_p3, %p5871_p2 }
  0x66   :  { %p5874_p5 = pnand %p5873_p4, %p5867_p1 }
  0x68   :  { %5877 = shalt.err (!%p5874_p5)
}
  0x69   :  { %99 = dma.hbm_to_vmem [thread:$0]  %s8010_s10, 4096, %s6109_s26, [#allocation8], %s5933_s2, %s5933_s2, %s5934_s23  }
  0x6a   :  { %s5942_s21 = smov [#allocation12]   ;;  %s5943_s4 = smov [#allocation13]  }
  0x6b   :  { %s121_s22 = sshll.u32 %s5942_s21, 4  ;;  %s135_s29 = sshll.u32 %s5943_s4, 4  ;;  %s122_s22 = int_to_ptr.vmem [resolvable:$true] %s121_s22  ;;  %s6146_s29 = int_to_ptr.vmem [resolvable:$true] %s135_s29 }
  0x6c   :  { %s5878_s9 = scalar_lea.hbm %s8014_s14, 1024 }
  0x6d   :  { %p5879_p6 = scmp.ne.s32.totalorder %s8014_s14, %s5878_s9  ;;  %p5882_p7 = scmp.lt.u32.totalorder %s5878_s9, %s8014_s14 }
  0x6f   :  { %p5884_p8 = pnand %p5882_p7, %p5879_p6 }
  0x71   :  { %5887 = shalt.err (!%p5884_p8)
}
  0x72   :  { %s5888_s10 = scalar_lea.vmem %s122_s22, 1024  ;;  %p5893_p10 = scmp.lt.s32.totalorder %s122_s22, %s122_s22 }
  0x73   :  { %p5889_p9 = scmp.ne.s32.totalorder %s122_s22, %s5888_s10  ;;  %p5894_p11 = scmp.lt.s32.totalorder %s5888_s10, %s5888_s10 }
  0x75   :  { %p5895_p12 = por %p5894_p11, %p5893_p10 }
  0x77   :  { %p5896_p13 = pnand %p5895_p12, %p5889_p9 }
  0x79   :  { %5899 = shalt.err (!%p5896_p13)
}
  0x7a   :  { %127 = dma.hbm_to_vmem [thread:$0]  %s8014_s14, 1024, %s122_s22, [#allocation11], %s5938_s27, %s5938_s27, %s5939_s6  }
  0x7b   :  { %s5900_s20 = scalar_lea.hbm %s8016_s16, 1024 }
  0x7c   :  { %p5901_p0 = scmp.ne.s32.totalorder %s8016_s16, %s5900_s20  ;;  %p5904_p1 = scmp.lt.u32.totalorder %s5900_s20, %s8016_s16 }
  0x7e   :  { %p5906_p2 = pnand %p5904_p1, %p5901_p0 }
  0x80   :  { %5909 = shalt.err (!%p5906_p2)
}
  0x81   :  { %s5910_s12 = scalar_lea.vmem %s6146_s29, 1024  ;;  %p5915_p4 = scmp.lt.s32.totalorder %s6146_s29, %s6146_s29 }
  0x82   :  { %p5911_p3 = scmp.ne.s32.totalorder %s6146_s29, %s5910_s12  ;;  %p5916_p5 = scmp.lt.s32.totalorder %s5910_s12, %s5910_s12 }
  0x84   :  { %p5917_p6 = por %p5916_p5, %p5915_p4 }
  0x86   :  { %p5918_p7 = pnand %p5917_p6, %p5911_p3 }
  0x88   :  { %5921 = shalt.err (!%p5918_p7)
}
  0x89   :  { %141 = dma.hbm_to_vmem [thread:$0]  %s8016_s16, 1024, %s6146_s29, [#allocation14], %s5938_s27, %s5938_s27, %s5939_s6  }
  0x8a   :  { %5922 = dma.done.wait [#allocation3], 1024  }
  0x8b   :  { %5923 = vsyncadd [#allocation3], 4294966272 }
  0x8c   :  { %5924 = dma.done.wait [#allocation5], 8192  }
  0x8d   :  { %5925 = vsyncadd [#allocation5], 4294959104 }
  0x8e   :  { %5926 = dma.done.wait [#allocation8], 8192  }
  0x8f   :  { %5927 = vsyncadd [#allocation8], 4294959104 }
  0x90   :  { %5928 = dma.done.wait [#allocation11], 5120  }
  0x91   :  { %5929 = vsyncadd [#allocation11], 4294962176 }
  0x92   :  { %5930 = dma.done.wait [#allocation14], 1024  }
  0x93   :  { %5931 = vsyncadd [#allocation14], 4294966272  ;;  %s8274_s24 = sld [smem:[#allocation112_spill]]  ;;  %s8275_s14 = sld [smem:[#allocation110_spill]]  ;;  %v5120_v60 = vld [vmem:[#allocation2] sm:$0xff]   ;;  %v8022_v61 = vmov 0.0  }
  0x94   :  { %v5121_v62 = vld [vmem:[#allocation2 + $0x8] sm:$0xff]   ;;  %v5126_v63 = vld [vmem:[#allocation4] ss:$16 sps:$4 sm:$0xff]   ;;  %vm5945_vm0 = vmmov 0   ;;  %s8276_s9 = sld [smem:[#allocation111_spill]] }
  0x99   :  { %v5072_v0 = vld [vmem:[%s8274_s24 + $0x40] sm:$0xff]   ;;  %v5076_v4 = vld [vmem:[%s8274_s24 + $0x48] sm:$0xff]   ;;  %v5080_v8 = vld [vmem:[%s8274_s24 + $0x50] sm:$0xff]  }
  0x9a   :  { %v5073_v1 = vld [vmem:[%s8274_s24] sm:$0xff]   ;;  %4860 = vmatprep.subr.bf16.mxu0 %v5072_v0  ;;  %v5077_v5 = vld [vmem:[%s8274_s24 + $0x8] sm:$0xff]   ;;  %v5081_v9 = vld [vmem:[%s8274_s24 + $0x10] sm:$0xff]  }
  0x9b   :  { %v5074_v2 = vld [vmem:[%s8274_s24 + $0xc0] sm:$0xff]   ;;  %4861 = vmatpush3.bf16.msra.mxu0 %v5073_v1  ;;  %v5078_v6 = vld [vmem:[%s8274_s24 + $0xc8] sm:$0xff]   ;;  %v5082_v10 = vld [vmem:[%s8274_s24 + $0xd0] sm:$0xff]  }
  0x9c   :  { %v5075_v3 = vld [vmem:[%s8274_s24 + $0x80] sm:$0xff]   ;;  %4882 = vmatprep.subr.bf16.mxu1 %v5074_v2  ;;  %4862 = vmatprep.subr.bf16.mxu0 %v5076_v4  ;;  %v5079_v7 = vld [vmem:[%s8274_s24 + $0x88] sm:$0xff]   ;;  %v5083_v11 = vld [vmem:[%s8274_s24 + $0x90] sm:$0xff]  }
  0x9d   :  { %4883 = vmatpush3.bf16.msra.mxu1 %v5075_v3  ;;  %v5084_v12 = vld [vmem:[%s8274_s24 + $0x58] sm:$0xff]   ;;  %v5088_v16 = vld [vmem:[%s8274_s24 + $0x60] sm:$0xff]   ;;  %v5092_v20 = vld [vmem:[%s8274_s24 + $0x68] sm:$0xff]  }
  0x9e   :  { %4884 = vmatprep.subr.bf16.mxu1 %v5078_v6  ;;  %v5085_v13 = vld [vmem:[%s8274_s24 + $0x18] sm:$0xff]   ;;  %v5089_v17 = vld [vmem:[%s8274_s24 + $0x20] sm:$0xff]   ;;  %v5093_v21 = vld [vmem:[%s8274_s24 + $0x28] sm:$0xff]  }
  0x9f   :  { %4863 = vmatpush3.bf16.msra.mxu0 %v5077_v5  ;;  %v5086_v14 = vld [vmem:[%s8274_s24 + $0xd8] sm:$0xff]   ;;  %v5090_v18 = vld [vmem:[%s8274_s24 + $0xe0] sm:$0xff]   ;;  %v5094_v22 = vld [vmem:[%s8274_s24 + $0xe8] sm:$0xff]  }
  0xa0   :  { %4864 = vmatprep.subr.bf16.mxu0 %v5080_v8  ;;  %v5087_v15 = vld [vmem:[%s8274_s24 + $0x98] sm:$0xff]   ;;  %v5091_v19 = vld [vmem:[%s8274_s24 + $0xa0] sm:$0xff]   ;;  %v5095_v23 = vld [vmem:[%s8274_s24 + $0xa8] sm:$0xff]  }
  0xa1   :  { %4885 = vmatpush3.bf16.msra.mxu1 %v5079_v7  ;;  %v5096_v24 = vld [vmem:[%s8274_s24 + $0x70] sm:$0xff]   ;;  %v5100_v28 = vld [vmem:[%s8274_s24 + $0x78] sm:$0xff]   ;;  %v170_v31 = vld [vmem:[%s8275_s14 + $0x8] sm:$0xff] }
  0xa2   :  { %4886 = vmatprep.subr.bf16.mxu1 %v5082_v10  ;;  %v5097_v25 = vld [vmem:[%s8274_s24 + $0x30] sm:$0xff]   ;;  %v5101_v29 = vld [vmem:[%s8274_s24 + $0x38] sm:$0xff]   ;;  %v272_v32 = vpack.c.bf16 %v170_v31, %v170_v31  ;;  %v169_v34 = vld [vmem:[%s8275_s14] sm:$0xff] }
  0xa3   :  { %4865 = vmatpush3.bf16.msra.mxu0 %v5081_v9  ;;  %v5098_v26 = vld [vmem:[%s8274_s24 + $0xf0] sm:$0xff]   ;;  %v5102_v30 = vld [vmem:[%s8274_s24 + $0xf8] sm:$0xff]   ;;  %v271_v35 = vpack.c.bf16 %v169_v34, %v169_v34  ;;  %v5104_v36 = vld [vmem:[%s8274_s24 + $0x140] sm:$0xff]  }
  0xa4   :  { %4866 = vmatprep.subr.bf16.mxu0 %v5084_v12  ;;  %v5099_v27 = vld [vmem:[%s8274_s24 + $0xb0] sm:$0xff]   ;;  %v5103_v33 = vld [vmem:[%s8274_s24 + $0xb8] sm:$0xff]   ;;  %604 = vmatprep.mubr.bf16.mxu0 %v272_v32  ;;  %v5105_v39 = vld [vmem:[%s8274_s24 + $0x100] sm:$0xff]  }
  0xa5   :  { %4887 = vmatpush3.bf16.msra.mxu1 %v5083_v11  ;;  %v172_v37 = vld [vmem:[%s8275_s14 + $0x18] sm:$0xff]  ;;  %v171_v40 = vld [vmem:[%s8275_s14 + $0x10] sm:$0xff]  ;;  %v5106_v42 = vld [vmem:[%s8274_s24 + $0x148] sm:$0xff]  }
  0xa6   :  { %4888 = vmatprep.subr.bf16.mxu1 %v5086_v14  ;;  %v274_v38 = vpack.c.bf16 %v172_v37, %v172_v37  ;;  %v273_v41 = vpack.c.bf16 %v171_v40, %v171_v40  ;;  %v5107_v43 = vld [vmem:[%s8274_s24 + $0x108] sm:$0xff]   ;;  %v5108_v44 = vld [vmem:[%s8274_s24 + $0x150] sm:$0xff]   ;;  %v5110_v46 = vld [vmem:[%s8274_s24 + $0x158] sm:$0xff]  }
  0xa7   :  { %4867 = vmatpush3.bf16.msra.mxu0 %v5085_v13  ;;  %v5109_v45 = vld [vmem:[%s8274_s24 + $0x110] sm:$0xff]   ;;  %v5111_v47 = vld [vmem:[%s8274_s24 + $0x118] sm:$0xff]   ;;  %v5112_v48 = vld [vmem:[%s8274_s24 + $0x160] sm:$0xff]  }
  0xa8   :  { %4868 = vmatprep.subr.bf16.mxu0 %v5088_v16  ;;  %644 = vmatprep.mubr.bf16.mxu1 %v274_v38  ;;  %v5113_v49 = vld [vmem:[%s8274_s24 + $0x120] sm:$0xff]   ;;  %v5114_v50 = vld [vmem:[%s8274_s24 + $0x168] sm:$0xff]   ;;  %v5116_v54 = vld [vmem:[%s8274_s24 + $0x170] sm:$0xff]  }
  0xa9   :  { %4889 = vmatpush3.bf16.msra.mxu1 %v5087_v15  ;;  %v174_v51 = vld [vmem:[%s8275_s14 + $0x28] sm:$0xff]  ;;  %v5117_v55 = vld [vmem:[%s8274_s24 + $0x130] sm:$0xff]   ;;  %v5118_v56 = vld [vmem:[%s8274_s24 + $0x178] sm:$0xff]  }
  0xaa   :  { %4890 = vmatprep.subr.bf16.mxu1 %v5090_v18  ;;  %v5115_v52 = vld [vmem:[%s8274_s24 + $0x128] sm:$0xff]   ;;  %v276_v53 = vpack.c.bf16 %v174_v51, %v174_v51  ;;  %v5119_v57 = vld [vmem:[%s8274_s24 + $0x138] sm:$0xff]   ;;  %v173_v58 = vld [vmem:[%s8275_s14 + $0x20] sm:$0xff] }
  0xab   :  { %4869 = vmatpush3.bf16.msra.mxu0 %v5089_v17  ;;  %v275_v59 = vpack.c.bf16 %v173_v58, %v173_v58  ;;  %v5128_v0 = vld [vmem:[#allocation4 + $0x4] ss:$16 sps:$4 sm:$0xff]   ;;  %v5123_v2 = vld [vmem:[#allocation2 + $0x18] sm:$0xff]   ;;  %v5125_v4 = vld [vmem:[#allocation2 + $0x28] sm:$0xff]  }
  0xac   :  { %4870 = vmatprep.subr.bf16.mxu0 %v5092_v20  ;;  %v5122_v1 = vld [vmem:[#allocation2 + $0x10] sm:$0xff]   ;;  %v5124_v3 = vld [vmem:[#allocation2 + $0x20] sm:$0xff]   ;;  %v5133_v8 = vld [vmem:[#allocation2 + $0x38] sm:$0xff]  }
  0xad   :  { %4891 = vmatpush3.bf16.msra.mxu1 %v5091_v19  ;;  %v5129_v5 = vld [vmem:[#allocation2 + $0x30] sm:$0xff]   ;;  %v5139_v11 = vld [vmem:[#allocation4 + $0xc] ss:$16 sps:$4 sm:$0xff]   ;;  %v810_v17 = vld [vmem:[%s8276_s9] sm:$0xff] }
  0xae   :  { %4892 = vmatprep.subr.bf16.mxu1 %v5094_v22  ;;  %v5132_v6 = vld [vmem:[#allocation4 + $0x24] ss:$16 sps:$4 sm:$0xff]   ;;  %v5130_v7 = vld [vmem:[#allocation4 + $0x20] ss:$16 sps:$4 sm:$0xff]   ;;  %v811_v18 = vld [vmem:[%s8276_s9 + $0x8] sm:$0xff]  ;;  %5368 = vtanh.f32 %v810_v17 }
  0xaf   :  { %4871 = vmatpush3.bf16.msra.mxu0 %v5093_v21  ;;  %v5136_v9 = vld [vmem:[#allocation4 + $0x44] ss:$16 sps:$4 sm:$0xff]   ;;  %v5134_v10 = vld [vmem:[#allocation4 + $0x40] ss:$16 sps:$4 sm:$0xff]   ;;  %5370 = vtanh.f32 %v811_v18  ;;  %v5151_v51 = vld [vmem:[#allocation4 + $0x4c] ss:$16 sps:$4 sm:$0xff]  }
  0xb0   :  { %4872 = vmatprep.subr.bf16.mxu0 %v5096_v24  ;;  %v5142_v12 = vld [vmem:[#allocation4 + $0x64] ss:$16 sps:$4 sm:$0xff]   ;;  %v5140_v13 = vld [vmem:[#allocation4 + $0x60] ss:$16 sps:$4 sm:$0xff]   ;;  %v5167_v58 = vld [vmem:[#allocation4 + $0xa8] ss:$16 sps:$4 sm:$0xff]  }
  0xb1   :  { %4893 = vmatpush3.bf16.msra.mxu1 %v5095_v23  ;;  %v5148_v14 = vld [vmem:[#allocation4 + $0x84] ss:$16 sps:$4 sm:$0xff]   ;;  %v5146_v15 = vld [vmem:[#allocation4 + $0x80] ss:$16 sps:$4 sm:$0xff]  }
  0xb2   :  { %4894 = vmatprep.subr.bf16.mxu1 %v5098_v26  ;;  %v5154_v16 = vld [vmem:[#allocation4 + $0xa4] ss:$16 sps:$4 sm:$0xff]   ;;  %v5152_v19 = vld [vmem:[#allocation4 + $0xa0] ss:$16 sps:$4 sm:$0xff]  }
  0xb3   :  { %4873 = vmatpush3.bf16.msra.mxu0 %v5097_v25  ;;  %v5160_v20 = vld [vmem:[#allocation4 + $0xc4] ss:$16 sps:$4 sm:$0xff]   ;;  %v5158_v21 = vld [vmem:[#allocation4 + $0xc0] ss:$16 sps:$4 sm:$0xff]   ;;  %v8028_v25 = vmov 0  }
  0xb4   :  { %4874 = vmatprep.subr.bf16.mxu0 %v5100_v28  ;;  %v5166_v22 = vld [vmem:[#allocation4 + $0xe4] ss:$16 sps:$4 sm:$0xff]   ;;  %v5164_v23 = vld [vmem:[#allocation4 + $0xe0] ss:$16 sps:$4 sm:$0xff]  }
  0xb5   :  { %4895 = vmatpush3.bf16.msra.mxu1 %v5099_v27 }
  0xb6   :  { %4896 = vmatprep.subr.bf16.mxu1 %v5102_v30 }
  0xb7   :  { %4875 = vmatpush3.bf16.msra.mxu0 %v5101_v29  ;;  %v4623_v29 = vld [vmem:[%s8003_s3] ss:$0 sm:$0xff] }
  0xb8   :  { %4904 = vmatprep.subr.bf16.mxu0 %v5104_v36  ;;  %v5369_v24 = vpop.eup %5368 }
  0xb9   :  { %4897 = vmatpush3.bf16.msra.mxu1 %v5103_v33  ;;  %v5371_v26 = vpop.eup %5370 }
  0xba   :  { %605 = vmatmul.mubr.bf16.vlgmr.msra.gmra.mrb[0].mxu0 %v271_v35  ;;  %4997 = vmatprep.subr.bf16.mxu1 %v8022_v61  ;;  %v858_v27 = vpack.c.bf16 %v5371_v26, %v5369_v24  ;;  %v817_v24 = vld [vmem:[%s8276_s9 + $0x38] sm:$0xff]  ;;  %v6430_v26 = vld [vmem:[#allocation6 + $0x64] ss:$16 sps:$4 sm:$0xff]  }
  0xbb   :  { %4905 = vmatpush3.bf16.msra.mxu0 %v5105_v39  ;;  %684 = vmatprep.mubr.bf16.mxu0 %v276_v53  ;;  %v5157_v53 = vld [vmem:[#allocation4 + $0x6c] ss:$16 sps:$4 sm:$0xff]  }
  0xbc   :  { %645 = vmatmul.mubr.bf16.vlgmr.msra.gmra.mrb[0].mxu1 %v273_v41  ;;  %4906 = vmatprep.subr.bf16.mxu0 %v5106_v42 }
  0xbd   :  { %4998 = vmatpush3.bf16.msra.mxu1 %v5120_v60  ;;  %5013 = vmatprep.mubr.msk.bf16.mxu1 %vm5945_vm0, %v8022_v61  ;;  %v5170_v60 = vld [vmem:[#allocation4 + $0xc8] ss:$16 sps:$4 sm:$0xff]  }
  0xbe   :  { %4999 = vmatprep.subr.bf16.mxu1 %v8022_v61 }
  0xbf   :  { %4907 = vmatpush3.bf16.msra.mxu0 %v5107_v43 }
  0xc0   :  { %4908 = vmatprep.subr.bf16.mxu0 %v5108_v44 }
  0xc1   :  { %5000 = vmatpush3.bf16.msra.mxu1 %v5121_v62  ;;  %v5175_v62 = vld [vmem:[#allocation4 + $0xec] ss:$16 sps:$4 sm:$0xff]  }
  0xc2   :  { %5001 = vmatprep.subr.bf16.mxu1 %v8022_v61 }
  0xc3   :  { %4909 = vmatpush3.bf16.msra.mxu0 %v5109_v45 }
  0xc4   :  { %4910 = vmatprep.subr.bf16.mxu0 %v5110_v46 }
  0xc5   :  { %5002 = vmatpush3.bf16.msra.mxu1 %v5122_v1 }
  0xc6   :  { %5003 = vmatprep.subr.bf16.mxu1 %v8022_v61 }
  0xc7   :  { %4911 = vmatpush3.bf16.msra.mxu0 %v5111_v47  ;;  %v5137_v47 = vld [vmem:[#allocation4 + $0x8] ss:$16 sps:$4 sm:$0xff]  }
  0xc8   :  { %4912 = vmatprep.subr.bf16.mxu0 %v5112_v48 }
  0xc9   :  { %5004 = vmatpush3.bf16.msra.mxu1 %v5123_v2  ;;  %v812_v2 = vld [vmem:[%s8276_s9 + $0x10] sm:$0xff] }
  0xca   :  { %5005 = vmatprep.subr.bf16.mxu1 %v8022_v61  ;;  %5372 = vtanh.f32 %v812_v2 }
  0xcb   :  { %4913 = vmatpush3.bf16.msra.mxu0 %v5113_v49  ;;  %v5145_v49 = vld [vmem:[#allocation4 + $0x2c] ss:$16 sps:$4 sm:$0xff]  }
  0xcc   :  { %4914 = vmatprep.subr.bf16.mxu0 %v5114_v50  ;;  %v5143_v50 = vld [vmem:[#allocation4 + $0x28] ss:$16 sps:$4 sm:$0xff]  }
  0xcd   :  { %5006 = vmatpush3.bf16.msra.mxu1 %v5124_v3  ;;  %v813_v3 = vld [vmem:[%s8276_s9 + $0x18] sm:$0xff] }
  0xce   :  { %5007 = vmatprep.subr.bf16.mxu1 %v8022_v61  ;;  %5374 = vtanh.f32 %v813_v3  ;;  %v862_v3 = vld [vmem:[%s8008_s8] sm:$0xf] }
  0xcf   :  { %4915 = vmatpush3.bf16.msra.mxu0 %v5115_v52  ;;  %v5149_v52 = vld [vmem:[#allocation4 + $0x48] ss:$16 sps:$4 sm:$0xff]  }
  0xd0   :  { %4916 = vmatprep.subr.bf16.mxu0 %v5116_v54  ;;  %v5155_v54 = vld [vmem:[#allocation4 + $0x68] ss:$16 sps:$4 sm:$0xff]  }
  0xd1   :  { %5008 = vmatpush3.bf16.msra.mxu1 %v5125_v4 }
  0xd2   :  { %5009 = vmatprep.subr.bf16.mxu1 %v8022_v61 }
  0xd3   :  { %4917 = vmatpush3.bf16.msra.mxu0 %v5117_v55  ;;  %v5163_v55 = vld [vmem:[#allocation4 + $0x8c] ss:$16 sps:$4 sm:$0xff]  }
  0xd4   :  { %4918 = vmatprep.subr.bf16.mxu0 %v5118_v56  ;;  %v5161_v56 = vld [vmem:[#allocation4 + $0x88] ss:$16 sps:$4 sm:$0xff]  }
  0xd5   :  { %5010 = vmatpush3.bf16.msra.mxu1 %v5129_v5 }
  0xd6   :  { %5011 = vmatprep.subr.bf16.mxu1 %v8022_v61 }
  0xd7   :  { %4919 = vmatpush3.bf16.msra.mxu0 %v5119_v57  ;;  %v5169_v57 = vld [vmem:[#allocation4 + $0xac] ss:$16 sps:$4 sm:$0xff]  }
  0xd8   :  { %1044 = vmatprep.subr.bf16.mxu0 %v5128_v0 }
  0xd9   :  { %5012 = vmatpush3.bf16.msra.mxu1 %v5133_v8  ;;  %v6386_v8 = vld [vmem:[#allocation6] ss:$16 sps:$4 sm:$0xff]  }
  0xda   :  { %685 = vmatmul.mubr.bf16.vlgmr.msra.gmra.mrb[4].mxu0 %v275_v59  ;;  %1117 = vmatprep.subr.bf16.mxu1 %v5139_v11  ;;  %v5172_v59 = vld [vmem:[#allocation4 + $0xcc] ss:$16 sps:$4 sm:$0xff]  }
  0xdb   :  { %1045 = vmatpush1.bf16.msra.mxu0 %v5126_v63  ;;  %1076 = vmatprep.mubr.bf16.mxu0 %v8028_v25  ;;  %v5173_v63 = vld [vmem:[#allocation4 + $0xe8] ss:$16 sps:$4 sm:$0xff]  }
  0xdc   :  { %1046 = vmatprep.subr.bf16.mxu0 %v5132_v6  ;;  %v6382_v6 = vld [vmem:[#allocation6 + $0x4] ss:$16 sps:$4 sm:$0xff]   ;;  %v815_v11 = vld [vmem:[%s8276_s9 + $0x28] sm:$0xff] }
  0xdf   :  { %1047 = vmatpush1.bf16.msra.mxu0 %v5130_v7  ;;  %v6384_v7 = vld [vmem:[#allocation6 + $0xc] ss:$16 sps:$4 sm:$0xff]  }
  0xe0   :  { %1048 = vmatprep.subr.bf16.mxu0 %v5136_v9  ;;  %v6388_v9 = vld [vmem:[#allocation6 + $0x8] ss:$16 sps:$4 sm:$0xff]  }
  0xe3   :  { %1049 = vmatpush1.bf16.msra.mxu0 %v5134_v10  ;;  %v814_v10 = vld [vmem:[%s8276_s9 + $0x20] sm:$0xff] }
  0xe4   :  { %1050 = vmatprep.subr.bf16.mxu0 %v5142_v12  ;;  %5376 = vtanh.f32 %v814_v10  ;;  %v6400_v12 = vld [vmem:[#allocation6 + $0x24] ss:$16 sps:$4 sm:$0xff]  }
  0xe5   :  { %5378 = vtanh.f32 %v815_v11 }
  0xe7   :  { %1051 = vmatpush1.bf16.msra.mxu0 %v5140_v13  ;;  %v6402_v13 = vld [vmem:[#allocation6 + $0x2c] ss:$16 sps:$4 sm:$0xff]  }
  0xe8   :  { %1052 = vmatprep.subr.bf16.mxu0 %v5148_v14  ;;  %v5373_v14 = vpop.eup %5372 }
  0xe9   :  { %v5375_v17 = vpop.eup %5374 }
  0xea   :  { %v859_v18 = vpack.c.bf16 %v5375_v17, %v5373_v14 }
  0xeb   :  { %1053 = vmatpush1.bf16.msra.mxu0 %v5146_v15  ;;  %v6404_v15 = vld [vmem:[#allocation6 + $0x20] ss:$16 sps:$4 sm:$0xff]  }
  0xec   :  { %1054 = vmatprep.subr.bf16.mxu0 %v5154_v16  ;;  %v6406_v16 = vld [vmem:[#allocation6 + $0x28] ss:$16 sps:$4 sm:$0xff]  }
  0xef   :  { %1055 = vmatpush1.bf16.msra.mxu0 %v5152_v19  ;;  %v6412_v19 = vld [vmem:[#allocation6 + $0x44] ss:$16 sps:$4 sm:$0xff]  }
  0xf0   :  { %1056 = vmatprep.subr.bf16.mxu0 %v5160_v20  ;;  %v6414_v20 = vld [vmem:[#allocation6 + $0x4c] ss:$16 sps:$4 sm:$0xff]  }
  0xf3   :  { %1057 = vmatpush1.bf16.msra.mxu0 %v5158_v21  ;;  %v6416_v21 = vld [vmem:[#allocation6 + $0x40] ss:$16 sps:$4 sm:$0xff]  }
  0xf4   :  { %1058 = vmatprep.subr.bf16.mxu0 %v5166_v22  ;;  %v6418_v22 = vld [vmem:[#allocation6 + $0x48] ss:$16 sps:$4 sm:$0xff]  }
  0xf7   :  { %1059 = vmatpush1.bf16.msra.mxu0 %v5164_v23  ;;  %v816_v23 = vld [vmem:[%s8276_s9 + $0x30] sm:$0xff] }
  0xf8   :  { %1487 = vmatprep.subr.bf16.mxu0 %v6382_v6  ;;  %5380 = vtanh.f32 %v816_v23 }
  0xf9   :  { %5382 = vtanh.f32 %v817_v24 }
  0xfa   :  { %1077 = vmatmul.mubr.bf16.vlgmr.msra.gmra.mrb[8].mxu0 %v858_v27 }
  0xfb   :  { %1086 = vmatprep.mubr.bf16.mxu0 %v8028_v25  ;;  %1488 = vmatpush1.bf16.msra.mxu0 %v6386_v8 }
  0xfc   :  { %1489 = vmatprep.subr.bf16.mxu0 %v6400_v12 }
  0xff   :  { %1490 = vmatpush1.bf16.msra.mxu0 %v6404_v15 }
 0x100   :  { %1491 = vmatprep.subr.bf16.mxu0 %v6412_v19 }
 0x102   :  { %1087 = vmatmul.mubr.bf16.gmra.mrb[12].mxu0 %v859_v18 }
 0x103   :  { %1492 = vmatpush1.bf16.msra.mxu0 %v6416_v21  ;;  %1096 = vmatprep.mubr.bf16.mxu0 %v8028_v25 }
 0x104   :  { %1493 = vmatprep.subr.bf16.mxu0 %v6430_v26 }
 0x18d   :  { %v4876_v28 = vpop.f32.mrb[0].mxu0 }
 0x18e   :  { %v4877_v30 = vpop.f32.mrb[1].mxu0 }
 0x18f   :  { %v4878_v31 = vadd.f32 %v4877_v30, %v4876_v28  ;;  %v4879_v32 = vpop.f32.mrb[2].mxu0  ;;  %v4898_v33 = vpop.f32.mrb[0].mxu1  ;;  %v6438_v30 = vld [vmem:[#allocation6 + $0x68] ss:$16 sps:$4 sm:$0xff]  }
 0x190   :  { %v4880_v34 = vpop.f32.mrb[3].mxu0  ;;  %v4899_v36 = vpop.f32.mrb[1].mxu1 }
 0x191   :  { %v607_v35 = vadd.f32 %v4878_v31, %v4623_v29  ;;  %v4900_v37 = vadd.f32 %v4899_v36, %v4898_v33  ;;  %v4901_v38 = vpop.f32.mrb[2].mxu1  ;;  %v5377_v28 = vpop.eup %5376  ;;  %v6436_v29 = vld [vmem:[#allocation6 + $0x60] ss:$16 sps:$4 sm:$0xff]   ;;  %v6444_v33 = vld [vmem:[#allocation6 + $0x84] ss:$16 sps:$4 sm:$0xff]  }
 0x192   :  { %v4902_v39 = vpop.f32.mrb[3].mxu1  ;;  %v5379_v31 = vpop.eup %5378  ;;  %1494 = vmatpush1.bf16.msra.mxu0 %v6436_v29  ;;  %v6446_v34 = vld [vmem:[#allocation6 + $0x8c] ss:$16 sps:$4 sm:$0xff]   ;;  %v6450_v36 = vld [vmem:[#allocation6 + $0x88] ss:$16 sps:$4 sm:$0xff]  }
 0x193   :  { %v647_v40 = vadd.f32 %v4900_v37, %v607_v35  ;;  %v860_v32 = vpack.c.bf16 %v5379_v31, %v5377_v28  ;;  %v6448_v35 = vld [vmem:[#allocation6 + $0x80] ss:$16 sps:$4 sm:$0xff]   ;;  %1495 = vmatprep.subr.bf16.mxu0 %v6444_v33  ;;  %v6456_v37 = vld [vmem:[#allocation6 + $0xa4] ss:$16 sps:$4 sm:$0xff]   ;;  %v6458_v38 = vld [vmem:[#allocation6 + $0xac] ss:$16 sps:$4 sm:$0xff]   ;;  %v5381_v39 = vpop.eup %5380 }
 0x195   :  { %1097 = vmatmul.mubr.bf16.gmra.mrb[16].mxu0 %v860_v32 }
 0x196   :  { %1496 = vmatpush1.bf16.msra.mxu0 %v6448_v35  ;;  %1106 = vmatprep.mubr.bf16.mxu0 %v8028_v25 }
 0x197   :  { %1497 = vmatprep.subr.bf16.mxu0 %v6456_v37 }
 0x1ad   :  { %v4920_v41 = vpop.f32.mrb[4].mxu0 }
 0x1ae   :  { %v4921_v42 = vpop.f32.mrb[5].mxu0 }
 0x1af   :  { %v4922_v43 = vadd.f32 %v4921_v42, %v4920_v41  ;;  %v4923_v44 = vpop.f32.mrb[6].mxu0  ;;  %v6464_v41 = vld [vmem:[#allocation6 + $0xa8] ss:$16 sps:$4 sm:$0xff]   ;;  %v5383_v42 = vpop.eup %5382 }
 0x1b0   :  { %v4924_v45 = vpop.f32.mrb[7].mxu0  ;;  %v6470_v44 = vld [vmem:[#allocation6 + $0xc4] ss:$16 sps:$4 sm:$0xff]  }
 0x1b1   :  { %v687_v46 = vadd.f32 %v4922_v43, %v647_v40  ;;  %v6462_v40 = vld [vmem:[#allocation6 + $0xa0] ss:$16 sps:$4 sm:$0xff]   ;;  %v861_v43 = vpack.c.bf16 %v5383_v42, %v5381_v39  ;;  %v6472_v45 = vld [vmem:[#allocation6 + $0xcc] ss:$16 sps:$4 sm:$0xff]  }
 0x1b2   :  { %1498 = vmatpush1.bf16.msra.mxu0 %v6462_v40 }
 0x1b3   :  { %v708_v48 = vpack.c.bf16 %v687_v46, %v687_v46  ;;  %1107 = vmatmul.mubr.bf16.gmra.mrb[20].mxu0 %v861_v43  ;;  %v6474_v46 = vld [vmem:[#allocation6 + $0xc0] ss:$16 sps:$4 sm:$0xff]   ;;  %1499 = vmatprep.subr.bf16.mxu0 %v6470_v44 }
 0x1b4   :  { %1519 = vmatprep.mubr.bf16.mxu0 %v8028_v25 }
 0x1b5   :  { %5014 = vmatmul.mubr.bf16.vlgmr.msra.gmra.mrb[4].mxu1 %v708_v48  ;;  %v6482_v48 = vld [vmem:[#allocation6 + $0xe4] ss:$16 sps:$4 sm:$0xff]  }
 0x1b6   :  { %1118 = vmatpush1.bf16.msra.mxu1 %v5137_v47  ;;  %1149 = vmatprep.mubr.bf16.mxu1 %v8028_v25  ;;  %v6476_v47 = vld [vmem:[#allocation6 + $0xc8] ss:$16 sps:$4 sm:$0xff]   ;;  %8277 = vst [vmem:[#allocation20_spill] sm:$0xff] %v6482_v48 }
 0x1b7   :  { %1119 = vmatprep.subr.bf16.mxu1 %v5145_v49  ;;  %1500 = vmatpush1.bf16.msra.mxu0 %v6474_v46  ;;  %v6484_v49 = vld [vmem:[#allocation6 + $0xec] ss:$16 sps:$4 sm:$0xff]  }
 0x1b8   :  { %8278 = vst [vmem:[#allocation21_spill] sm:$0xff] %v6484_v49  ;;  %1501 = vmatprep.subr.bf16.mxu0 %v6482_v48 }
 0x1ba   :  { %1120 = vmatpush1.bf16.msra.mxu1 %v5143_v50  ;;  %v6488_v50 = vld [vmem:[#allocation6 + $0xe0] ss:$16 sps:$4 sm:$0xff]  }
 0x1bb   :  { %1121 = vmatprep.subr.bf16.mxu1 %v5151_v51  ;;  %8279 = vst [vmem:[#allocation22_spill] sm:$0xff] %v6488_v50  ;;  %v6490_v51 = vld [vmem:[#allocation6 + $0xe8] ss:$16 sps:$4 sm:$0xff]   ;;  %1502 = vmatpush1.bf16.msra.mxu0 %v6488_v50 }
 0x1bc   :  { %8280 = vst [vmem:[#allocation23_spill] sm:$0xff] %v6490_v51 }
 0x1be   :  { %1122 = vmatpush1.bf16.msra.mxu1 %v5149_v52  ;;  %v6496_v52 = vld [vmem:[#allocation9 + $0x4] ss:$16 sps:$4 sm:$0xff]  }
 0x1bf   :  { %1123 = vmatprep.subr.bf16.mxu1 %v5157_v53  ;;  %8281 = vst [vmem:[#allocation24_spill] sm:$0xff] %v6496_v52  ;;  %v6498_v53 = vld [vmem:[#allocation9 + $0xc] ss:$16 sps:$4 sm:$0xff]   ;;  %1733 = vmatprep.subr.bf16.mxu0 %v6496_v52 }
 0x1c0   :  { %8282 = vst [vmem:[#allocation25_spill] sm:$0xff] %v6498_v53 }
 0x1c2   :  { %1124 = vmatpush1.bf16.msra.mxu1 %v5155_v54  ;;  %v4672_v54 = vld [vmem:[%s8005_s5] ss:$0 sm:$0xff] }
 0x1c3   :  { %1125 = vmatprep.subr.bf16.mxu1 %v5163_v55  ;;  %v864_v55 = vlaneseq }
 0x1c6   :  { %1126 = vmatpush1.bf16.msra.mxu1 %v5161_v56 }
 0x1c7   :  { %1127 = vmatprep.subr.bf16.mxu1 %v5169_v57 }
 0x1ca   :  { %1128 = vmatpush1.bf16.msra.mxu1 %v5167_v58 }
 0x1cb   :  { %1129 = vmatprep.subr.bf16.mxu1 %v5172_v59 }
 0x1cd   :  { %v6368_v0 = vpop.f32.mrb[8].mxu0 }
 0x1ce   :  { %1130 = vmatpush1.bf16.msra.mxu1 %v5170_v60  ;;  %v6370_v1 = vpop.f32.mrb[9].mxu0 }
 0x1cf   :  { %1131 = vmatprep.subr.bf16.mxu1 %v5175_v62  ;;  %v6378_v4 = vpop.f32.mrb[10].mxu0 }
 0x1d0   :  { %v6380_v5 = vpop.f32.mrb[11].mxu0 }
 0x1d2   :  { %1132 = vmatpush1.bf16.msra.mxu1 %v5173_v63  ;;  %v6509_v63 = vshrl.u32 %v864_v55, 7 }
 0x1d3   :  { %1528 = vmatprep.subr.bf16.mxu1 %v6384_v7 }
 0x1d4   :  { %8284 = vst [vmem:[#allocation27_spill] sm:$0xff] %v6509_v63  ;;  %v8026_v2 = vsub.s32 1, %v6509_v63  ;;  %v8027_v10 = vsub.s32 0, %v6509_v63  ;;  %v8025_v28 = vsub.s32 2, %v6509_v63  ;;  %v8024_v31 = vsub.s32 3, %v6509_v63 }
 0x1d5   :  { %1150 = vmatmul.mubr.bf16.vlgmr.msra.gmra.mrb[8].mxu1 %v858_v27  ;;  %v6432_v27 = vld [vmem:[#allocation6 + $0x6c] ss:$16 sps:$4 sm:$0xff]  }
 0x1d6   :  { %1159 = vmatprep.mubr.bf16.mxu1 %v8028_v25  ;;  %1529 = vmatpush1.bf16.msra.mxu1 %v6388_v9  ;;  %v6518_v11 = vrot.slane %v862_v3, %v8026_v2  ;;  %v6522_v14 = vrot.slane %v862_v3, %v8027_v10  ;;  %v6536_v39 = vrot.slane %v862_v3, %v8024_v31  ;;  %v6547_v2 = vld [vmem:[#allocation9] ss:$16 sps:$4 sm:$0xff]   ;;  %v6607_v63 = vld [vmem:[#allocation9 + $0xac] ss:$16 sps:$4 sm:$0xff]  }
 0x1d7   :  { %1530 = vmatprep.subr.bf16.mxu1 %v6402_v13  ;;  %v6599_v10 = vld [vmem:[#allocation9 + $0x80] ss:$16 sps:$4 sm:$0xff]   ;;  %8303 = vst [vmem:[#allocation46_spill] sm:$0xff] %v6607_v63 }
 0x1d8   :  { %8285 = vst [vmem:[#allocation28_spill] sm:$0xff] %v6518_v11  ;;  %8286 = vst [vmem:[#allocation29_spill] sm:$0xff] %v6522_v14  ;;  %v1081_v17 = vadd.f32 %v6370_v1, %v6518_v11 }
 0x1d9   :  { %8288 = vst [vmem:[#allocation31_spill] sm:$0xff] %v6536_v39  ;;  %8300 = vst [vmem:[#allocation43_spill] sm:$0xff] %v6599_v10 }
 0x1da   :  { %1531 = vmatpush1.bf16.msra.mxu1 %v6406_v16  ;;  %v1312_v23 = vmul.f32 0.5, %v1081_v17 }
 0x1db   :  { %1532 = vmatprep.subr.bf16.mxu1 %v6414_v20 }
 0x1dc   :  { %5384 = vtanh.f32 %v1312_v23 }
 0x1dd   :  { %1160 = vmatmul.mubr.bf16.gmra.mrb[12].mxu1 %v859_v18  ;;  %v1079_v18 = vadd.f32 %v6368_v0, %v6522_v14 }
 0x1de   :  { %1533 = vmatpush1.bf16.msra.mxu1 %v6418_v22  ;;  %1169 = vmatprep.mubr.bf16.mxu1 %v8028_v25 }
 0x1df   :  { %1534 = vmatprep.subr.bf16.mxu1 %v6432_v27  ;;  %v1308_v24 = vmul.f32 0.5, %v1079_v18 }
 0x1e1   :  { %5386 = vtanh.f32 %v1308_v24 }
 0x1e2   :  { %1535 = vmatpush1.bf16.msra.mxu1 %v6438_v30 }
 0x1e3   :  { %1536 = vmatprep.subr.bf16.mxu1 %v6446_v34 }
 0x1e5   :  { %1170 = vmatmul.mubr.bf16.gmra.mrb[16].mxu1 %v860_v32  ;;  %v6532_v32 = vrot.slane %v862_v3, %v8025_v28 }
 0x1e6   :  { %1537 = vmatpush1.bf16.msra.mxu1 %v6450_v36  ;;  %1179 = vmatprep.mubr.bf16.mxu1 %v8028_v25  ;;  %v5385_v42 = vpop.eup %5384 }
 0x1e7   :  { %1538 = vmatprep.subr.bf16.mxu1 %v6458_v38  ;;  %8287 = vst [vmem:[#allocation30_spill] sm:$0xff] %v6532_v32 }
 0x1ea   :  { %1539 = vmatpush1.bf16.msra.mxu1 %v6464_v41 }
 0x1eb   :  { %1540 = vmatprep.subr.bf16.mxu1 %v6472_v45 }
 0x1ed   :  { %1180 = vmatmul.mubr.bf16.gmra.mrb[20].mxu1 %v861_v43 }
 0x1ee   :  { %1541 = vmatpush1.bf16.msra.mxu1 %v6476_v47  ;;  %1560 = vmatprep.mubr.bf16.mxu1 %v8028_v25 }
 0x1ef   :  { %1542 = vmatprep.subr.bf16.mxu1 %v6484_v49 }
 0x1f2   :  { %1543 = vmatpush1.bf16.msra.mxu1 %v6490_v51 }
 0x1f3   :  { %1774 = vmatprep.subr.bf16.mxu1 %v6498_v53 }
 0x288   :  { %v798_v56 = vpop.f32.mrb[4].mxu1 }
 0x289   :  { %v6505_v57 = vadd.f32 %v4672_v54, %v798_v56  ;;  %v5015_v58 = vpop.f32.mrb[5].mxu1  ;;  %v5387_v56 = vpop.eup %5386 }
 0x28a   :  { %v801_v59 = vpop.f32.mrb[6].mxu1 }
 0x28b   :  { %8283 = vst [vmem:[#allocation26_spill] sm:$0xff] %v6505_v57  ;;  %v5016_v60 = vpop.f32.mrb[7].mxu1  ;;  %v804_v62 = vmul.f32 %v6505_v57, %v6505_v57  ;;  %v1314_v59 = vadd.f32 1.0, %v5385_v42  ;;  %v6549_v42 = vld [vmem:[#allocation9 + $0x8] ss:$16 sps:$4 sm:$0xff]  }
 0x28c   :  { %v1310_v60 = vadd.f32 1.0, %v5387_v56  ;;  %v6553_v56 = vld [vmem:[#allocation9 + $0x24] ss:$16 sps:$4 sm:$0xff]  }
 0x28d   :  { %805 = vadd.xlane.f32.xlu0 %v804_v62  ;;  %v1315_v17 = vmul.f32 0.5, %v1314_v59  ;;  %v6555_v59 = vld [vmem:[#allocation9 + $0x2c] ss:$16 sps:$4 sm:$0xff]   ;;  %v6605_v57 = vld [vmem:[#allocation9 + $0xa4] ss:$16 sps:$4 sm:$0xff]  }
 0x28e   :  { %v1311_v18 = vmul.f32 0.5, %v1310_v60  ;;  %v6561_v60 = vld [vmem:[#allocation9 + $0x20] ss:$16 sps:$4 sm:$0xff]   ;;  %8302 = vst [vmem:[#allocation45_spill] sm:$0xff] %v6605_v57 }
 0x28f   :  { %v1321_v3 = vmul.f32 0.0, %v1315_v17  ;;  %v6575_v17 = vld [vmem:[#allocation9 + $0x40] ss:$16 sps:$4 sm:$0xff]  }
 0x290   :  { %8292 = vst [vmem:[#allocation35_spill] sm:$0xff] %v6575_v17 }
 0x2a8   :  { %v1151_v1 = vpop.f32.mrb[8].mxu1 }
 0x2a9   :  { %v1152_v0 = vadd.f32 %v1151_v1, %v6532_v32  ;;  %v1153_v43 = vpop.f32.mrb[9].mxu1 }
 0x2aa   :  { %v1154_v54 = vadd.f32 %v1153_v43, %v6536_v39  ;;  %v6540_v55 = vpop.f32.mrb[10].mxu1 }
 0x2ab   :  { %5388 = vtanh.f32 %v1152_v0  ;;  %v6542_v58 = vpop.f32.mrb[11].mxu1 }
 0x2ac   :  { %v1317_v62 = vmul.f32 0.5, %v1154_v54 }
 0x2ae   :  { %5390 = vtanh.f32 %v1317_v62  ;;  %v6569_v62 = vld [vmem:[#allocation9 + $0x4c] ss:$16 sps:$4 sm:$0xff]  }
 0x2af   :  { %8291 = vst [vmem:[#allocation34_spill] sm:$0xff] %v6569_v62 }
 0x2b5   :  { %v5389_v23 = vpop.eup %5388 }
 0x2b6   :  { %v1322_v24 = vmul.f32 %v5389_v23, %v1311_v18  ;;  %v6577_v18 = vld [vmem:[#allocation9 + $0x48] ss:$16 sps:$4 sm:$0xff]   ;;  %v6583_v23 = vld [vmem:[#allocation9 + $0x6c] ss:$16 sps:$4 sm:$0xff]  }
 0x2b7   :  { %8293 = vst [vmem:[#allocation36_spill] sm:$0xff] %v6577_v18  ;;  %8295 = vst [vmem:[#allocation38_spill] sm:$0xff] %v6583_v23 }
 0x2b8   :  { %v6544_v61 = vadd.f32 %v1322_v24, %v1321_v3  ;;  %v5391_v1 = vpop.eup %5390  ;;  %v6581_v3 = vld [vmem:[#allocation9 + $0x64] ss:$16 sps:$4 sm:$0xff]   ;;  %v6587_v24 = vld [vmem:[#allocation9 + $0x60] ss:$16 sps:$4 sm:$0xff]  }
 0x2b9   :  { %v1319_v43 = vadd.f32 1.0, %v5391_v1  ;;  %8294 = vst [vmem:[#allocation37_spill] sm:$0xff] %v6581_v3  ;;  %8296 = vst [vmem:[#allocation39_spill] sm:$0xff] %v6587_v24  ;;  %v6589_v1 = vld [vmem:[#allocation9 + $0x68] ss:$16 sps:$4 sm:$0xff]  }
 0x2ba   :  { %5392 = vtanh.f32 %v6544_v61  ;;  %8297 = vst [vmem:[#allocation40_spill] sm:$0xff] %v6589_v1 }
 0x2bb   :  { %v1320_v31 = vmul.f32 0.5, %v1319_v43  ;;  %v6593_v43 = vld [vmem:[#allocation9 + $0x84] ss:$16 sps:$4 sm:$0xff]  }
 0x2bc   :  { %8298 = vst [vmem:[#allocation41_spill] sm:$0xff] %v6593_v43 }
 0x2c4   :  { %v5393_v28 = vpop.eup %5392 }
 0x2c5   :  { %v1325_v0 = vmul.f32 %v5393_v28, %v1320_v31  ;;  %v6563_v28 = vld [vmem:[#allocation9 + $0x28] ss:$16 sps:$4 sm:$0xff]   ;;  %v6567_v31 = vld [vmem:[#allocation9 + $0x44] ss:$16 sps:$4 sm:$0xff]  }
 0x2c6   :  { %8289 = vst [vmem:[#allocation32_spill] sm:$0xff] %v6563_v28  ;;  %8290 = vst [vmem:[#allocation33_spill] sm:$0xff] %v6567_v31 }
 0x2c7   :  { %v6551_v54 = vpack.c.bf16 %v1325_v0, %v1325_v0  ;;  %v6595_v0 = vld [vmem:[#allocation9 + $0x8c] ss:$16 sps:$4 sm:$0xff]  }
 0x2c8   :  { %8299 = vst [vmem:[#allocation42_spill] sm:$0xff] %v6595_v0 }
 0x2c9   :  { %1520 = vmatmul.mubr.bf16.vlgmr.msra.gmra.mrb[24].mxu0 %v6551_v54  ;;  %1561 = vmatmul.mubr.bf16.vlgmr.msra.gmra.mrb[24].mxu1 %v6551_v54 }
 0x2ca   :  { %1734 = vmatpush1.bf16.msra.mxu0 %v6547_v2  ;;  %1775 = vmatpush1.bf16.msra.mxu1 %v6549_v42 }
 0x2cb   :  { %1735 = vmatprep.subr.bf16.mxu0 %v6553_v56  ;;  %1776 = vmatprep.subr.bf16.mxu1 %v6555_v59 }
 0x2cc   :  { %1765 = vmatprep.mubr.bf16.mxu0 %v8028_v25  ;;  %1806 = vmatprep.mubr.bf16.mxu1 %v8028_v25  ;;  %v6601_v25 = vld [vmem:[#allocation9 + $0x88] ss:$16 sps:$4 sm:$0xff]  }
 0x2cd   :  { %8301 = vst [vmem:[#allocation44_spill] sm:$0xff] %v6601_v25 }
 0x2ce   :  { %1736 = vmatpush1.bf16.msra.mxu0 %v6561_v60  ;;  %1777 = vmatpush1.bf16.msra.mxu1 %v6563_v28 }
 0x2cf   :  { %1737 = vmatprep.subr.bf16.mxu0 %v6567_v31  ;;  %1778 = vmatprep.subr.bf16.mxu1 %v6569_v62 }
 0x2d2   :  { %1738 = vmatpush1.bf16.msra.mxu0 %v6575_v17  ;;  %1779 = vmatpush1.bf16.msra.mxu1 %v6577_v18  ;;  %v6741_v18 = vpop.f32.mrb[12].mxu1 }
 0x2d3   :  { %1739 = vmatprep.subr.bf16.mxu0 %v6581_v3  ;;  %1780 = vmatprep.subr.bf16.mxu1 %v6583_v23  ;;  %v6611_v23 = vld [vmem:[#allocation9 + $0xa0] ss:$16 sps:$4 sm:$0xff]   ;;  %8344 = vst [vmem:[#allocation86_spill] sm:$0xff] %v6741_v18 }
 0x2d4   :  { %8304 = vst [vmem:[#allocation47_spill] sm:$0xff] %v6611_v23  ;;  %v6687_v3 = vld [vmem:[#allocation7 + $0x60] ss:$16 sps:$4 sm:$0xff]  }
 0x2d5   :  { %8329 = vst [vmem:[#allocation71_spill] sm:$0xff] %v6687_v3 }
 0x2d6   :  { %1740 = vmatpush1.bf16.msra.mxu0 %v6587_v24  ;;  %1781 = vmatpush1.bf16.msra.mxu1 %v6589_v1  ;;  %v6613_v24 = vld [vmem:[#allocation9 + $0xa8] ss:$16 sps:$4 sm:$0xff]   ;;  %v6617_v1 = vld [vmem:[#allocation9 + $0xc4] ss:$16 sps:$4 sm:$0xff]  }
 0x2d7   :  { %1741 = vmatprep.subr.bf16.mxu0 %v6593_v43  ;;  %1782 = vmatprep.subr.bf16.mxu1 %v6595_v0  ;;  %8305 = vst [vmem:[#allocation48_spill] sm:$0xff] %v6613_v24  ;;  %8306 = vst [vmem:[#allocation49_spill] sm:$0xff] %v6617_v1  ;;  %v6619_v43 = vld [vmem:[#allocation9 + $0xcc] ss:$16 sps:$4 sm:$0xff]   ;;  %v6623_v0 = vld [vmem:[#allocation9 + $0xc0] ss:$16 sps:$4 sm:$0xff]  }
 0x2d8   :  { %8307 = vst [vmem:[#allocation50_spill] sm:$0xff] %v6619_v43  ;;  %8308 = vst [vmem:[#allocation51_spill] sm:$0xff] %v6623_v0 }
 0x2da   :  { %1742 = vmatpush1.bf16.msra.mxu0 %v6599_v10  ;;  %1783 = vmatpush1.bf16.msra.mxu1 %v6601_v25  ;;  %v6625_v10 = vld [vmem:[#allocation9 + $0xc8] ss:$16 sps:$4 sm:$0xff]   ;;  %v6629_v25 = vld [vmem:[#allocation9 + $0xe4] ss:$16 sps:$4 sm:$0xff]  }
 0x2db   :  { %1743 = vmatprep.subr.bf16.mxu0 %v6605_v57  ;;  %1784 = vmatprep.subr.bf16.mxu1 %v6607_v63  ;;  %8309 = vst [vmem:[#allocation52_spill] sm:$0xff] %v6625_v10  ;;  %8310 = vst [vmem:[#allocation53_spill] sm:$0xff] %v6629_v25  ;;  %v6631_v57 = vld [vmem:[#allocation9 + $0xec] ss:$16 sps:$4 sm:$0xff]   ;;  %v6635_v63 = vld [vmem:[#allocation9 + $0xe0] ss:$16 sps:$4 sm:$0xff]  }
 0x2dc   :  { %8311 = vst [vmem:[#allocation54_spill] sm:$0xff] %v6631_v57  ;;  %8312 = vst [vmem:[#allocation55_spill] sm:$0xff] %v6635_v63 }
 0x2de   :  { %1744 = vmatpush1.bf16.msra.mxu0 %v6611_v23  ;;  %1785 = vmatpush1.bf16.msra.mxu1 %v6613_v24  ;;  %v6637_v23 = vld [vmem:[#allocation9 + $0xe8] ss:$16 sps:$4 sm:$0xff]   ;;  %v6641_v24 = vld [vmem:[#allocation7 + $0x4] ss:$16 sps:$4 sm:$0xff]  }
 0x2df   :  { %1745 = vmatprep.subr.bf16.mxu0 %v6617_v1  ;;  %1786 = vmatprep.subr.bf16.mxu1 %v6619_v43  ;;  %8313 = vst [vmem:[#allocation56_spill] sm:$0xff] %v6637_v23  ;;  %8314 = vst [vmem:[#allocation57_spill] sm:$0xff] %v6641_v24  ;;  %v6643_v1 = vld [vmem:[#allocation7 + $0xc] ss:$16 sps:$4 sm:$0xff]   ;;  %v6647_v43 = vld [vmem:[#allocation7] ss:$16 sps:$4 sm:$0xff]  }
 0x2e0   :  { %8315 = vst [vmem:[#allocation58_spill] sm:$0xff] %v6643_v1  ;;  %8316 = vst [vmem:[#allocation59_spill] sm:$0xff] %v6647_v43 }
 0x2e2   :  { %1746 = vmatpush1.bf16.msra.mxu0 %v6623_v0  ;;  %1787 = vmatpush1.bf16.msra.mxu1 %v6625_v10  ;;  %v6649_v0 = vld [vmem:[#allocation7 + $0x8] ss:$16 sps:$4 sm:$0xff]   ;;  %v6653_v10 = vld [vmem:[#allocation7 + $0x24] ss:$16 sps:$4 sm:$0xff]  }
 0x2e3   :  { %1747 = vmatprep.subr.bf16.mxu0 %v6629_v25  ;;  %1788 = vmatprep.subr.bf16.mxu1 %v6631_v57  ;;  %8317 = vst [vmem:[#allocation60_spill] sm:$0xff] %v6649_v0  ;;  %8318 = vst [vmem:[#allocation61_spill] sm:$0xff] %v6653_v10  ;;  %v6655_v25 = vld [vmem:[#allocation7 + $0x2c] ss:$16 sps:$4 sm:$0xff]   ;;  %v8320_v57 = vmov 0  }
 0x2e4   :  { %8319 = vst [vmem:[#allocation62_spill] sm:$0xff] %v6655_v25 }
 0x2e6   :  { %1748 = vmatpush1.bf16.msra.mxu0 %v6635_v63  ;;  %1789 = vmatpush1.bf16.msra.mxu1 %v6637_v23  ;;  %v6661_v23 = vld [vmem:[#allocation7 + $0x20] ss:$16 sps:$4 sm:$0xff]   ;;  %v6663_v63 = vld [vmem:[#allocation7 + $0x28] ss:$16 sps:$4 sm:$0xff]  }
 0x2e7   :  { %1975 = vmatprep.subr.bf16.mxu0 %v6641_v24  ;;  %2016 = vmatprep.subr.bf16.mxu1 %v6643_v1  ;;  %8321 = vst [vmem:[#allocation63_spill] sm:$0xff] %v6661_v23  ;;  %8322 = vst [vmem:[#allocation64_spill] sm:$0xff] %v6663_v63  ;;  %v6667_v1 = vld [vmem:[#allocation7 + $0x44] ss:$16 sps:$4 sm:$0xff]   ;;  %v6669_v24 = vld [vmem:[#allocation7 + $0x4c] ss:$16 sps:$4 sm:$0xff]  }
 0x2e8   :  { %8323 = vst [vmem:[#allocation65_spill] sm:$0xff] %v6667_v1  ;;  %8324 = vst [vmem:[#allocation66_spill] sm:$0xff] %v6669_v24 }
 0x2e9   :  { %1766 = vmatmul.mubr.bf16.vlgmr.msra.gmra.mrb[28].mxu0 %v8320_v57  ;;  %1807 = vmatmul.mubr.bf16.vlgmr.msra.gmra.mrb[28].mxu1 %v8320_v57 }
 0x2ea   :  { %1976 = vmatpush1.bf16.msra.mxu0 %v6647_v43  ;;  %2017 = vmatpush1.bf16.msra.mxu1 %v6649_v0  ;;  %v6675_v0 = vld [vmem:[#allocation7 + $0x40] ss:$16 sps:$4 sm:$0xff]   ;;  %v6677_v43 = vld [vmem:[#allocation7 + $0x48] ss:$16 sps:$4 sm:$0xff]  }
 0x2eb   :  { %1977 = vmatprep.subr.bf16.mxu0 %v6653_v10  ;;  %2018 = vmatprep.subr.bf16.mxu1 %v6655_v25  ;;  %8325 = vst [vmem:[#allocation67_spill] sm:$0xff] %v6675_v0  ;;  %8326 = vst [vmem:[#allocation68_spill] sm:$0xff] %v6677_v43  ;;  %v6681_v25 = vld [vmem:[#allocation7 + $0x64] ss:$16 sps:$4 sm:$0xff]   ;;  %v6683_v10 = vld [vmem:[#allocation7 + $0x6c] ss:$16 sps:$4 sm:$0xff]  }
 0x2ec   :  { %2007 = vmatprep.mubr.bf16.mxu0 %v8320_v57  ;;  %2048 = vmatprep.mubr.bf16.mxu1 %v8320_v57  ;;  %8327 = vst [vmem:[#allocation69_spill] sm:$0xff] %v6681_v25  ;;  %8328 = vst [vmem:[#allocation70_spill] sm:$0xff] %v6683_v10 }
 0x2ee   :  { %1978 = vmatpush1.bf16.msra.mxu0 %v6661_v23  ;;  %2019 = vmatpush1.bf16.msra.mxu1 %v6663_v63  ;;  %v6689_v23 = vld [vmem:[#allocation7 + $0x68] ss:$16 sps:$4 sm:$0xff]   ;;  %v6693_v63 = vld [vmem:[#allocation7 + $0x84] ss:$16 sps:$4 sm:$0xff]  }
 0x2ef   :  { %1979 = vmatprep.subr.bf16.mxu0 %v6667_v1  ;;  %2020 = vmatprep.subr.bf16.mxu1 %v6669_v24  ;;  %8330 = vst [vmem:[#allocation72_spill] sm:$0xff] %v6689_v23  ;;  %8331 = vst [vmem:[#allocation73_spill] sm:$0xff] %v6693_v63  ;;  %v6695_v1 = vld [vmem:[#allocation7 + $0x8c] ss:$16 sps:$4 sm:$0xff]   ;;  %v6699_v24 = vld [vmem:[#allocation7 + $0x80] ss:$16 sps:$4 sm:$0xff]  }
 0x2f0   :  { %8332 = vst [vmem:[#allocation74_spill] sm:$0xff] %v6695_v1  ;;  %8333 = vst [vmem:[#allocation75_spill] sm:$0xff] %v6699_v24 }
 0x2f2   :  { %1980 = vmatpush1.bf16.msra.mxu0 %v6675_v0  ;;  %2021 = vmatpush1.bf16.msra.mxu1 %v6677_v43  ;;  %v6701_v0 = vld [vmem:[#allocation7 + $0x88] ss:$16 sps:$4 sm:$0xff]   ;;  %v6705_v43 = vld [vmem:[#allocation7 + $0xa4] ss:$16 sps:$4 sm:$0xff]  }
 0x2f3   :  { %1981 = vmatprep.subr.bf16.mxu0 %v6681_v25  ;;  %2022 = vmatprep.subr.bf16.mxu1 %v6683_v10  ;;  %8334 = vst [vmem:[#allocation76_spill] sm:$0xff] %v6701_v0  ;;  %8335 = vst [vmem:[#allocation77_spill] sm:$0xff] %v6705_v43  ;;  %v6707_v25 = vld [vmem:[#allocation7 + $0xac] ss:$16 sps:$4 sm:$0xff]   ;;  %v6711_v10 = vld [vmem:[#allocation7 + $0xa0] ss:$16 sps:$4 sm:$0xff]  }
 0x2f4   :  { %8336 = vst [vmem:[#allocation78_spill] sm:$0xff] %v6707_v25  ;;  %8337 = vst [vmem:[#allocation79_spill] sm:$0xff] %v6711_v10 }
 0x2f6   :  { %1982 = vmatpush1.bf16.msra.mxu0 %v6687_v3  ;;  %2023 = vmatpush1.bf16.msra.mxu1 %v6689_v23  ;;  %v6713_v3 = vld [vmem:[#allocation7 + $0xa8] ss:$16 sps:$4 sm:$0xff]   ;;  %v6717_v23 = vld [vmem:[#allocation7 + $0xc4] ss:$16 sps:$4 sm:$0xff]  }
 0x2f7   :  { %1983 = vmatprep.subr.bf16.mxu0 %v6693_v63  ;;  %2024 = vmatprep.subr.bf16.mxu1 %v6695_v1  ;;  %8338 = vst [vmem:[#allocation80_spill] sm:$0xff] %v6713_v3  ;;  %8339 = vst [vmem:[#allocation81_spill] sm:$0xff] %v6717_v23  ;;  %v6719_v63 = vld [vmem:[#allocation7 + $0xcc] ss:$16 sps:$4 sm:$0xff]   ;;  %v6723_v1 = vld [vmem:[#allocation7 + $0xc0] ss:$16 sps:$4 sm:$0xff]  }
 0x2f8   :  { %8340 = vst [vmem:[#allocation82_spill] sm:$0xff] %v6719_v63  ;;  %8341 = vst [vmem:[#allocation83_spill] sm:$0xff] %v6723_v1 }
 0x2fa   :  { %1984 = vmatpush1.bf16.msra.mxu0 %v6699_v24  ;;  %2025 = vmatpush1.bf16.msra.mxu1 %v6701_v0  ;;  %v6725_v24 = vld [vmem:[#allocation7 + $0xc8] ss:$16 sps:$4 sm:$0xff]   ;;  %v6729_v0 = vld [vmem:[#allocation7 + $0xe4] ss:$16 sps:$4 sm:$0xff]  }
 0x2fb   :  { %1985 = vmatprep.subr.bf16.mxu0 %v6705_v43  ;;  %2026 = vmatprep.subr.bf16.mxu1 %v6707_v25  ;;  %8342 = vst [vmem:[#allocation84_spill] sm:$0xff] %v6725_v24  ;;  %v6731_v43 = vld [vmem:[#allocation7 + $0xec] ss:$16 sps:$4 sm:$0xff]   ;;  %v6735_v25 = vld [vmem:[#allocation7 + $0xe0] ss:$16 sps:$4 sm:$0xff]  }
 0x2fe   :  { %1986 = vmatpush1.bf16.msra.mxu0 %v6711_v10  ;;  %2027 = vmatpush1.bf16.msra.mxu1 %v6713_v3  ;;  %v6737_v10 = vld [vmem:[#allocation7 + $0xe8] ss:$16 sps:$4 sm:$0xff]   ;;  %v6739_v3 = vpop.f32.mrb[12].mxu0 }
 0x2ff   :  { %1987 = vmatprep.subr.bf16.mxu0 %v6717_v23  ;;  %2028 = vmatprep.subr.bf16.mxu1 %v6719_v63  ;;  %8343 = vst [vmem:[#allocation85_spill] sm:$0xff] %v6739_v3  ;;  %v6745_v63 = vpop.f32.mrb[13].mxu0  ;;  %v6747_v23 = vpop.f32.mrb[13].mxu1 }
 0x300   :  { %8345 = vst [vmem:[#allocation87_spill] sm:$0xff] %v6745_v63  ;;  %8346 = vst [vmem:[#allocation88_spill] sm:$0xff] %v6747_v23  ;;  %v6749_v17 = vpop.f32.mrb[14].mxu0 }
 0x301   :  { %8347 = vst [vmem:[#allocation89_spill] sm:$0xff] %v6749_v17 }
 0x302   :  { %1988 = vmatpush1.bf16.msra.mxu0 %v6723_v1  ;;  %2029 = vmatpush1.bf16.msra.mxu1 %v6725_v24  ;;  %v6751_v1 = vpop.f32.mrb[14].mxu1  ;;  %v6753_v24 = vpop.f32.mrb[15].mxu0 }
 0x303   :  { %1989 = vmatprep.subr.bf16.mxu0 %v6729_v0  ;;  %2030 = vmatprep.subr.bf16.mxu1 %v6731_v43  ;;  %8348 = vst [vmem:[#allocation90_spill] sm:$0xff] %v6751_v1  ;;  %8349 = vst [vmem:[#allocation91_spill] sm:$0xff] %v6753_v24  ;;  %v6755_v62 = vpop.f32.mrb[15].mxu1  ;;  %v6763_v23 = vpop.f32.mrb[16].mxu0 }
 0x304   :  { %8350 = vst [vmem:[#allocation92_spill] sm:$0xff] %v6755_v62  ;;  %8351 = vst [vmem:[#allocation93_spill] sm:$0xff] %v6763_v23  ;;  %v6765_v17 = vpop.f32.mrb[16].mxu1  ;;  %v6769_v62 = vpop.f32.mrb[17].mxu0 }
 0x305   :  { %8352 = vst [vmem:[#allocation94_spill] sm:$0xff] %v6765_v17  ;;  %8353 = vst [vmem:[#allocation95_spill] sm:$0xff] %v6769_v62  ;;  %v6771_v24 = vpop.f32.mrb[17].mxu1  ;;  %v6775_v1 = vpop.f32.mrb[18].mxu0 }
 0x306   :  { %1990 = vmatpush1.bf16.msra.mxu0 %v6735_v25  ;;  %2031 = vmatpush1.bf16.msra.mxu1 %v6737_v10  ;;  %8354 = vst [vmem:[#allocation96_spill] sm:$0xff] %v6771_v24  ;;  %8355 = vst [vmem:[#allocation97_spill] sm:$0xff] %v6775_v1  ;;  %v6777_v63 = vpop.f32.mrb[18].mxu1 }
 0x307   :  { %2098 = vmatprep.subr.bf16.mxu0 %v6382_v6  ;;  %2139 = vmatprep.subr.bf16.mxu1 %v6384_v7  ;;  %8356 = vst [vmem:[#allocation98_spill] sm:$0xff] %v6777_v63  ;;  %v6783_v17 = vpop.f32.mrb[19].mxu1 }
 0x308   :  { %8358 = vst [vmem:[#allocation100_spill] sm:$0xff] %v6783_v17  ;;  %v6791_v1 = vpop.f32.mrb[20].mxu1 }
 0x309   :  { %2008 = vmatmul.mubr.bf16.vlgmr.msra.gmra.mrb[32].mxu0 %v6551_v54  ;;  %2049 = vmatmul.mubr.bf16.vlgmr.msra.gmra.mrb[32].mxu1 %v6551_v54  ;;  %v6781_v54 = vpop.f32.mrb[19].mxu0  ;;  %8360 = vst [vmem:[#allocation102_spill] sm:$0xff] %v6791_v1 }
 0x30a   :  { %2099 = vmatpush1.bf16.msra.mxu0 %v6386_v8  ;;  %2140 = vmatpush1.bf16.msra.mxu1 %v6388_v9  ;;  %8357 = vst [vmem:[#allocation99_spill] sm:$0xff] %v6781_v54  ;;  %v6789_v24 = vpop.f32.mrb[20].mxu0  ;;  %v6797_v54 = vpop.f32.mrb[21].mxu1 }
 0x30b   :  { %2100 = vmatprep.subr.bf16.mxu0 %v6400_v12  ;;  %2141 = vmatprep.subr.bf16.mxu1 %v6402_v13  ;;  %8359 = vst [vmem:[#allocation101_spill] sm:$0xff] %v6789_v24  ;;  %v6795_v63 = vpop.f32.mrb[21].mxu0  ;;  %8362 = vst [vmem:[#allocation104_spill] sm:$0xff] %v6797_v54  ;;  %v6803_v62 = vpop.f32.mrb[22].mxu1 }
 0x30c   :  { %2130 = vmatprep.mubr.bf16.mxu0 %v8320_v57  ;;  %2171 = vmatprep.mubr.bf16.mxu1 %v8320_v57  ;;  %8361 = vst [vmem:[#allocation103_spill] sm:$0xff] %v6795_v63  ;;  %v6801_v17 = vpop.f32.mrb[22].mxu0  ;;  %8364 = vst [vmem:[#allocation106_spill] sm:$0xff] %v6803_v62  ;;  %v6807_v24 = vpop.f32.mrb[23].mxu1  ;;  %v1085_v62 = vadd.f32 %v6380_v5, %v6518_v11 }
 0x30d   :  { %8363 = vst [vmem:[#allocation105_spill] sm:$0xff] %v6801_v17  ;;  %v6805_v23 = vpop.f32.mrb[23].mxu0  ;;  %8366 = vst [vmem:[#allocation108_spill] sm:$0xff] %v6807_v24  ;;  %v1083_v24 = vadd.f32 %v6378_v4, %v6522_v14  ;;  %v1158_v17 = vadd.f32 %v6542_v58, %v6536_v39 }
 0x30e   :  { %2101 = vmatpush1.bf16.msra.mxu0 %v6404_v15  ;;  %2142 = vmatpush1.bf16.msra.mxu1 %v6406_v16  ;;  %8365 = vst [vmem:[#allocation107_spill] sm:$0xff] %v6805_v23  ;;  %v1156_v23 = vadd.f32 %v6540_v55, %v6532_v32 }
 0x30f   :  { %2102 = vmatprep.subr.bf16.mxu0 %v6412_v19  ;;  %2143 = vmatprep.subr.bf16.mxu1 %v6414_v20 }
 0x312   :  { %2103 = vmatpush1.bf16.msra.mxu0 %v6416_v21  ;;  %2144 = vmatpush1.bf16.msra.mxu1 %v6418_v22 }
 0x313   :  { %2104 = vmatprep.subr.bf16.mxu0 %v6430_v26  ;;  %2145 = vmatprep.subr.bf16.mxu1 %v6432_v27 }
 0x316   :  { %2105 = vmatpush1.bf16.msra.mxu0 %v6436_v29  ;;  %2146 = vmatpush1.bf16.msra.mxu1 %v6438_v30 }
 0x317   :  { %2106 = vmatprep.subr.bf16.mxu0 %v6444_v33  ;;  %2147 = vmatprep.subr.bf16.mxu1 %v6446_v34 }
 0x31a   :  { %2107 = vmatpush1.bf16.msra.mxu0 %v6448_v35  ;;  %2148 = vmatpush1.bf16.msra.mxu1 %v6450_v36 }
 0x31b   :  { %2108 = vmatprep.subr.bf16.mxu0 %v6456_v37  ;;  %2149 = vmatprep.subr.bf16.mxu1 %v6458_v38 }
 0x31e   :  { %2109 = vmatpush1.bf16.msra.mxu0 %v6462_v40  ;;  %2150 = vmatpush1.bf16.msra.mxu1 %v6464_v41 }
 0x31f   :  { %2110 = vmatprep.subr.bf16.mxu0 %v6470_v44  ;;  %2151 = vmatprep.subr.bf16.mxu1 %v6472_v45 }
 0x322   :  { %2111 = vmatpush1.bf16.msra.mxu0 %v6474_v46  ;;  %2152 = vmatpush1.bf16.msra.mxu1 %v6476_v47 }
 0x323   :  { %2112 = vmatprep.subr.bf16.mxu0 %v6482_v48  ;;  %2153 = vmatprep.subr.bf16.mxu1 %v6484_v49 }
 0x326   :  { %2113 = vmatpush1.bf16.msra.mxu0 %v6488_v50  ;;  %2154 = vmatpush1.bf16.msra.mxu1 %v6490_v51 }
 0x327   :  { %2185 = vmatprep.subr.bf16.mxu0 %v6496_v52  ;;  %2226 = vmatprep.subr.bf16.mxu1 %v6498_v53 }
 0x39c   :  { %v1521_v54 = vpop.f32.mrb[24].mxu0  ;;  %v1562_v63 = vpop.f32.mrb[24].mxu1 }
 0x39d   :  { %v1569_v1 = vadd.f32 %v1521_v54, %v1083_v24  ;;  %v1571_v18 = vadd.f32 %v1562_v63, %v1156_v23  ;;  %v1523_v3 = vpop.f32.mrb[25].mxu0  ;;  %v1564_v52 = vpop.f32.mrb[25].mxu1 }
 0x39e   :  { %v1570_v51 = vadd.f32 %v1523_v3, %v1085_v62  ;;  %v1572_v53 = vadd.f32 %v1564_v52, %v1158_v17  ;;  %v1525_v50 = vpop.f32.mrb[26].mxu0  ;;  %v1566_v49 = vpop.f32.mrb[26].mxu1 }
 0x39f   :  { %v2061_v4 = vmul.f32 0.5, %v1569_v1  ;;  %v1526_v14 = vpop.f32.mrb[27].mxu0  ;;  %v1567_v48 = vpop.f32.mrb[27].mxu1 }
 0x3a0   :  { %v2065_v55 = vmul.f32 0.5, %v1570_v51  ;;  %v2070_v5 = vmul.f32 0.5, %v1572_v53 }
 0x3a1   :  { %5394 = vtanh.f32 %v2061_v4 }
 0x3a2   :  { %5396 = vtanh.f32 %v2065_v55  ;;  %v8368_v55 = vld [vmem:[#allocation35_spill] sm:$0xff] }
 0x3a3   :  { %5398 = vtanh.f32 %v1571_v18 }
 0x3a4   :  { %5400 = vtanh.f32 %v2070_v5  ;;  %v8369_v5 = vld [vmem:[#allocation36_spill] sm:$0xff] }
 0x3ab   :  { %v5395_v11 = vpop.eup %5394 }
 0x3ac   :  { %v5397_v58 = vpop.eup %5396  ;;  %v2063_v39 = vadd.f32 1.0, %v5395_v11 }
 0x3ad   :  { %v2067_v32 = vadd.f32 1.0, %v5397_v58  ;;  %v5399_v23 = vpop.eup %5398  ;;  %v8370_v58 = vld [vmem:[#allocation37_spill] sm:$0xff] }
 0x3ae   :  { %v2064_v63 = vmul.f32 0.5, %v2063_v39  ;;  %v5401_v48 = vpop.eup %5400 }
 0x3af   :  { %v2068_v24 = vmul.f32 0.5, %v2067_v32  ;;  %v2072_v51 = vadd.f32 1.0, %v5401_v48  ;;  %v8376_v48 = vld [vmem:[#allocation43_spill] sm:$0xff] }
 0x3b0   :  { %v2075_v62 = vmul.f32 %v5399_v23, %v2064_v63  ;;  %v8371_v63 = vld [vmem:[#allocation38_spill] sm:$0xff]  ;;  %v8372_v23 = vld [vmem:[#allocation39_spill] sm:$0xff] }
 0x3b1   :  { %v2074_v50 = vmul.f32 %v2068_v24, %v6544_v61  ;;  %v2073_v18 = vmul.f32 0.5, %v2072_v51  ;;  %v8367_v61 = vld [vmem:[#allocation34_spill] sm:$0xff]  ;;  %v8373_v24 = vld [vmem:[#allocation40_spill] sm:$0xff] }
 0x3b2   :  { %v8377_v51 = vld [vmem:[#allocation44_spill] sm:$0xff] }
 0x3b3   :  { %v6838_v49 = vadd.f32 %v2075_v62, %v2074_v50  ;;  %v8374_v62 = vld [vmem:[#allocation41_spill] sm:$0xff]  ;;  %v8375_v50 = vld [vmem:[#allocation42_spill] sm:$0xff] }
 0x3b5   :  { %5402 = vtanh.f32 %v6838_v49 }
 0x3bc   :  { %v1767_v52 = vpop.f32.mrb[28].mxu0  ;;  %v1808_v14 = vpop.f32.mrb[28].mxu1 }
 0x3bd   :  { %v1769_v53 = vpop.f32.mrb[29].mxu0  ;;  %v1810_v17 = vpop.f32.mrb[29].mxu1 }
 0x3be   :  { %v1771_v11 = vpop.f32.mrb[30].mxu0  ;;  %v1812_v3 = vpop.f32.mrb[30].mxu1 }
 0x3bf   :  { %v5403_v1 = vpop.eup %5402  ;;  %v1772_v39 = vpop.f32.mrb[31].mxu0  ;;  %v8379_v11 = vld [vmem:[#allocation46_spill] sm:$0xff]  ;;  %v1286_v3 = vld [vmem:[%s8011_s11] sm:$0xf] }
 0x3c0   :  { %v1813_v54 = vpop.f32.mrb[31].mxu1  ;;  %v2078_v32 = vmul.f32 %v5403_v1, %v2073_v18  ;;  %v8378_v18 = vld [vmem:[#allocation45_spill] sm:$0xff]  ;;  %v8380_v1 = vld [vmem:[#allocation47_spill] sm:$0xff]  ;;  %v8381_v39 = vld [vmem:[#allocation48_spill] sm:$0xff] }
 0x3c1   :  { %v8382_v54 = vld [vmem:[#allocation49_spill] sm:$0xff] }
 0x3c2   :  { %v6841_v4 = vpack.c.bf16 %v2078_v32, %v2078_v32  ;;  %v8383_v32 = vld [vmem:[#allocation50_spill] sm:$0xff] }
 0x3c4   :  { %2131 = vmatmul.mubr.bf16.vlgmr.msra.gmra.mrb[36].mxu0 %v6841_v4  ;;  %2172 = vmatmul.mubr.bf16.vlgmr.msra.gmra.mrb[36].mxu1 %v6841_v4 }
 0x3c5   :  { %2186 = vmatpush1.bf16.msra.mxu0 %v6547_v2  ;;  %2227 = vmatpush1.bf16.msra.mxu1 %v6549_v42 }
 0x3c6   :  { %2187 = vmatprep.subr.bf16.mxu0 %v6553_v56  ;;  %2228 = vmatprep.subr.bf16.mxu1 %v6555_v59 }
 0x3c7   :  { %2217 = vmatprep.mubr.bf16.mxu0 %v8320_v57  ;;  %2258 = vmatprep.mubr.bf16.mxu1 %v8320_v57 }
 0x3c9   :  { %2188 = vmatpush1.bf16.msra.mxu0 %v6561_v60  ;;  %2229 = vmatpush1.bf16.msra.mxu1 %v6563_v28 }
 0x3ca   :  { %2189 = vmatprep.subr.bf16.mxu0 %v6567_v31  ;;  %2230 = vmatprep.subr.bf16.mxu1 %v8367_v61  ;;  %v8392_v31 = vld [vmem:[#allocation54_spill] sm:$0xff] }
 0x3cd   :  { %2190 = vmatpush1.bf16.msra.mxu0 %v8368_v55  ;;  %2231 = vmatpush1.bf16.msra.mxu1 %v8369_v5  ;;  %v8389_v5 = vld [vmem:[#allocation51_spill] sm:$0xff] }
 0x3ce   :  { %2191 = vmatprep.subr.bf16.mxu0 %v8370_v58  ;;  %2232 = vmatprep.subr.bf16.mxu1 %v8371_v63 }
 0x3d1   :  { %2192 = vmatpush1.bf16.msra.mxu0 %v8372_v23  ;;  %2233 = vmatpush1.bf16.msra.mxu1 %v8373_v24 }
 0x3d2   :  { %2193 = vmatprep.subr.bf16.mxu0 %v8374_v62  ;;  %2234 = vmatprep.subr.bf16.mxu1 %v8375_v50  ;;  %v8384_v50 = vld [vmem:[#allocation27_spill] sm:$0xff] }
 0x3d5   :  { %2194 = vmatpush1.bf16.msra.mxu0 %v8376_v48  ;;  %2235 = vmatpush1.bf16.msra.mxu1 %v8377_v51  ;;  %v8385_v48 = vsub.s32 0, %v8384_v50 }
 0x3d6   :  { %2195 = vmatprep.subr.bf16.mxu0 %v8378_v18  ;;  %2236 = vmatprep.subr.bf16.mxu1 %v8379_v11  ;;  %v8387_v11 = vsub.s32 1, %v8384_v50 }
 0x3d7   :  { %v6876_v62 = vrot.slane %v1286_v3, %v8385_v48  ;;  %v8391_v48 = vld [vmem:[#allocation53_spill] sm:$0xff] }
 0x3d8   :  { %v6880_v24 = vrot.slane %v1286_v3, %v8387_v11  ;;  %v8393_v11 = vsub.s32 2, %v8384_v50 }
 0x3d9   :  { %2196 = vmatpush1.bf16.msra.mxu0 %v8380_v1  ;;  %2237 = vmatpush1.bf16.msra.mxu1 %v8381_v39  ;;  %8386 = vst [vmem:[#allocation27_spill] sm:$0xff] %v6876_v62  ;;  %v8390_v39 = vld [vmem:[#allocation52_spill] sm:$0xff] }
 0x3da   :  { %2197 = vmatprep.subr.bf16.mxu0 %v8382_v54  ;;  %2238 = vmatprep.subr.bf16.mxu1 %v8383_v32  ;;  %8388 = vst [vmem:[#allocation109_spill] sm:$0xff] %v6880_v24 }
 0x3dc   :  { %v2009_v51 = vpop.f32.mrb[32].mxu0  ;;  %v2050_v18 = vpop.f32.mrb[32].mxu1 }
 0x3dd   :  { %v2010_v23 = vadd.f32 %v2009_v51, %v1767_v52  ;;  %v2051_v63 = vadd.f32 %v2050_v18, %v1808_v14  ;;  %v2011_v58 = vpop.f32.mrb[33].mxu0  ;;  %v2052_v1 = vpop.f32.mrb[33].mxu1  ;;  %2198 = vmatpush1.bf16.msra.mxu0 %v8389_v5  ;;  %2239 = vmatpush1.bf16.msra.mxu1 %v8390_v39  ;;  %v6889_v52 = vrot.slane %v1286_v3, %v8393_v11  ;;  %v8394_v39 = vld [vmem:[#allocation55_spill] sm:$0xff] }
 0x3de   :  { %v2012_v54 = vadd.f32 %v2011_v58, %v1769_v53  ;;  %v2053_v32 = vadd.f32 %v2052_v1, %v1810_v17  ;;  %v2013_v55 = vpop.f32.mrb[34].mxu0  ;;  %v2054_v61 = vpop.f32.mrb[34].mxu1  ;;  %2199 = vmatprep.subr.bf16.mxu0 %v8391_v48  ;;  %2240 = vmatprep.subr.bf16.mxu1 %v8392_v31  ;;  %v8395_v53 = vld [vmem:[#allocation56_spill] sm:$0xff] }
 0x3df   :  { %v2057_v28 = vadd.f32 %v2010_v23, %v6876_v62  ;;  %v2014_v14 = vpop.f32.mrb[35].mxu0  ;;  %v2055_v51 = vpop.f32.mrb[35].mxu1  ;;  %v8396_v61 = vld [vmem:[#allocation57_spill] sm:$0xff]  ;;  %v8397_v55 = vld [vmem:[#allocation58_spill] sm:$0xff]  ;;  %v2059_v58 = vadd.f32 %v2051_v63, %v6889_v52  ;;  %v8398_v23 = vsub.s32 3, %v8384_v50 }
 0x3e0   :  { %v2058_v18 = vadd.f32 %v2012_v54, %v6880_v24 }
 0x3e1   :  { %v2079_v5 = vmul.f32 0.5, %v2057_v28  ;;  %2200 = vmatpush1.bf16.msra.mxu0 %v8394_v39  ;;  %2241 = vmatpush1.bf16.msra.mxu1 %v8395_v53  ;;  %v6899_v1 = vrot.slane %v1286_v3, %v8398_v23 }
 0x3e2   :  { %v2083_v17 = vmul.f32 0.5, %v2058_v18  ;;  %2267 = vmatprep.subr.bf16.mxu0 %v8396_v61  ;;  %2308 = vmatprep.subr.bf16.mxu1 %v8397_v55 }
 0x3e3   :  { %5404 = vtanh.f32 %v2079_v5  ;;  %v2060_v28 = vadd.f32 %v2053_v32, %v6899_v1 }
 0x3e4   :  { %5406 = vtanh.f32 %v2083_v17 }
 0x3e5   :  { %5408 = vtanh.f32 %v2059_v58  ;;  %v2088_v54 = vmul.f32 0.5, %v2060_v28  ;;  %v8399_v28 = vld [vmem:[#allocation59_spill] sm:$0xff] }
 0x3e7   :  { %5410 = vtanh.f32 %v2088_v54  ;;  %v8400_v54 = vld [vmem:[#allocation60_spill] sm:$0xff] }
 0x3ed   :  { %v5405_v11 = vpop.eup %5404 }
 0x3ee   :  { %v5407_v14 = vpop.eup %5406  ;;  %v2081_v51 = vadd.f32 1.0, %v5405_v11  ;;  %v8401_v11 = vld [vmem:[#allocation61_spill] sm:$0xff] }
 0x3ef   :  { %v2085_v18 = vadd.f32 1.0, %v5407_v14  ;;  %v5409_v62 = vpop.eup %5408  ;;  %v8406_v14 = vld [vmem:[#allocation66_spill] sm:$0xff] }
 0x3f0   :  { %v2082_v24 = vmul.f32 0.5, %v2081_v51  ;;  %v8407_v51 = vld [vmem:[#allocation67_spill] sm:$0xff] }
 0x3f1   :  { %v2086_v55 = vmul.f32 0.5, %v2085_v18  ;;  %v5411_v50 = vpop.eup %5410  ;;  %v8408_v18 = vld [vmem:[#allocation68_spill] sm:$0xff] }
 0x3f2   :  { %v2093_v5 = vmul.f32 %v5409_v62, %v2082_v24  ;;  %v2090_v3 = vadd.f32 1.0, %v5411_v50  ;;  %v8402_v24 = vld [vmem:[#allocation62_spill] sm:$0xff]  ;;  %v8403_v62 = vld [vmem:[#allocation63_spill] sm:$0xff] }
 0x3f3   :  { %v2092_v61 = vmul.f32 0.0, %v2086_v55  ;;  %v8405_v55 = vld [vmem:[#allocation65_spill] sm:$0xff]  ;;  %v8410_v50 = vld [vmem:[#allocation70_spill] sm:$0xff] }
 0x3f4   :  { %v2091_v17 = vmul.f32 0.5, %v2090_v3  ;;  %v8411_v3 = vld [vmem:[#allocation71_spill] sm:$0xff] }
 0x3f5   :  { %v6902_v63 = vadd.f32 %v2093_v5, %v2092_v61  ;;  %v8404_v61 = vld [vmem:[#allocation64_spill] sm:$0xff]  ;;  %v8409_v5 = vld [vmem:[#allocation69_spill] sm:$0xff] }
 0x3f7   :  { %5412 = vtanh.f32 %v6902_v63 }
 0x401   :  { %v5413_v58 = vpop.eup %5412 }
 0x402   :  { %v2096_v32 = vmul.f32 %v5413_v58, %v2091_v17  ;;  %v8412_v17 = vld [vmem:[#allocation72_spill] sm:$0xff]  ;;  %v8413_v58 = vld [vmem:[#allocation73_spill] sm:$0xff] }
 0x404   :  { %v2184_v23 = vpack.c.bf16 %v2096_v32, %v2096_v32  ;;  %v8414_v32 = vld [vmem:[#allocation74_spill] sm:$0xff] }
 0x406   :  { %2218 = vmatmul.mubr.bf16.vlgmr.msra.gmra.mrb[40].mxu0 %v2184_v23  ;;  %2259 = vmatmul.mubr.bf16.vlgmr.msra.gmra.mrb[40].mxu1 %v2184_v23  ;;  %v8415_v23 = vld [vmem:[#allocation75_spill] sm:$0xff] }
 0x407   :  { %2268 = vmatpush1.bf16.msra.mxu0 %v8399_v28  ;;  %2309 = vmatpush1.bf16.msra.mxu1 %v8400_v54 }
 0x408   :  { %2269 = vmatprep.subr.bf16.mxu0 %v8401_v11  ;;  %2310 = vmatprep.subr.bf16.mxu1 %v8402_v24 }
 0x409   :  { %2299 = vmatprep.mubr.bf16.mxu0 %v8320_v57  ;;  %2340 = vmatprep.mubr.bf16.mxu1 %v8320_v57 }
 0x40b   :  { %2270 = vmatpush1.bf16.msra.mxu0 %v8403_v62  ;;  %2311 = vmatpush1.bf16.msra.mxu1 %v8404_v61 }
 0x40c   :  { %2271 = vmatprep.subr.bf16.mxu0 %v8405_v55  ;;  %2312 = vmatprep.subr.bf16.mxu1 %v8406_v14  ;;  %v8416_v55 = vld [vmem:[#allocation76_spill] sm:$0xff]  ;;  %v8417_v14 = vld [vmem:[#allocation77_spill] sm:$0xff] }
 0x40f   :  { %2272 = vmatpush1.bf16.msra.mxu0 %v8407_v51  ;;  %2313 = vmatpush1.bf16.msra.mxu1 %v8408_v18  ;;  %v8418_v51 = vld [vmem:[#allocation78_spill] sm:$0xff]  ;;  %v8419_v18 = vld [vmem:[#allocation79_spill] sm:$0xff] }
 0x410   :  { %2273 = vmatprep.subr.bf16.mxu0 %v8409_v5  ;;  %2314 = vmatprep.subr.bf16.mxu1 %v8410_v50  ;;  %v8420_v5 = vld [vmem:[#allocation80_spill] sm:$0xff]  ;;  %v8421_v50 = vld [vmem:[#allocation81_spill] sm:$0xff] }
 0x413   :  { %2274 = vmatpush1.bf16.msra.mxu0 %v8411_v3  ;;  %2315 = vmatpush1.bf16.msra.mxu1 %v8412_v17  ;;  %v8422_v3 = vld [vmem:[#allocation82_spill] sm:$0xff]  ;;  %v8423_v17 = vld [vmem:[#allocation83_spill] sm:$0xff] }
 0x414   :  { %2275 = vmatprep.subr.bf16.mxu0 %v8413_v58  ;;  %2316 = vmatprep.subr.bf16.mxu1 %v8414_v32  ;;  %v8424_v58 = vld [vmem:[#allocation84_spill] sm:$0xff] }
 0x417   :  { %2276 = vmatpush1.bf16.msra.mxu0 %v8415_v23  ;;  %2317 = vmatpush1.bf16.msra.mxu1 %v8416_v55 }
 0x418   :  { %2277 = vmatprep.subr.bf16.mxu0 %v8417_v14  ;;  %2318 = vmatprep.subr.bf16.mxu1 %v8418_v51 }
 0x41b   :  { %2278 = vmatpush1.bf16.msra.mxu0 %v8419_v18  ;;  %2319 = vmatpush1.bf16.msra.mxu1 %v8420_v5 }
 0x41c   :  { %2279 = vmatprep.subr.bf16.mxu0 %v8421_v50  ;;  %2320 = vmatprep.subr.bf16.mxu1 %v8422_v3 }
 0x41f   :  { %2280 = vmatpush1.bf16.msra.mxu0 %v8423_v17  ;;  %2321 = vmatpush1.bf16.msra.mxu1 %v8424_v58 }
 0x420   :  { %2281 = vmatprep.subr.bf16.mxu0 %v6729_v0  ;;  %2322 = vmatprep.subr.bf16.mxu1 %v6731_v43 }
 0x423   :  { %2282 = vmatpush1.bf16.msra.mxu0 %v6735_v25  ;;  %2323 = vmatpush1.bf16.msra.mxu1 %v6737_v10 }
 0x424   :  { %2390 = vmatprep.subr.bf16.mxu0 %v6382_v6  ;;  %2431 = vmatprep.subr.bf16.mxu1 %v6384_v7  ;;  %v8425_v6 = vld [vmem:[#allocation20_spill] sm:$0xff]  ;;  %v8426_v7 = vld [vmem:[#allocation21_spill] sm:$0xff] }
 0x426   :  { %2300 = vmatmul.mubr.bf16.vlgmr.msra.gmra.mrb[44].mxu0 %v6841_v4  ;;  %2341 = vmatmul.mubr.bf16.vlgmr.msra.gmra.mrb[44].mxu1 %v6841_v4 }
 0x427   :  { %2391 = vmatpush1.bf16.msra.mxu0 %v6386_v8  ;;  %2432 = vmatpush1.bf16.msra.mxu1 %v6388_v9  ;;  %v8427_v8 = vld [vmem:[#allocation22_spill] sm:$0xff]  ;;  %v8428_v9 = vld [vmem:[#allocation23_spill] sm:$0xff] }
 0x428   :  { %2392 = vmatprep.subr.bf16.mxu0 %v6400_v12  ;;  %2433 = vmatprep.subr.bf16.mxu1 %v6402_v13  ;;  %v8429_v12 = vld [vmem:[#allocation24_spill] sm:$0xff]  ;;  %v8430_v13 = vld [vmem:[#allocation25_spill] sm:$0xff] }
 0x429   :  { %2422 = vmatprep.mubr.bf16.mxu0 %v8320_v57  ;;  %2463 = vmatprep.mubr.bf16.mxu1 %v8320_v57 }
 0x42b   :  { %2393 = vmatpush1.bf16.msra.mxu0 %v6404_v15  ;;  %2434 = vmatpush1.bf16.msra.mxu1 %v6406_v16  ;;  %v8431_v15 = vld [vmem:[#allocation29_spill] sm:$0xff] }
 0x42c   :  { %2394 = vmatprep.subr.bf16.mxu0 %v6412_v19  ;;  %2435 = vmatprep.subr.bf16.mxu1 %v6414_v20  ;;  %v8432_v16 = vld [vmem:[#allocation85_spill] sm:$0xff]  ;;  %v8433_v20 = vld [vmem:[#allocation30_spill] sm:$0xff] }
 0x42d   :  { %v1089_v19 = vadd.f32 %v8432_v16, %v8431_v15 }
 0x42f   :  { %2395 = vmatpush1.bf16.msra.mxu0 %v6416_v21  ;;  %2436 = vmatpush1.bf16.msra.mxu1 %v6418_v22  ;;  %v8434_v21 = vld [vmem:[#allocation86_spill] sm:$0xff] }
 0x430   :  { %2396 = vmatprep.subr.bf16.mxu0 %v6430_v26  ;;  %2437 = vmatprep.subr.bf16.mxu1 %v6432_v27  ;;  %v1162_v22 = vadd.f32 %v8434_v21, %v8433_v20  ;;  %v8435_v26 = vld [vmem:[#allocation28_spill] sm:$0xff]  ;;  %v8436_v27 = vld [vmem:[#allocation87_spill] sm:$0xff] }
 0x433   :  { %2397 = vmatpush1.bf16.msra.mxu0 %v6436_v29  ;;  %2438 = vmatpush1.bf16.msra.mxu1 %v6438_v30  ;;  %v1091_v29 = vadd.f32 %v8436_v27, %v8435_v26  ;;  %v8437_v30 = vld [vmem:[#allocation31_spill] sm:$0xff] }
 0x434   :  { %2398 = vmatprep.subr.bf16.mxu0 %v6444_v33  ;;  %2439 = vmatprep.subr.bf16.mxu1 %v6446_v34  ;;  %v8438_v33 = vld [vmem:[#allocation88_spill] sm:$0xff] }
 0x435   :  { %v1164_v34 = vadd.f32 %v8438_v33, %v8437_v30 }
 0x437   :  { %2399 = vmatpush1.bf16.msra.mxu0 %v6448_v35  ;;  %2440 = vmatpush1.bf16.msra.mxu1 %v6450_v36 }
 0x438   :  { %2400 = vmatprep.subr.bf16.mxu0 %v6456_v37  ;;  %2441 = vmatprep.subr.bf16.mxu1 %v6458_v38 }
 0x43b   :  { %2401 = vmatpush1.bf16.msra.mxu0 %v6462_v40  ;;  %2442 = vmatpush1.bf16.msra.mxu1 %v6464_v41 }
 0x43c   :  { %2402 = vmatprep.subr.bf16.mxu0 %v6470_v44  ;;  %2443 = vmatprep.subr.bf16.mxu1 %v6472_v45 }
 0x43f   :  { %2403 = vmatpush1.bf16.msra.mxu0 %v6474_v46  ;;  %2444 = vmatpush1.bf16.msra.mxu1 %v6476_v47 }
 0x440   :  { %2404 = vmatprep.subr.bf16.mxu0 %v8425_v6  ;;  %2445 = vmatprep.subr.bf16.mxu1 %v8426_v7 }
 0x443   :  { %2405 = vmatpush1.bf16.msra.mxu0 %v8427_v8  ;;  %2446 = vmatpush1.bf16.msra.mxu1 %v8428_v9 }
 0x444   :  { %2477 = vmatprep.subr.bf16.mxu0 %v8429_v12  ;;  %2518 = vmatprep.subr.bf16.mxu1 %v8430_v13 }
 0x497   :  { %v2132_v35 = vpop.f32.mrb[36].mxu0  ;;  %v2173_v36 = vpop.f32.mrb[36].mxu1 }
 0x498   :  { %v2180_v37 = vadd.f32 %v2132_v35, %v1089_v19  ;;  %v2182_v38 = vadd.f32 %v2173_v36, %v1162_v22  ;;  %v2134_v40 = vpop.f32.mrb[37].mxu0  ;;  %v2175_v41 = vpop.f32.mrb[37].mxu1 }
 0x499   :  { %v2181_v44 = vadd.f32 %v2134_v40, %v1091_v29  ;;  %v2183_v45 = vadd.f32 %v2175_v41, %v1164_v34  ;;  %v2136_v46 = vpop.f32.mrb[38].mxu0  ;;  %v2177_v47 = vpop.f32.mrb[38].mxu1 }
 0x49a   :  { %v2353_v4 = vmul.f32 0.5, %v2180_v37  ;;  %v2137_v6 = vpop.f32.mrb[39].mxu0  ;;  %v2178_v7 = vpop.f32.mrb[39].mxu1  ;;  %v8442_v46 = vld [vmem:[#allocation35_spill] sm:$0xff]  ;;  %v8447_v47 = vld [vmem:[#allocation40_spill] sm:$0xff] }
 0x49b   :  { %v2357_v8 = vmul.f32 0.5, %v2181_v44  ;;  %v2362_v9 = vmul.f32 0.5, %v2183_v45  ;;  %v8440_v44 = vld [vmem:[#allocation33_spill] sm:$0xff]  ;;  %v8441_v45 = vld [vmem:[#allocation34_spill] sm:$0xff]  ;;  %v8450_v6 = vld [vmem:[#allocation43_spill] sm:$0xff] }
 0x49c   :  { %5414 = vtanh.f32 %v2353_v4  ;;  %v8448_v4 = vld [vmem:[#allocation41_spill] sm:$0xff]  ;;  %v8451_v7 = vld [vmem:[#allocation44_spill] sm:$0xff] }
 0x49d   :  { %5416 = vtanh.f32 %v2357_v8  ;;  %v8452_v8 = vld [vmem:[#allocation45_spill] sm:$0xff] }
 0x49e   :  { %5418 = vtanh.f32 %v2182_v38 }
 0x49f   :  { %5420 = vtanh.f32 %v2362_v9  ;;  %v8453_v9 = vld [vmem:[#allocation46_spill] sm:$0xff] }
 0x4a6   :  { %v5415_v12 = vpop.eup %5414 }
 0x4a7   :  { %v5417_v13 = vpop.eup %5416  ;;  %v2355_v16 = vadd.f32 1.0, %v5415_v12  ;;  %v8454_v12 = vld [vmem:[#allocation47_spill] sm:$0xff] }
 0x4a8   :  { %v2359_v21 = vadd.f32 1.0, %v5417_v13  ;;  %v5419_v22 = vpop.eup %5418  ;;  %v8455_v13 = vld [vmem:[#allocation48_spill] sm:$0xff] }
 0x4a9   :  { %v2356_v19 = vmul.f32 0.5, %v2355_v16  ;;  %v5421_v35 = vpop.eup %5420  ;;  %v8456_v16 = vld [vmem:[#allocation49_spill] sm:$0xff] }
 0x4aa   :  { %v2360_v27 = vmul.f32 0.5, %v2359_v21  ;;  %v2364_v36 = vadd.f32 1.0, %v5421_v35  ;;  %v8457_v21 = vld [vmem:[#allocation50_spill] sm:$0xff] }
 0x4ab   :  { %v2367_v29 = vmul.f32 %v5419_v22, %v2356_v19  ;;  %v8458_v19 = vld [vmem:[#allocation51_spill] sm:$0xff]  ;;  %v8459_v22 = vld [vmem:[#allocation52_spill] sm:$0xff] }
 0x4ac   :  { %v2366_v33 = vmul.f32 %v2360_v27, %v6838_v49  ;;  %v2365_v37 = vmul.f32 0.5, %v2364_v36  ;;  %v8439_v49 = vld [vmem:[#allocation32_spill] sm:$0xff] }
 0x4ae   :  { %v6984_v34 = vadd.f32 %v2367_v29, %v2366_v33 }
 0x4b0   :  { %5422 = vtanh.f32 %v6984_v34 }
 0x4ba   :  { %v5423_v38 = vpop.eup %5422 }
 0x4bb   :  { %v2370_v40 = vmul.f32 %v5423_v38, %v2365_v37 }
 0x4bd   :  { %v6987_v41 = vpack.c.bf16 %v2370_v40, %v2370_v40 }
 0x4bf   :  { %2423 = vmatmul.mubr.bf16.vlgmr.msra.gmra.mrb[48].mxu0 %v6987_v41  ;;  %2464 = vmatmul.mubr.bf16.vlgmr.msra.gmra.mrb[48].mxu1 %v6987_v41 }
 0x4c0   :  { %2478 = vmatpush1.bf16.msra.mxu0 %v6547_v2  ;;  %2519 = vmatpush1.bf16.msra.mxu1 %v6549_v42  ;;  %v8443_v2 = vld [vmem:[#allocation36_spill] sm:$0xff]  ;;  %v8444_v42 = vld [vmem:[#allocation37_spill] sm:$0xff] }
 0x4c1   :  { %2479 = vmatprep.subr.bf16.mxu0 %v6553_v56  ;;  %2520 = vmatprep.subr.bf16.mxu1 %v6555_v59  ;;  %v8445_v56 = vld [vmem:[#allocation38_spill] sm:$0xff]  ;;  %v8446_v59 = vld [vmem:[#allocation39_spill] sm:$0xff] }
 0x4c2   :  { %2509 = vmatprep.mubr.bf16.mxu0 %v8320_v57  ;;  %2550 = vmatprep.mubr.bf16.mxu1 %v8320_v57 }
 0x4c4   :  { %2480 = vmatpush1.bf16.msra.mxu0 %v6561_v60  ;;  %2521 = vmatpush1.bf16.msra.mxu1 %v8439_v49  ;;  %v8449_v60 = vld [vmem:[#allocation42_spill] sm:$0xff]  ;;  %v8460_v49 = vld [vmem:[#allocation57_spill] sm:$0xff] }
 0x4c5   :  { %2481 = vmatprep.subr.bf16.mxu0 %v8440_v44  ;;  %2522 = vmatprep.subr.bf16.mxu1 %v8441_v45  ;;  %v8461_v44 = vld [vmem:[#allocation58_spill] sm:$0xff] }
 0x4c8   :  { %2482 = vmatpush1.bf16.msra.mxu0 %v8442_v46  ;;  %2523 = vmatpush1.bf16.msra.mxu1 %v8443_v2 }
 0x4c9   :  { %2483 = vmatprep.subr.bf16.mxu0 %v8444_v42  ;;  %2524 = vmatprep.subr.bf16.mxu1 %v8445_v56 }
 0x4cc   :  { %2484 = vmatpush1.bf16.msra.mxu0 %v8446_v59  ;;  %2525 = vmatpush1.bf16.msra.mxu1 %v8447_v47 }
 0x4cd   :  { %2485 = vmatprep.subr.bf16.mxu0 %v8448_v4  ;;  %2526 = vmatprep.subr.bf16.mxu1 %v8449_v60  ;;  %v8462_v60 = vld [vmem:[#allocation27_spill] sm:$0xff] }
 0x4d0   :  { %2486 = vmatpush1.bf16.msra.mxu0 %v8450_v6  ;;  %2527 = vmatpush1.bf16.msra.mxu1 %v8451_v7 }
 0x4d1   :  { %2487 = vmatprep.subr.bf16.mxu0 %v8452_v8  ;;  %2528 = vmatprep.subr.bf16.mxu1 %v8453_v9  ;;  %v8463_v8 = vld [vmem:[#allocation109_spill] sm:$0xff] }
 0x4d4   :  { %2488 = vmatpush1.bf16.msra.mxu0 %v8454_v12  ;;  %2529 = vmatpush1.bf16.msra.mxu1 %v8455_v13 }
 0x4d5   :  { %2489 = vmatprep.subr.bf16.mxu0 %v8456_v16  ;;  %2530 = vmatprep.subr.bf16.mxu1 %v8457_v21 }
 0x4d8   :  { %2490 = vmatpush1.bf16.msra.mxu0 %v8458_v19  ;;  %2531 = vmatpush1.bf16.msra.mxu1 %v8459_v22 }
 0x4d9   :  { %v2219_v27 = vpop.f32.mrb[40].mxu0  ;;  %v2260_v29 = vpop.f32.mrb[40].mxu1  ;;  %2491 = vmatprep.subr.bf16.mxu0 %v8391_v48  ;;  %2532 = vmatprep.subr.bf16.mxu1 %v8392_v31 }
 0x4da   :  { %v2221_v33 = vpop.f32.mrb[41].mxu0  ;;  %v2262_v35 = vpop.f32.mrb[41].mxu1 }
 0x4db   :  { %v2223_v36 = vpop.f32.mrb[42].mxu0  ;;  %v2264_v37 = vpop.f32.mrb[42].mxu1 }
 0x4dc   :  { %v2224_v38 = vpop.f32.mrb[43].mxu0  ;;  %v2265_v40 = vpop.f32.mrb[43].mxu1  ;;  %2492 = vmatpush1.bf16.msra.mxu0 %v8394_v39  ;;  %2533 = vmatpush1.bf16.msra.mxu1 %v8395_v53 }
 0x4dd   :  { %2559 = vmatprep.subr.bf16.mxu0 %v8460_v49  ;;  %2600 = vmatprep.subr.bf16.mxu1 %v8461_v44 }
 0x4f9   :  { %v2301_v45 = vpop.f32.mrb[44].mxu0  ;;  %v2342_v46 = vpop.f32.mrb[44].mxu1 }
 0x4fa   :  { %v2302_v2 = vadd.f32 %v2301_v45, %v2219_v27  ;;  %v2343_v48 = vadd.f32 %v2342_v46, %v2260_v29  ;;  %v2303_v42 = vpop.f32.mrb[45].mxu0  ;;  %v2344_v31 = vpop.f32.mrb[45].mxu1 }
 0x4fb   :  { %v2304_v56 = vadd.f32 %v2303_v42, %v2221_v33  ;;  %v2345_v59 = vadd.f32 %v2344_v31, %v2262_v35  ;;  %v2305_v47 = vpop.f32.mrb[46].mxu0  ;;  %v2346_v4 = vpop.f32.mrb[46].mxu1  ;;  %v8465_v42 = vld [vmem:[#allocation66_spill] sm:$0xff]  ;;  %v8466_v31 = vld [vmem:[#allocation67_spill] sm:$0xff] }
 0x4fc   :  { %v2349_v6 = vadd.f32 %v2302_v2, %v8462_v60  ;;  %v2306_v7 = vpop.f32.mrb[47].mxu0  ;;  %v2347_v39 = vpop.f32.mrb[47].mxu1  ;;  %v2351_v13 = vadd.f32 %v2343_v48, %v6889_v52  ;;  %v7123_v47 = vld [vmem:[#allocation6 + $0x80] ss:$16 sps:$4 sm:$0xff]   ;;  %v7126_v4 = vld [vmem:[#allocation6 + $0x88] ss:$16 sps:$4 sm:$0xff]  }
 0x4fd   :  { %v2350_v53 = vadd.f32 %v2304_v56, %v8463_v8  ;;  %v2352_v16 = vadd.f32 %v2345_v59, %v6899_v1  ;;  %v8471_v56 = vld [vmem:[#allocation72_spill] sm:$0xff]  ;;  %v8472_v59 = vld [vmem:[#allocation73_spill] sm:$0xff]  ;;  %8479 = vst [vmem:[#allocation61_spill] sm:$0xff] %v7123_v47  ;;  %8480 = vst [vmem:[#allocation62_spill] sm:$0xff] %v7126_v4 }
 0x4fe   :  { %v2371_v9 = vmul.f32 0.5, %v2349_v6  ;;  %v7129_v6 = vld [vmem:[#allocation6 + $0xa4] ss:$16 sps:$4 sm:$0xff]   ;;  %v7132_v7 = vld [vmem:[#allocation6 + $0xac] ss:$16 sps:$4 sm:$0xff]  }
 0x4ff   :  { %v2375_v12 = vmul.f32 0.5, %v2350_v53  ;;  %v2380_v21 = vmul.f32 0.5, %v2352_v16  ;;  %8481 = vst [vmem:[#allocation63_spill] sm:$0xff] %v7129_v6  ;;  %8482 = vst [vmem:[#allocation64_spill] sm:$0xff] %v7132_v7  ;;  %v7135_v39 = vld [vmem:[#allocation6 + $0xa0] ss:$16 sps:$4 sm:$0xff]  }
 0x500   :  { %5424 = vtanh.f32 %v2371_v9  ;;  %8483 = vst [vmem:[#allocation74_spill] sm:$0xff] %v7135_v39  ;;  %v7138_v53 = vld [vmem:[#allocation6 + $0xa8] ss:$16 sps:$4 sm:$0xff]   ;;  %v7141_v9 = vld [vmem:[#allocation6 + $0xc4] ss:$16 sps:$4 sm:$0xff]  }
 0x501   :  { %5426 = vtanh.f32 %v2375_v12  ;;  %8484 = vst [vmem:[#allocation75_spill] sm:$0xff] %v7138_v53  ;;  %8485 = vst [vmem:[#allocation76_spill] sm:$0xff] %v7141_v9  ;;  %v7144_v12 = vld [vmem:[#allocation6 + $0xcc] ss:$16 sps:$4 sm:$0xff]   ;;  %v7150_v16 = vld [vmem:[#allocation6 + $0xc8] ss:$16 sps:$4 sm:$0xff]  }
 0x502   :  { %5428 = vtanh.f32 %v2351_v13  ;;  %8486 = vst [vmem:[#allocation77_spill] sm:$0xff] %v7144_v12  ;;  %v7147_v13 = vld [vmem:[#allocation6 + $0xc0] ss:$16 sps:$4 sm:$0xff]   ;;  %8488 = vst [vmem:[#allocation79_spill] sm:$0xff] %v7150_v16 }
 0x503   :  { %5430 = vtanh.f32 %v2380_v21  ;;  %8487 = vst [vmem:[#allocation78_spill] sm:$0xff] %v7147_v13  ;;  %v7153_v21 = vld [vmem:[#allocation6 + $0xe4] ss:$16 sps:$4 sm:$0xff]  }
 0x504   :  { %8489 = vst [vmem:[#allocation80_spill] sm:$0xff] %v7153_v21 }
 0x50a   :  { %v5425_v19 = vpop.eup %5424 }
 0x50b   :  { %v5427_v22 = vpop.eup %5426  ;;  %v2373_v27 = vadd.f32 1.0, %v5425_v19  ;;  %v7156_v19 = vld [vmem:[#allocation6 + $0xec] ss:$16 sps:$4 sm:$0xff]  }
 0x50c   :  { %v2377_v29 = vadd.f32 1.0, %v5427_v22  ;;  %v5429_v35 = vpop.eup %5428  ;;  %8490 = vst [vmem:[#allocation81_spill] sm:$0xff] %v7156_v19  ;;  %v7159_v22 = vld [vmem:[#allocation6 + $0xe0] ss:$16 sps:$4 sm:$0xff]  }
 0x50d   :  { %v2374_v33 = vmul.f32 0.5, %v2373_v27  ;;  %v5431_v49 = vpop.eup %5430  ;;  %8491 = vst [vmem:[#allocation82_spill] sm:$0xff] %v7159_v22  ;;  %v7162_v27 = vld [vmem:[#allocation6 + $0xe8] ss:$16 sps:$4 sm:$0xff]  }
 0x50e   :  { %v2378_v36 = vmul.f32 0.5, %v2377_v29  ;;  %v2382_v44 = vadd.f32 1.0, %v5431_v49  ;;  %8492 = vst [vmem:[#allocation83_spill] sm:$0xff] %v7162_v27  ;;  %v7165_v29 = vld [vmem:[#allocation9 + $0x4] ss:$16 sps:$4 sm:$0xff]   ;;  %v8497_v49 = vld [vmem:[#allocation91_spill] sm:$0xff] }
 0x50f   :  { %v2385_v37 = vmul.f32 %v5429_v35, %v2374_v33  ;;  %8493 = vst [vmem:[#allocation84_spill] sm:$0xff] %v7165_v29  ;;  %v7168_v33 = vld [vmem:[#allocation9 + $0xc] ss:$16 sps:$4 sm:$0xff]  }
 0x510   :  { %v2384_v38 = vmul.f32 %v2378_v36, %v6902_v63  ;;  %v2383_v45 = vmul.f32 0.5, %v2382_v44  ;;  %v8464_v63 = vld [vmem:[#allocation65_spill] sm:$0xff]  ;;  %8494 = vst [vmem:[#allocation20_spill] sm:$0xff] %v7168_v33  ;;  %v1095_v44 = vadd.f32 %v8497_v49, %v8435_v26 }
 0x511   :  { %v8495_v35 = vld [vmem:[#allocation89_spill] sm:$0xff] }
 0x512   :  { %v7030_v40 = vadd.f32 %v2385_v37, %v2384_v38  ;;  %v1093_v36 = vadd.f32 %v8495_v35, %v8431_v15  ;;  %v8496_v37 = vld [vmem:[#allocation90_spill] sm:$0xff] }
 0x513   :  { %v1166_v38 = vadd.f32 %v8496_v37, %v8433_v20 }
 0x514   :  { %5432 = vtanh.f32 %v7030_v40 }
 0x51e   :  { %v5433_v46 = vpop.eup %5432 }
 0x51f   :  { %v2388_v2 = vmul.f32 %v5433_v46, %v2383_v45  ;;  %v8498_v45 = vld [vmem:[#allocation92_spill] sm:$0xff] }
 0x520   :  { %v1168_v46 = vadd.f32 %v8498_v45, %v8437_v30 }
 0x521   :  { %v2476_v48 = vpack.c.bf16 %v2388_v2, %v2388_v2 }
 0x523   :  { %2510 = vmatmul.mubr.bf16.vlgmr.msra.gmra.mrb[52].mxu0 %v2476_v48  ;;  %2551 = vmatmul.mubr.bf16.vlgmr.msra.gmra.mrb[52].mxu1 %v2476_v48 }
 0x524   :  { %2560 = vmatpush1.bf16.msra.mxu0 %v8399_v28  ;;  %2601 = vmatpush1.bf16.msra.mxu1 %v8400_v54  ;;  %v8467_v28 = vld [vmem:[#allocation68_spill] sm:$0xff]  ;;  %v8468_v54 = vld [vmem:[#allocation69_spill] sm:$0xff] }
 0x525   :  { %2561 = vmatprep.subr.bf16.mxu0 %v8401_v11  ;;  %2602 = vmatprep.subr.bf16.mxu1 %v8402_v24  ;;  %v8469_v11 = vld [vmem:[#allocation70_spill] sm:$0xff]  ;;  %v8470_v24 = vld [vmem:[#allocation71_spill] sm:$0xff] }
 0x526   :  { %2591 = vmatprep.mubr.bf16.mxu0 %v8320_v57  ;;  %2632 = vmatprep.mubr.bf16.mxu1 %v8320_v57 }
 0x528   :  { %2562 = vmatpush1.bf16.msra.mxu0 %v8403_v62  ;;  %2603 = vmatpush1.bf16.msra.mxu1 %v8404_v61  ;;  %v7065_v62 = vld [vmem:[#allocation6 + $0x4] ss:$16 sps:$4 sm:$0xff]   ;;  %v7068_v61 = vld [vmem:[#allocation6 + $0xc] ss:$16 sps:$4 sm:$0xff]  }
 0x529   :  { %2563 = vmatprep.subr.bf16.mxu0 %v8464_v63  ;;  %2604 = vmatprep.subr.bf16.mxu1 %v8465_v42 }
 0x52c   :  { %2564 = vmatpush1.bf16.msra.mxu0 %v8466_v31  ;;  %2605 = vmatpush1.bf16.msra.mxu1 %v8467_v28 }
 0x52d   :  { %2565 = vmatprep.subr.bf16.mxu0 %v8468_v54  ;;  %2606 = vmatprep.subr.bf16.mxu1 %v8469_v11 }
 0x530   :  { %2566 = vmatpush1.bf16.msra.mxu0 %v8470_v24  ;;  %2607 = vmatpush1.bf16.msra.mxu1 %v8471_v56 }
 0x531   :  { %2567 = vmatprep.subr.bf16.mxu0 %v8472_v59  ;;  %2608 = vmatprep.subr.bf16.mxu1 %v8414_v32  ;;  %v7114_v32 = vld [vmem:[#allocation6 + $0x68] ss:$16 sps:$4 sm:$0xff]  }
 0x532   :  { %8476 = vst [vmem:[#allocation56_spill] sm:$0xff] %v7114_v32 }
 0x534   :  { %2568 = vmatpush1.bf16.msra.mxu0 %v8415_v23  ;;  %2609 = vmatpush1.bf16.msra.mxu1 %v8416_v55  ;;  %v7073_v55 = vld [vmem:[#allocation6] ss:$16 sps:$4 sm:$0xff]   ;;  %v7117_v23 = vld [vmem:[#allocation6 + $0x84] ss:$16 sps:$4 sm:$0xff]  }
 0x535   :  { %2569 = vmatprep.subr.bf16.mxu0 %v8417_v14  ;;  %2610 = vmatprep.subr.bf16.mxu1 %v8418_v51  ;;  %v7090_v14 = vld [vmem:[#allocation6 + $0x28] ss:$16 sps:$4 sm:$0xff]   ;;  %v7093_v51 = vld [vmem:[#allocation6 + $0x44] ss:$16 sps:$4 sm:$0xff]   ;;  %8477 = vst [vmem:[#allocation59_spill] sm:$0xff] %v7117_v23 }
 0x538   :  { %2570 = vmatpush1.bf16.msra.mxu0 %v8419_v18  ;;  %2611 = vmatpush1.bf16.msra.mxu1 %v8420_v5  ;;  %v7096_v18 = vld [vmem:[#allocation6 + $0x4c] ss:$16 sps:$4 sm:$0xff]   ;;  %v7099_v5 = vld [vmem:[#allocation6 + $0x40] ss:$16 sps:$4 sm:$0xff]  }
 0x539   :  { %2571 = vmatprep.subr.bf16.mxu0 %v8421_v50  ;;  %2612 = vmatprep.subr.bf16.mxu1 %v8422_v3  ;;  %v7102_v50 = vld [vmem:[#allocation6 + $0x48] ss:$16 sps:$4 sm:$0xff]   ;;  %v7105_v3 = vld [vmem:[#allocation6 + $0x64] ss:$16 sps:$4 sm:$0xff]  }
 0x53a   :  { %8473 = vst [vmem:[#allocation53_spill] sm:$0xff] %v7105_v3 }
 0x53c   :  { %2572 = vmatpush1.bf16.msra.mxu0 %v8423_v17  ;;  %2613 = vmatpush1.bf16.msra.mxu1 %v8424_v58  ;;  %v7108_v17 = vld [vmem:[#allocation6 + $0x6c] ss:$16 sps:$4 sm:$0xff]   ;;  %v7111_v58 = vld [vmem:[#allocation6 + $0x60] ss:$16 sps:$4 sm:$0xff]  }
 0x53d   :  { %2573 = vmatprep.subr.bf16.mxu0 %v6729_v0  ;;  %2614 = vmatprep.subr.bf16.mxu1 %v6731_v43  ;;  %v7076_v43 = vld [vmem:[#allocation6 + $0x8] ss:$16 sps:$4 sm:$0xff]   ;;  %v7087_v0 = vld [vmem:[#allocation6 + $0x20] ss:$16 sps:$4 sm:$0xff]   ;;  %8474 = vst [vmem:[#allocation54_spill] sm:$0xff] %v7108_v17  ;;  %8475 = vst [vmem:[#allocation55_spill] sm:$0xff] %v7111_v58 }
 0x540   :  { %2574 = vmatpush1.bf16.msra.mxu0 %v6735_v25  ;;  %2615 = vmatpush1.bf16.msra.mxu1 %v6737_v10  ;;  %v7079_v25 = vld [vmem:[#allocation6 + $0x24] ss:$16 sps:$4 sm:$0xff]   ;;  %v7082_v10 = vld [vmem:[#allocation6 + $0x2c] ss:$16 sps:$4 sm:$0xff]  }
 0x541   :  { %2682 = vmatprep.subr.bf16.mxu0 %v7065_v62  ;;  %2723 = vmatprep.subr.bf16.mxu1 %v7068_v61 }
 0x543   :  { %2592 = vmatmul.mubr.bf16.vlgmr.msra.gmra.mrb[56].mxu0 %v6987_v41  ;;  %2633 = vmatmul.mubr.bf16.vlgmr.msra.gmra.mrb[56].mxu1 %v6987_v41  ;;  %v7120_v41 = vld [vmem:[#allocation6 + $0x8c] ss:$16 sps:$4 sm:$0xff]  }
 0x544   :  { %2683 = vmatpush1.bf16.msra.mxu0 %v7073_v55  ;;  %2724 = vmatpush1.bf16.msra.mxu1 %v7076_v43  ;;  %8478 = vst [vmem:[#allocation60_spill] sm:$0xff] %v7120_v41 }
 0x545   :  { %2684 = vmatprep.subr.bf16.mxu0 %v7079_v25  ;;  %2725 = vmatprep.subr.bf16.mxu1 %v7082_v10 }
 0x546   :  { %2714 = vmatprep.mubr.bf16.mxu0 %v8320_v57  ;;  %2755 = vmatprep.mubr.bf16.mxu1 %v8320_v57 }
 0x548   :  { %2685 = vmatpush1.bf16.msra.mxu0 %v7087_v0  ;;  %2726 = vmatpush1.bf16.msra.mxu1 %v7090_v14 }
 0x549   :  { %2686 = vmatprep.subr.bf16.mxu0 %v7093_v51  ;;  %2727 = vmatprep.subr.bf16.mxu1 %v7096_v18 }
 0x54c   :  { %2687 = vmatpush1.bf16.msra.mxu0 %v7099_v5  ;;  %2728 = vmatpush1.bf16.msra.mxu1 %v7102_v50 }
 0x54d   :  { %2688 = vmatprep.subr.bf16.mxu0 %v7105_v3  ;;  %2729 = vmatprep.subr.bf16.mxu1 %v7108_v17 }
 0x550   :  { %2689 = vmatpush1.bf16.msra.mxu0 %v7111_v58  ;;  %2730 = vmatpush1.bf16.msra.mxu1 %v7114_v32 }
 0x551   :  { %2690 = vmatprep.subr.bf16.mxu0 %v7117_v23  ;;  %2731 = vmatprep.subr.bf16.mxu1 %v7120_v41 }
 0x554   :  { %2691 = vmatpush1.bf16.msra.mxu0 %v7123_v47  ;;  %2732 = vmatpush1.bf16.msra.mxu1 %v7126_v4 }
 0x555   :  { %2692 = vmatprep.subr.bf16.mxu0 %v7129_v6  ;;  %2733 = vmatprep.subr.bf16.mxu1 %v7132_v7 }
 0x558   :  { %2693 = vmatpush1.bf16.msra.mxu0 %v7135_v39  ;;  %2734 = vmatpush1.bf16.msra.mxu1 %v7138_v53 }
 0x559   :  { %2694 = vmatprep.subr.bf16.mxu0 %v7141_v9  ;;  %2735 = vmatprep.subr.bf16.mxu1 %v7144_v12 }
 0x55c   :  { %2695 = vmatpush1.bf16.msra.mxu0 %v7147_v13  ;;  %2736 = vmatpush1.bf16.msra.mxu1 %v7150_v16 }
 0x55d   :  { %2696 = vmatprep.subr.bf16.mxu0 %v7153_v21  ;;  %2737 = vmatprep.subr.bf16.mxu1 %v7156_v19 }
 0x560   :  { %2697 = vmatpush1.bf16.msra.mxu0 %v7159_v22  ;;  %2738 = vmatpush1.bf16.msra.mxu1 %v7162_v27 }
 0x561   :  { %2769 = vmatprep.subr.bf16.mxu0 %v7165_v29  ;;  %2810 = vmatprep.subr.bf16.mxu1 %v7168_v33 }
 0x592   :  { %v2424_v2 = vpop.f32.mrb[48].mxu0  ;;  %v2465_v48 = vpop.f32.mrb[48].mxu1 }
 0x593   :  { %v2472_v63 = vadd.f32 %v2424_v2, %v1093_v36  ;;  %v2474_v42 = vadd.f32 %v2465_v48, %v1166_v38  ;;  %v2426_v31 = vpop.f32.mrb[49].mxu0  ;;  %v2467_v28 = vpop.f32.mrb[49].mxu1 }
 0x594   :  { %v2473_v54 = vadd.f32 %v2426_v31, %v1095_v44  ;;  %v2475_v11 = vadd.f32 %v2467_v28, %v1168_v46  ;;  %v2428_v24 = vpop.f32.mrb[50].mxu0  ;;  %v2469_v56 = vpop.f32.mrb[50].mxu1 }
 0x595   :  { %v2645_v59 = vmul.f32 0.5, %v2472_v63  ;;  %v2429_v35 = vpop.f32.mrb[51].mxu0  ;;  %v2470_v15 = vpop.f32.mrb[51].mxu1  ;;  %v7204_v24 = vld [vmem:[#allocation9 + $0x28] ss:$16 sps:$4 sm:$0xff]  }
 0x596   :  { %v2649_v37 = vmul.f32 0.5, %v2473_v54  ;;  %v2654_v49 = vmul.f32 0.5, %v2475_v11  ;;  %v7201_v11 = vld [vmem:[#allocation9 + $0x20] ss:$16 sps:$4 sm:$0xff]   ;;  %8504 = vst [vmem:[#allocation85_spill] sm:$0xff] %v7204_v24 }
 0x597   :  { %5434 = vtanh.f32 %v2645_v59  ;;  %8503 = vst [vmem:[#allocation25_spill] sm:$0xff] %v7201_v11  ;;  %v7207_v56 = vld [vmem:[#allocation9 + $0x44] ss:$16 sps:$4 sm:$0xff]   ;;  %v7210_v59 = vld [vmem:[#allocation9 + $0x4c] ss:$16 sps:$4 sm:$0xff]  }
 0x598   :  { %5436 = vtanh.f32 %v2649_v37  ;;  %8505 = vst [vmem:[#allocation86_spill] sm:$0xff] %v7207_v56  ;;  %8506 = vst [vmem:[#allocation87_spill] sm:$0xff] %v7210_v59  ;;  %v7213_v35 = vld [vmem:[#allocation9 + $0x40] ss:$16 sps:$4 sm:$0xff]   ;;  %v7216_v37 = vld [vmem:[#allocation9 + $0x48] ss:$16 sps:$4 sm:$0xff]  }
 0x599   :  { %5438 = vtanh.f32 %v2474_v42  ;;  %8507 = vst [vmem:[#allocation88_spill] sm:$0xff] %v7213_v35  ;;  %8508 = vst [vmem:[#allocation32_spill] sm:$0xff] %v7216_v37 }
 0x59a   :  { %5440 = vtanh.f32 %v2654_v49  ;;  %v7219_v49 = vld [vmem:[#allocation9 + $0x64] ss:$16 sps:$4 sm:$0xff]  }
 0x59b   :  { %8509 = vst [vmem:[#allocation33_spill] sm:$0xff] %v7219_v49 }
 0x5a1   :  { %v5435_v26 = vpop.eup %5434 }
 0x5a2   :  { %v5437_v45 = vpop.eup %5436  ;;  %v2647_v30 = vadd.f32 1.0, %v5435_v26  ;;  %v7187_v26 = vld [vmem:[#allocation9] ss:$16 sps:$4 sm:$0xff]  }
 0x5a3   :  { %v2651_v20 = vadd.f32 1.0, %v5437_v45  ;;  %v5439_v38 = vpop.eup %5438  ;;  %8499 = vst [vmem:[#allocation21_spill] sm:$0xff] %v7187_v26  ;;  %v7222_v45 = vld [vmem:[#allocation9 + $0x6c] ss:$16 sps:$4 sm:$0xff]  }
 0x5a4   :  { %v2648_v36 = vmul.f32 0.5, %v2647_v30  ;;  %v5441_v15 = vpop.eup %5440  ;;  %v7193_v30 = vld [vmem:[#allocation9 + $0x24] ss:$16 sps:$4 sm:$0xff]   ;;  %8510 = vst [vmem:[#allocation34_spill] sm:$0xff] %v7222_v45 }
 0x5a5   :  { %v2652_v2 = vmul.f32 0.5, %v2651_v20  ;;  %v2656_v63 = vadd.f32 1.0, %v5441_v15  ;;  %v7190_v20 = vld [vmem:[#allocation9 + $0x8] ss:$16 sps:$4 sm:$0xff]   ;;  %8501 = vst [vmem:[#allocation23_spill] sm:$0xff] %v7193_v30 }
 0x5a6   :  { %v2659_v44 = vmul.f32 %v5439_v38, %v2648_v36  ;;  %8500 = vst [vmem:[#allocation22_spill] sm:$0xff] %v7190_v20  ;;  %v7225_v36 = vld [vmem:[#allocation9 + $0x60] ss:$16 sps:$4 sm:$0xff]   ;;  %v7228_v38 = vld [vmem:[#allocation9 + $0x68] ss:$16 sps:$4 sm:$0xff]  }
 0x5a7   :  { %v2658_v46 = vmul.f32 %v2652_v2, %v6984_v34  ;;  %v2657_v31 = vmul.f32 0.5, %v2656_v63  ;;  %v7196_v34 = vld [vmem:[#allocation9 + $0x2c] ss:$16 sps:$4 sm:$0xff]   ;;  %8511 = vst [vmem:[#allocation35_spill] sm:$0xff] %v7225_v36  ;;  %8512 = vst [vmem:[#allocation36_spill] sm:$0xff] %v7228_v38 }
 0x5a8   :  { %8502 = vst [vmem:[#allocation24_spill] sm:$0xff] %v7196_v34  ;;  %v7231_v2 = vld [vmem:[#allocation9 + $0x84] ss:$16 sps:$4 sm:$0xff]   ;;  %v7240_v15 = vld [vmem:[#allocation9 + $0x88] ss:$16 sps:$4 sm:$0xff]  }
 0x5a9   :  { %v7180_v48 = vadd.f32 %v2659_v44, %v2658_v46  ;;  %8513 = vst [vmem:[#allocation37_spill] sm:$0xff] %v7231_v2  ;;  %v7234_v44 = vld [vmem:[#allocation9 + $0x8c] ss:$16 sps:$4 sm:$0xff]   ;;  %v7237_v46 = vld [vmem:[#allocation9 + $0x80] ss:$16 sps:$4 sm:$0xff]   ;;  %8516 = vst [vmem:[#allocation40_spill] sm:$0xff] %v7240_v15 }
 0x5aa   :  { %8514 = vst [vmem:[#allocation38_spill] sm:$0xff] %v7234_v44  ;;  %8515 = vst [vmem:[#allocation39_spill] sm:$0xff] %v7237_v46  ;;  %v7243_v63 = vld [vmem:[#allocation9 + $0xa4] ss:$16 sps:$4 sm:$0xff]  }
 0x5ab   :  { %5442 = vtanh.f32 %v7180_v48  ;;  %8517 = vst [vmem:[#allocation41_spill] sm:$0xff] %v7243_v63 }
 0x5b5   :  { %v5443_v42 = vpop.eup %5442 }
 0x5b6   :  { %v2662_v28 = vmul.f32 %v5443_v42, %v2657_v31  ;;  %v7246_v31 = vld [vmem:[#allocation9 + $0xac] ss:$16 sps:$4 sm:$0xff]   ;;  %v7249_v42 = vld [vmem:[#allocation9 + $0xa0] ss:$16 sps:$4 sm:$0xff]  }
 0x5b7   :  { %8518 = vst [vmem:[#allocation42_spill] sm:$0xff] %v7246_v31  ;;  %8519 = vst [vmem:[#allocation43_spill] sm:$0xff] %v7249_v42 }
 0x5b8   :  { %v7183_v54 = vpack.c.bf16 %v2662_v28, %v2662_v28  ;;  %v7252_v28 = vld [vmem:[#allocation9 + $0xa8] ss:$16 sps:$4 sm:$0xff]  }
 0x5b9   :  { %8520 = vst [vmem:[#allocation44_spill] sm:$0xff] %v7252_v28 }
 0x5ba   :  { %2715 = vmatmul.mubr.bf16.vlgmr.msra.gmra.mrb[60].mxu0 %v7183_v54  ;;  %2756 = vmatmul.mubr.bf16.vlgmr.msra.gmra.mrb[60].mxu1 %v7183_v54 }
 0x5bb   :  { %2770 = vmatpush1.bf16.msra.mxu0 %v7187_v26  ;;  %2811 = vmatpush1.bf16.msra.mxu1 %v7190_v20 }
 0x5bc   :  { %2771 = vmatprep.subr.bf16.mxu0 %v7193_v30  ;;  %2812 = vmatprep.subr.bf16.mxu1 %v7196_v34 }
 0x5bd   :  { %2801 = vmatprep.mubr.bf16.mxu0 %v8320_v57  ;;  %2842 = vmatprep.mubr.bf16.mxu1 %v8320_v57 }
 0x5bf   :  { %2772 = vmatpush1.bf16.msra.mxu0 %v7201_v11  ;;  %2813 = vmatpush1.bf16.msra.mxu1 %v7204_v24 }
 0x5c0   :  { %2773 = vmatprep.subr.bf16.mxu0 %v7207_v56  ;;  %2814 = vmatprep.subr.bf16.mxu1 %v7210_v59 }
 0x5c3   :  { %2774 = vmatpush1.bf16.msra.mxu0 %v7213_v35  ;;  %2815 = vmatpush1.bf16.msra.mxu1 %v7216_v37 }
 0x5c4   :  { %2775 = vmatprep.subr.bf16.mxu0 %v7219_v49  ;;  %2816 = vmatprep.subr.bf16.mxu1 %v7222_v45 }
 0x5c7   :  { %2776 = vmatpush1.bf16.msra.mxu0 %v7225_v36  ;;  %2817 = vmatpush1.bf16.msra.mxu1 %v7228_v38 }
 0x5c8   :  { %2777 = vmatprep.subr.bf16.mxu0 %v7231_v2  ;;  %2818 = vmatprep.subr.bf16.mxu1 %v7234_v44 }
 0x5cb   :  { %2778 = vmatpush1.bf16.msra.mxu0 %v7237_v46  ;;  %2819 = vmatpush1.bf16.msra.mxu1 %v7240_v15  ;;  %v7255_v46 = vld [vmem:[#allocation9 + $0xc4] ss:$16 sps:$4 sm:$0xff]   ;;  %v7258_v15 = vld [vmem:[#allocation9 + $0xcc] ss:$16 sps:$4 sm:$0xff]  }
 0x5cc   :  { %2779 = vmatprep.subr.bf16.mxu0 %v7243_v63  ;;  %2820 = vmatprep.subr.bf16.mxu1 %v7246_v31  ;;  %8521 = vst [vmem:[#allocation45_spill] sm:$0xff] %v7255_v46  ;;  %8522 = vst [vmem:[#allocation46_spill] sm:$0xff] %v7258_v15  ;;  %v7261_v63 = vld [vmem:[#allocation9 + $0xc0] ss:$16 sps:$4 sm:$0xff]   ;;  %v7264_v31 = vld [vmem:[#allocation9 + $0xc8] ss:$16 sps:$4 sm:$0xff]  }
 0x5cd   :  { %8523 = vst [vmem:[#allocation47_spill] sm:$0xff] %v7261_v63  ;;  %8524 = vst [vmem:[#allocation48_spill] sm:$0xff] %v7264_v31 }
 0x5cf   :  { %2780 = vmatpush1.bf16.msra.mxu0 %v7249_v42  ;;  %2821 = vmatpush1.bf16.msra.mxu1 %v7252_v28  ;;  %v7267_v42 = vld [vmem:[#allocation9 + $0xe4] ss:$16 sps:$4 sm:$0xff]   ;;  %v7270_v28 = vld [vmem:[#allocation9 + $0xec] ss:$16 sps:$4 sm:$0xff]  }
 0x5d0   :  { %2781 = vmatprep.subr.bf16.mxu0 %v7255_v46  ;;  %2822 = vmatprep.subr.bf16.mxu1 %v7258_v15  ;;  %8525 = vst [vmem:[#allocation49_spill] sm:$0xff] %v7267_v42  ;;  %8526 = vst [vmem:[#allocation50_spill] sm:$0xff] %v7270_v28  ;;  %v7273_v46 = vld [vmem:[#allocation9 + $0xe0] ss:$16 sps:$4 sm:$0xff]   ;;  %v7276_v15 = vld [vmem:[#allocation9 + $0xe8] ss:$16 sps:$4 sm:$0xff]  }
 0x5d1   :  { %8527 = vst [vmem:[#allocation51_spill] sm:$0xff] %v7273_v46  ;;  %8528 = vst [vmem:[#allocation52_spill] sm:$0xff] %v7276_v15 }
 0x5d3   :  { %2782 = vmatpush1.bf16.msra.mxu0 %v7261_v63  ;;  %2823 = vmatpush1.bf16.msra.mxu1 %v7264_v31  ;;  %v7279_v63 = vld [vmem:[#allocation7 + $0x4] ss:$16 sps:$4 sm:$0xff]   ;;  %v7282_v31 = vld [vmem:[#allocation7 + $0xc] ss:$16 sps:$4 sm:$0xff]  }
 0x5d4   :  { %2783 = vmatprep.subr.bf16.mxu0 %v7267_v42  ;;  %2824 = vmatprep.subr.bf16.mxu1 %v7270_v28  ;;  %8529 = vst [vmem:[#allocation57_spill] sm:$0xff] %v7279_v63  ;;  %8530 = vst [vmem:[#allocation58_spill] sm:$0xff] %v7282_v31 }
 0x5d7   :  { %2784 = vmatpush1.bf16.msra.mxu0 %v7273_v46  ;;  %2825 = vmatpush1.bf16.msra.mxu1 %v7276_v15 }
 0x5d8   :  { %2851 = vmatprep.subr.bf16.mxu0 %v7279_v63  ;;  %2892 = vmatprep.subr.bf16.mxu1 %v7282_v31 }
 0x5f6   :  { %v2511_v42 = vpop.f32.mrb[52].mxu0  ;;  %v2552_v44 = vpop.f32.mrb[52].mxu1 }
 0x5f7   :  { %v2513_v2 = vpop.f32.mrb[53].mxu0  ;;  %v2554_v28 = vpop.f32.mrb[53].mxu1 }
 0x5f8   :  { %v2515_v38 = vpop.f32.mrb[54].mxu0  ;;  %v2556_v36 = vpop.f32.mrb[54].mxu1 }
 0x5f9   :  { %v2516_v45 = vpop.f32.mrb[55].mxu0  ;;  %v2557_v46 = vpop.f32.mrb[55].mxu1 }
 0x616   :  { %v2593_v49 = vpop.f32.mrb[56].mxu0  ;;  %v2634_v37 = vpop.f32.mrb[56].mxu1 }
 0x617   :  { %v2594_v35 = vadd.f32 %v2593_v49, %v2511_v42  ;;  %v2635_v15 = vadd.f32 %v2634_v37, %v2552_v44  ;;  %v2595_v59 = vpop.f32.mrb[57].mxu0  ;;  %v2636_v56 = vpop.f32.mrb[57].mxu1 }
 0x618   :  { %v2596_v24 = vadd.f32 %v2595_v59, %v2513_v2  ;;  %v2637_v63 = vadd.f32 %v2636_v56, %v2554_v28  ;;  %v2597_v11 = vpop.f32.mrb[58].mxu0  ;;  %v2638_v34 = vpop.f32.mrb[58].mxu1  ;;  %v7293_v28 = vld [vmem:[#allocation7] ss:$16 sps:$4 sm:$0xff]  }
 0x619   :  { %v2641_v31 = vadd.f32 %v2594_v35, %v8462_v60  ;;  %v2598_v30 = vpop.f32.mrb[59].mxu0  ;;  %v2639_v20 = vpop.f32.mrb[59].mxu1  ;;  %v2643_v45 = vadd.f32 %v2635_v15, %v6889_v52 }
 0x61a   :  { %v2642_v26 = vadd.f32 %v2596_v24, %v8463_v8  ;;  %v2644_v37 = vadd.f32 %v2637_v63, %v6899_v1 }
 0x61b   :  { %v2663_v38 = vmul.f32 0.5, %v2641_v31 }
 0x61c   :  { %v2667_v36 = vmul.f32 0.5, %v2642_v26  ;;  %v2672_v49 = vmul.f32 0.5, %v2644_v37  ;;  %v7310_v37 = vld [vmem:[#allocation7 + $0x28] ss:$16 sps:$4 sm:$0xff]  }
 0x61d   :  { %5444 = vtanh.f32 %v2663_v38  ;;  %v7296_v38 = vld [vmem:[#allocation7 + $0x8] ss:$16 sps:$4 sm:$0xff]  }
 0x61e   :  { %5446 = vtanh.f32 %v2667_v36  ;;  %v7302_v36 = vld [vmem:[#allocation7 + $0x2c] ss:$16 sps:$4 sm:$0xff]  }
 0x61f   :  { %5448 = vtanh.f32 %v2643_v45  ;;  %v7307_v45 = vld [vmem:[#allocation7 + $0x20] ss:$16 sps:$4 sm:$0xff]  }
 0x620   :  { %5450 = vtanh.f32 %v2672_v49  ;;  %v7313_v49 = vld [vmem:[#allocation7 + $0x44] ss:$16 sps:$4 sm:$0xff]  }
 0x627   :  { %v5445_v59 = vpop.eup %5444 }
 0x628   :  { %v5447_v56 = vpop.eup %5446  ;;  %v2665_v11 = vadd.f32 1.0, %v5445_v59  ;;  %v7316_v59 = vld [vmem:[#allocation7 + $0x4c] ss:$16 sps:$4 sm:$0xff]  }
 0x629   :  { %v2669_v34 = vadd.f32 1.0, %v5447_v56  ;;  %v5449_v30 = vpop.eup %5448  ;;  %v7319_v56 = vld [vmem:[#allocation7 + $0x40] ss:$16 sps:$4 sm:$0xff]  }
 0x62a   :  { %v2666_v35 = vmul.f32 0.5, %v2665_v11  ;;  %v5451_v44 = vpop.eup %5450  ;;  %v7322_v11 = vld [vmem:[#allocation7 + $0x48] ss:$16 sps:$4 sm:$0xff]  }
 0x62b   :  { %v2670_v20 = vmul.f32 0.5, %v2669_v34  ;;  %v2674_v46 = vadd.f32 1.0, %v5451_v44  ;;  %v7325_v34 = vld [vmem:[#allocation7 + $0x64] ss:$16 sps:$4 sm:$0xff]   ;;  %v7343_v44 = vld [vmem:[#allocation7 + $0x80] ss:$16 sps:$4 sm:$0xff]  }
 0x62c   :  { %v2677_v2 = vmul.f32 %v5449_v30, %v2666_v35  ;;  %v7328_v35 = vld [vmem:[#allocation7 + $0x6c] ss:$16 sps:$4 sm:$0xff]   ;;  %v7331_v30 = vld [vmem:[#allocation7 + $0x60] ss:$16 sps:$4 sm:$0xff]   ;;  %8531 = vst [vmem:[#allocation27_spill] sm:$0xff] %v7343_v44 }
 0x62d   :  { %v2676_v24 = vmul.f32 %v2670_v20, %v7030_v40  ;;  %v2675_v15 = vmul.f32 0.5, %v2674_v46  ;;  %v7299_v40 = vld [vmem:[#allocation7 + $0x24] ss:$16 sps:$4 sm:$0xff]   ;;  %v7334_v20 = vld [vmem:[#allocation7 + $0x68] ss:$16 sps:$4 sm:$0xff]  }
 0x62e   :  { %v7346_v46 = vld [vmem:[#allocation7 + $0x88] ss:$16 sps:$4 sm:$0xff]  }
 0x62f   :  { %v7290_v26 = vadd.f32 %v2677_v2, %v2676_v24  ;;  %v7337_v2 = vld [vmem:[#allocation7 + $0x84] ss:$16 sps:$4 sm:$0xff]   ;;  %v7340_v24 = vld [vmem:[#allocation7 + $0x8c] ss:$16 sps:$4 sm:$0xff]   ;;  %8532 = vst [vmem:[#allocation109_spill] sm:$0xff] %v7346_v46 }
 0x631   :  { %5452 = vtanh.f32 %v7290_v26 }
 0x63b   :  { %v5453_v63 = vpop.eup %5452 }
 0x63c   :  { %v2680_v31 = vmul.f32 %v5453_v63, %v2675_v15  ;;  %v7349_v15 = vld [vmem:[#allocation7 + $0xa4] ss:$16 sps:$4 sm:$0xff]   ;;  %v7352_v63 = vld [vmem:[#allocation7 + $0xac] ss:$16 sps:$4 sm:$0xff]  }
 0x63d   :  { %8533 = vst [vmem:[#allocation65_spill] sm:$0xff] %v7349_v15  ;;  %8534 = vst [vmem:[#allocation66_spill] sm:$0xff] %v7352_v63 }
 0x63e   :  { %v2768_v42 = vpack.c.bf16 %v2680_v31, %v2680_v31  ;;  %v7355_v31 = vld [vmem:[#allocation7 + $0xa0] ss:$16 sps:$4 sm:$0xff]  }
 0x63f   :  { %8535 = vst [vmem:[#allocation67_spill] sm:$0xff] %v7355_v31 }
 0x640   :  { %2802 = vmatmul.mubr.bf16.vlgmr.msra.gmra.mrb[64].mxu0 %v2768_v42  ;;  %2843 = vmatmul.mubr.bf16.vlgmr.msra.gmra.mrb[64].mxu1 %v2768_v42  ;;  %v7358_v42 = vld [vmem:[#allocation7 + $0xa8] ss:$16 sps:$4 sm:$0xff]  }
 0x641   :  { %2852 = vmatpush1.bf16.msra.mxu0 %v7293_v28  ;;  %2893 = vmatpush1.bf16.msra.mxu1 %v7296_v38  ;;  %8536 = vst [vmem:[#allocation68_spill] sm:$0xff] %v7358_v42 }
 0x642   :  { %2853 = vmatprep.subr.bf16.mxu0 %v7299_v40  ;;  %2894 = vmatprep.subr.bf16.mxu1 %v7302_v36 }
 0x643   :  { %2883 = vmatprep.mubr.bf16.mxu0 %v8320_v57  ;;  %2924 = vmatprep.mubr.bf16.mxu1 %v8320_v57 }
 0x645   :  { %2854 = vmatpush1.bf16.msra.mxu0 %v7307_v45  ;;  %2895 = vmatpush1.bf16.msra.mxu1 %v7310_v37 }
 0x646   :  { %2855 = vmatprep.subr.bf16.mxu0 %v7313_v49  ;;  %2896 = vmatprep.subr.bf16.mxu1 %v7316_v59 }
 0x649   :  { %2856 = vmatpush1.bf16.msra.mxu0 %v7319_v56  ;;  %2897 = vmatpush1.bf16.msra.mxu1 %v7322_v11 }
 0x64a   :  { %2857 = vmatprep.subr.bf16.mxu0 %v7325_v34  ;;  %2898 = vmatprep.subr.bf16.mxu1 %v7328_v35 }
 0x64d   :  { %2858 = vmatpush1.bf16.msra.mxu0 %v7331_v30  ;;  %2899 = vmatpush1.bf16.msra.mxu1 %v7334_v20 }
 0x64e   :  { %2859 = vmatprep.subr.bf16.mxu0 %v7337_v2  ;;  %2900 = vmatprep.subr.bf16.mxu1 %v7340_v24 }
 0x651   :  { %2860 = vmatpush1.bf16.msra.mxu0 %v7343_v44  ;;  %2901 = vmatpush1.bf16.msra.mxu1 %v7346_v46  ;;  %v7361_v44 = vld [vmem:[#allocation7 + $0xc4] ss:$16 sps:$4 sm:$0xff]   ;;  %v7364_v46 = vld [vmem:[#allocation7 + $0xcc] ss:$16 sps:$4 sm:$0xff]  }
 0x652   :  { %2861 = vmatprep.subr.bf16.mxu0 %v7349_v15  ;;  %2902 = vmatprep.subr.bf16.mxu1 %v7352_v63  ;;  %8537 = vst [vmem:[#allocation69_spill] sm:$0xff] %v7361_v44  ;;  %8538 = vst [vmem:[#allocation70_spill] sm:$0xff] %v7364_v46  ;;  %v7367_v15 = vld [vmem:[#allocation7 + $0xc0] ss:$16 sps:$4 sm:$0xff]   ;;  %v7370_v63 = vld [vmem:[#allocation7 + $0xc8] ss:$16 sps:$4 sm:$0xff]  }
 0x655   :  { %2862 = vmatpush1.bf16.msra.mxu0 %v7355_v31  ;;  %2903 = vmatpush1.bf16.msra.mxu1 %v7358_v42  ;;  %v7373_v31 = vld [vmem:[#allocation7 + $0xe4] ss:$16 sps:$4 sm:$0xff]   ;;  %v7376_v42 = vld [vmem:[#allocation7 + $0xec] ss:$16 sps:$4 sm:$0xff]  }
 0x656   :  { %2863 = vmatprep.subr.bf16.mxu0 %v7361_v44  ;;  %2904 = vmatprep.subr.bf16.mxu1 %v7364_v46  ;;  %v7379_v44 = vld [vmem:[#allocation7 + $0xe0] ss:$16 sps:$4 sm:$0xff]   ;;  %v7382_v46 = vld [vmem:[#allocation7 + $0xe8] ss:$16 sps:$4 sm:$0xff]  }
 0x659   :  { %2864 = vmatpush1.bf16.msra.mxu0 %v7367_v15  ;;  %2905 = vmatpush1.bf16.msra.mxu1 %v7370_v63 }
 0x65a   :  { %2865 = vmatprep.subr.bf16.mxu0 %v7373_v31  ;;  %2906 = vmatprep.subr.bf16.mxu1 %v7376_v42 }
 0x65d   :  { %2866 = vmatpush1.bf16.msra.mxu0 %v7379_v44  ;;  %2907 = vmatpush1.bf16.msra.mxu1 %v7382_v46 }
 0x65e   :  { %2974 = vmatprep.subr.bf16.mxu0 %v7065_v62  ;;  %3015 = vmatprep.subr.bf16.mxu1 %v7068_v61 }
 0x660   :  { %2884 = vmatmul.mubr.bf16.vlgmr.msra.gmra.mrb[68].mxu0 %v7183_v54  ;;  %2925 = vmatmul.mubr.bf16.vlgmr.msra.gmra.mrb[68].mxu1 %v7183_v54  ;;  %v8539_v54 = vld [vmem:[#allocation29_spill] sm:$0xff] }
 0x661   :  { %2975 = vmatpush1.bf16.msra.mxu0 %v7073_v55  ;;  %3016 = vmatpush1.bf16.msra.mxu1 %v7076_v43 }
 0x662   :  { %2976 = vmatprep.subr.bf16.mxu0 %v7079_v25  ;;  %3017 = vmatprep.subr.bf16.mxu1 %v7082_v10 }
 0x663   :  { %3006 = vmatprep.mubr.bf16.mxu0 %v8320_v57  ;;  %3047 = vmatprep.mubr.bf16.mxu1 %v8320_v57 }
 0x665   :  { %2977 = vmatpush1.bf16.msra.mxu0 %v7087_v0  ;;  %3018 = vmatpush1.bf16.msra.mxu1 %v7090_v14 }
 0x666   :  { %2978 = vmatprep.subr.bf16.mxu0 %v7093_v51  ;;  %3019 = vmatprep.subr.bf16.mxu1 %v7096_v18 }
 0x669   :  { %2979 = vmatpush1.bf16.msra.mxu0 %v7099_v5  ;;  %3020 = vmatpush1.bf16.msra.mxu1 %v7102_v50 }
 0x66a   :  { %2980 = vmatprep.subr.bf16.mxu0 %v7105_v3  ;;  %3021 = vmatprep.subr.bf16.mxu1 %v7108_v17 }
 0x66d   :  { %2981 = vmatpush1.bf16.msra.mxu0 %v7111_v58  ;;  %3022 = vmatpush1.bf16.msra.mxu1 %v7114_v32 }
 0x66e   :  { %2982 = vmatprep.subr.bf16.mxu0 %v7117_v23  ;;  %3023 = vmatprep.subr.bf16.mxu1 %v7120_v41 }
 0x671   :  { %2983 = vmatpush1.bf16.msra.mxu0 %v7123_v47  ;;  %3024 = vmatpush1.bf16.msra.mxu1 %v7126_v4  ;;  %v8546_v4 = vld [vmem:[#allocation96_spill] sm:$0xff] }
 0x672   :  { %2984 = vmatprep.subr.bf16.mxu0 %v7129_v6  ;;  %3025 = vmatprep.subr.bf16.mxu1 %v7132_v7  ;;  %v8543_v7 = vld [vmem:[#allocation28_spill] sm:$0xff] }
 0x675   :  { %2985 = vmatpush1.bf16.msra.mxu0 %v7135_v39  ;;  %3026 = vmatpush1.bf16.msra.mxu1 %v7138_v53  ;;  %v8542_v39 = vld [vmem:[#allocation94_spill] sm:$0xff] }
 0x676   :  { %2986 = vmatprep.subr.bf16.mxu0 %v7141_v9  ;;  %3027 = vmatprep.subr.bf16.mxu1 %v7144_v12  ;;  %v8540_v9 = vld [vmem:[#allocation93_spill] sm:$0xff]  ;;  %v8541_v12 = vld [vmem:[#allocation30_spill] sm:$0xff] }
 0x677   :  { %v1099_v53 = vadd.f32 %v8540_v9, %v8539_v54 }
 0x679   :  { %2987 = vmatpush1.bf16.msra.mxu0 %v7147_v13  ;;  %3028 = vmatpush1.bf16.msra.mxu1 %v7150_v16  ;;  %v1172_v13 = vadd.f32 %v8542_v39, %v8541_v12  ;;  %v8544_v16 = vld [vmem:[#allocation95_spill] sm:$0xff] }
 0x67a   :  { %2988 = vmatprep.subr.bf16.mxu0 %v7153_v21  ;;  %3029 = vmatprep.subr.bf16.mxu1 %v7156_v19  ;;  %v1101_v6 = vadd.f32 %v8544_v16, %v8543_v7  ;;  %v8545_v21 = vld [vmem:[#allocation31_spill] sm:$0xff] }
 0x67b   :  { %v1174_v19 = vadd.f32 %v8546_v4, %v8545_v21 }
 0x67d   :  { %2989 = vmatpush1.bf16.msra.mxu0 %v7159_v22  ;;  %3030 = vmatpush1.bf16.msra.mxu1 %v7162_v27 }
 0x67e   :  { %3061 = vmatprep.subr.bf16.mxu0 %v7165_v29  ;;  %3102 = vmatprep.subr.bf16.mxu1 %v7168_v33 }
 0x68d   :  { %v2716_v47 = vpop.f32.mrb[60].mxu0  ;;  %v2757_v22 = vpop.f32.mrb[60].mxu1 }
 0x68e   :  { %v2764_v41 = vadd.f32 %v2716_v47, %v1099_v53  ;;  %v2766_v27 = vadd.f32 %v2757_v22, %v1172_v13  ;;  %v2718_v23 = vpop.f32.mrb[61].mxu0  ;;  %v2759_v29 = vpop.f32.mrb[61].mxu1 }
 0x68f   :  { %v2765_v32 = vadd.f32 %v2718_v23, %v1101_v6  ;;  %v2767_v33 = vadd.f32 %v2759_v29, %v1174_v19  ;;  %v2720_v58 = vpop.f32.mrb[62].mxu0  ;;  %v2761_v17 = vpop.f32.mrb[62].mxu1  ;;  %v8551_v29 = vld [vmem:[#allocation25_spill] sm:$0xff] }
 0x690   :  { %v2937_v9 = vmul.f32 0.5, %v2764_v41  ;;  %v2721_v3 = vpop.f32.mrb[63].mxu0  ;;  %v2762_v54 = vpop.f32.mrb[63].mxu1 }
 0x691   :  { %v2941_v39 = vmul.f32 0.5, %v2765_v32  ;;  %v2946_v16 = vmul.f32 0.5, %v2767_v33  ;;  %v8552_v33 = vld [vmem:[#allocation85_spill] sm:$0xff]  ;;  %v8554_v54 = vld [vmem:[#allocation87_spill] sm:$0xff] }
 0x692   :  { %5454 = vtanh.f32 %v2937_v9  ;;  %v8555_v9 = vld [vmem:[#allocation88_spill] sm:$0xff] }
 0x693   :  { %5456 = vtanh.f32 %v2941_v39  ;;  %v8556_v39 = vld [vmem:[#allocation32_spill] sm:$0xff] }
 0x694   :  { %5458 = vtanh.f32 %v2766_v27  ;;  %v8550_v27 = vld [vmem:[#allocation24_spill] sm:$0xff] }
 0x695   :  { %5460 = vtanh.f32 %v2946_v16  ;;  %v8557_v16 = vld [vmem:[#allocation33_spill] sm:$0xff] }
 0x69c   :  { %v5455_v7 = vpop.eup %5454 }
 0x69d   :  { %v5457_v4 = vpop.eup %5456  ;;  %v2939_v21 = vadd.f32 1.0, %v5455_v7  ;;  %v8547_v7 = vld [vmem:[#allocation21_spill] sm:$0xff] }
 0x69e   :  { %v2943_v12 = vadd.f32 1.0, %v5457_v4  ;;  %v5459_v53 = vpop.eup %5458  ;;  %v8558_v4 = vld [vmem:[#allocation34_spill] sm:$0xff] }
 0x69f   :  { %v2940_v47 = vmul.f32 0.5, %v2939_v21  ;;  %v5461_v3 = vpop.eup %5460  ;;  %v8549_v21 = vld [vmem:[#allocation23_spill] sm:$0xff] }
 0x6a0   :  { %v2944_v13 = vmul.f32 0.5, %v2943_v12  ;;  %v2948_v32 = vadd.f32 1.0, %v5461_v3  ;;  %v8548_v12 = vld [vmem:[#allocation22_spill] sm:$0xff]  ;;  %v8564_v3 = vld [vmem:[#allocation40_spill] sm:$0xff] }
 0x6a1   :  { %v2951_v23 = vmul.f32 %v5459_v53, %v2940_v47  ;;  %v8559_v47 = vld [vmem:[#allocation35_spill] sm:$0xff]  ;;  %v8560_v53 = vld [vmem:[#allocation36_spill] sm:$0xff] }
 0x6a2   :  { %v2950_v58 = vmul.f32 %v2944_v13, %v7180_v48  ;;  %v2949_v41 = vmul.f32 0.5, %v2948_v32  ;;  %v8553_v48 = vld [vmem:[#allocation86_spill] sm:$0xff]  ;;  %v8561_v13 = vld [vmem:[#allocation37_spill] sm:$0xff] }
 0x6a3   :  { %v8565_v32 = vld [vmem:[#allocation41_spill] sm:$0xff] }
 0x6a4   :  { %v7432_v17 = vadd.f32 %v2951_v23, %v2950_v58  ;;  %v8562_v23 = vld [vmem:[#allocation38_spill] sm:$0xff]  ;;  %v8563_v58 = vld [vmem:[#allocation39_spill] sm:$0xff] }
 0x6a6   :  { %5462 = vtanh.f32 %v7432_v17 }
 0x6b0   :  { %v5463_v6 = vpop.eup %5462 }
 0x6b1   :  { %v2954_v19 = vmul.f32 %v5463_v6, %v2949_v41  ;;  %v8566_v41 = vld [vmem:[#allocation42_spill] sm:$0xff]  ;;  %v8567_v6 = vld [vmem:[#allocation43_spill] sm:$0xff] }
 0x6b3   :  { %v7435_v22 = vpack.c.bf16 %v2954_v19, %v2954_v19  ;;  %v8568_v19 = vld [vmem:[#allocation44_spill] sm:$0xff] }
 0x6b5   :  { %3007 = vmatmul.mubr.bf16.vlgmr.msra.gmra.mrb[72].mxu0 %v7435_v22  ;;  %3048 = vmatmul.mubr.bf16.vlgmr.msra.gmra.mrb[72].mxu1 %v7435_v22 }
 0x6b6   :  { %3062 = vmatpush1.bf16.msra.mxu0 %v8547_v7  ;;  %3103 = vmatpush1.bf16.msra.mxu1 %v8548_v12 }
 0x6b7   :  { %3063 = vmatprep.subr.bf16.mxu0 %v8549_v21  ;;  %3104 = vmatprep.subr.bf16.mxu1 %v8550_v27 }
 0x6b8   :  { %3093 = vmatprep.mubr.bf16.mxu0 %v8320_v57  ;;  %3134 = vmatprep.mubr.bf16.mxu1 %v8320_v57 }
 0x6ba   :  { %3064 = vmatpush1.bf16.msra.mxu0 %v8551_v29  ;;  %3105 = vmatpush1.bf16.msra.mxu1 %v8552_v33 }
 0x6bb   :  { %3065 = vmatprep.subr.bf16.mxu0 %v8553_v48  ;;  %3106 = vmatprep.subr.bf16.mxu1 %v8554_v54 }
 0x6be   :  { %3066 = vmatpush1.bf16.msra.mxu0 %v8555_v9  ;;  %3107 = vmatpush1.bf16.msra.mxu1 %v8556_v39 }
 0x6bf   :  { %3067 = vmatprep.subr.bf16.mxu0 %v8557_v16  ;;  %3108 = vmatprep.subr.bf16.mxu1 %v8558_v4  ;;  %v8569_v4 = vld [vmem:[#allocation45_spill] sm:$0xff] }
 0x6c2   :  { %3068 = vmatpush1.bf16.msra.mxu0 %v8559_v47  ;;  %3109 = vmatpush1.bf16.msra.mxu1 %v8560_v53  ;;  %v8570_v47 = vld [vmem:[#allocation46_spill] sm:$0xff]  ;;  %v8571_v53 = vld [vmem:[#allocation47_spill] sm:$0xff] }
 0x6c3   :  { %3069 = vmatprep.subr.bf16.mxu0 %v8561_v13  ;;  %3110 = vmatprep.subr.bf16.mxu1 %v8562_v23  ;;  %v8572_v13 = vld [vmem:[#allocation48_spill] sm:$0xff]  ;;  %v8573_v23 = vld [vmem:[#allocation49_spill] sm:$0xff] }
 0x6c6   :  { %3070 = vmatpush1.bf16.msra.mxu0 %v8563_v58  ;;  %3111 = vmatpush1.bf16.msra.mxu1 %v8564_v3  ;;  %v8574_v58 = vld [vmem:[#allocation50_spill] sm:$0xff]  ;;  %v8575_v3 = vld [vmem:[#allocation51_spill] sm:$0xff] }
 0x6c7   :  { %3071 = vmatprep.subr.bf16.mxu0 %v8565_v32  ;;  %3112 = vmatprep.subr.bf16.mxu1 %v8566_v41  ;;  %v8576_v32 = vld [vmem:[#allocation52_spill] sm:$0xff]  ;;  %v8577_v41 = vld [vmem:[#allocation57_spill] sm:$0xff] }
 0x6ca   :  { %3072 = vmatpush1.bf16.msra.mxu0 %v8567_v6  ;;  %3113 = vmatpush1.bf16.msra.mxu1 %v8568_v19  ;;  %v8578_v6 = vld [vmem:[#allocation58_spill] sm:$0xff] }
 0x6cb   :  { %3073 = vmatprep.subr.bf16.mxu0 %v8569_v4  ;;  %3114 = vmatprep.subr.bf16.mxu1 %v8570_v47 }
 0x6ce   :  { %3074 = vmatpush1.bf16.msra.mxu0 %v8571_v53  ;;  %3115 = vmatpush1.bf16.msra.mxu1 %v8572_v13 }
 0x6cf   :  { %3075 = vmatprep.subr.bf16.mxu0 %v8573_v23  ;;  %3116 = vmatprep.subr.bf16.mxu1 %v8574_v58 }
 0x6d2   :  { %3076 = vmatpush1.bf16.msra.mxu0 %v8575_v3  ;;  %3117 = vmatpush1.bf16.msra.mxu1 %v8576_v32 }
 0x6d3   :  { %3143 = vmatprep.subr.bf16.mxu0 %v8577_v41  ;;  %3184 = vmatprep.subr.bf16.mxu1 %v8578_v6 }
 0x713   :  { %v2803_v19 = vpop.f32.mrb[64].mxu0  ;;  %v2844_v4 = vpop.f32.mrb[64].mxu1 }
 0x714   :  { %v2805_v16 = vpop.f32.mrb[65].mxu0  ;;  %v2846_v47 = vpop.f32.mrb[65].mxu1 }
 0x715   :  { %v2807_v39 = vpop.f32.mrb[66].mxu0  ;;  %v2848_v53 = vpop.f32.mrb[66].mxu1 }
 0x716   :  { %v2808_v9 = vpop.f32.mrb[67].mxu0  ;;  %v2849_v13 = vpop.f32.mrb[67].mxu1 }
 0x733   :  { %v2885_v54 = vpop.f32.mrb[68].mxu0  ;;  %v2926_v23 = vpop.f32.mrb[68].mxu1 }
 0x734   :  { %v2886_v48 = vadd.f32 %v2885_v54, %v2803_v19  ;;  %v2927_v58 = vadd.f32 %v2926_v23, %v2844_v4  ;;  %v2887_v33 = vpop.f32.mrb[69].mxu0  ;;  %v2928_v3 = vpop.f32.mrb[69].mxu1  ;;  %v8580_v19 = vld [vmem:[#allocation109_spill] sm:$0xff] }
 0x735   :  { %v2888_v29 = vadd.f32 %v2887_v33, %v2805_v16  ;;  %v2929_v32 = vadd.f32 %v2928_v3, %v2846_v47  ;;  %v2889_v27 = vpop.f32.mrb[70].mxu0  ;;  %v2930_v41 = vpop.f32.mrb[70].mxu1 }
 0x736   :  { %v2933_v6 = vadd.f32 %v2886_v48, %v8462_v60  ;;  %v2890_v21 = vpop.f32.mrb[71].mxu0  ;;  %v2931_v12 = vpop.f32.mrb[71].mxu1  ;;  %v2935_v9 = vadd.f32 %v2927_v58, %v6889_v52 }
 0x737   :  { %v2934_v7 = vadd.f32 %v2888_v29, %v8463_v8  ;;  %v2936_v54 = vadd.f32 %v2929_v32, %v6899_v1 }
 0x738   :  { %v2955_v39 = vmul.f32 0.5, %v2933_v6 }
 0x739   :  { %v2959_v53 = vmul.f32 0.5, %v2934_v7  ;;  %v2964_v4 = vmul.f32 0.5, %v2936_v54  ;;  %v8584_v54 = vld [vmem:[#allocation68_spill] sm:$0xff] }
 0x73a   :  { %5464 = vtanh.f32 %v2955_v39  ;;  %v8581_v39 = vld [vmem:[#allocation65_spill] sm:$0xff] }
 0x73b   :  { %5466 = vtanh.f32 %v2959_v53  ;;  %v8582_v53 = vld [vmem:[#allocation66_spill] sm:$0xff] }
 0x73c   :  { %5468 = vtanh.f32 %v2935_v9  ;;  %v8583_v9 = vld [vmem:[#allocation67_spill] sm:$0xff] }
 0x73d   :  { %5470 = vtanh.f32 %v2964_v4  ;;  %v8585_v4 = vld [vmem:[#allocation69_spill] sm:$0xff] }
 0x744   :  { %v5465_v33 = vpop.eup %5464 }
 0x745   :  { %v5467_v16 = vpop.eup %5466  ;;  %v2957_v27 = vadd.f32 1.0, %v5465_v33  ;;  %v8586_v33 = vld [vmem:[#allocation70_spill] sm:$0xff] }
 0x746   :  { %v2961_v47 = vadd.f32 1.0, %v5467_v16  ;;  %v5469_v21 = vpop.eup %5468  ;;  %v8592_v16 = vld [vmem:[#allocation54_spill] sm:$0xff] }
 0x747   :  { %v2958_v48 = vmul.f32 0.5, %v2957_v27  ;;  %v5471_v23 = vpop.eup %5470 }
 0x748   :  { %v2962_v12 = vmul.f32 0.5, %v2961_v47  ;;  %v2966_v58 = vadd.f32 1.0, %v5471_v23  ;;  %v8596_v47 = vld [vmem:[#allocation100_spill] sm:$0xff] }
 0x749   :  { %v2969_v13 = vmul.f32 %v5469_v21, %v2958_v48 }
 0x74a   :  { %v2968_v29 = vmul.f32 %v2962_v12, %v7290_v26  ;;  %v2967_v3 = vmul.f32 0.5, %v2966_v58  ;;  %v8579_v26 = vld [vmem:[#allocation27_spill] sm:$0xff] }
 0x74c   :  { %v7478_v7 = vadd.f32 %v2969_v13, %v2968_v29 }
 0x74e   :  { %5472 = vtanh.f32 %v7478_v7 }
 0x758   :  { %v5473_v32 = vpop.eup %5472 }
 0x759   :  { %v2972_v41 = vmul.f32 %v5473_v32, %v2967_v3  ;;  %v8597_v32 = vld [vmem:[#allocation55_spill] sm:$0xff] }
 0x75b   :  { %v3060_v6 = vpack.c.bf16 %v2972_v41, %v2972_v41  ;;  %v8598_v41 = vld [vmem:[#allocation56_spill] sm:$0xff] }
 0x75d   :  { %3094 = vmatmul.mubr.bf16.vlgmr.msra.gmra.mrb[76].mxu0 %v3060_v6  ;;  %3135 = vmatmul.mubr.bf16.vlgmr.msra.gmra.mrb[76].mxu1 %v3060_v6 }
 0x75e   :  { %3144 = vmatpush1.bf16.msra.mxu0 %v7293_v28  ;;  %3185 = vmatpush1.bf16.msra.mxu1 %v7296_v38 }
 0x75f   :  { %3145 = vmatprep.subr.bf16.mxu0 %v7299_v40  ;;  %3186 = vmatprep.subr.bf16.mxu1 %v7302_v36 }
 0x760   :  { %3175 = vmatprep.mubr.bf16.mxu0 %v8320_v57  ;;  %3216 = vmatprep.mubr.bf16.mxu1 %v8320_v57 }
 0x762   :  { %3146 = vmatpush1.bf16.msra.mxu0 %v7307_v45  ;;  %3187 = vmatpush1.bf16.msra.mxu1 %v7310_v37 }
 0x763   :  { %3147 = vmatprep.subr.bf16.mxu0 %v7313_v49  ;;  %3188 = vmatprep.subr.bf16.mxu1 %v7316_v59 }
 0x766   :  { %3148 = vmatpush1.bf16.msra.mxu0 %v7319_v56  ;;  %3189 = vmatpush1.bf16.msra.mxu1 %v7322_v11 }
 0x767   :  { %3149 = vmatprep.subr.bf16.mxu0 %v7325_v34  ;;  %3190 = vmatprep.subr.bf16.mxu1 %v7328_v35 }
 0x76a   :  { %3150 = vmatpush1.bf16.msra.mxu0 %v7331_v30  ;;  %3191 = vmatpush1.bf16.msra.mxu1 %v7334_v20 }
 0x76b   :  { %3151 = vmatprep.subr.bf16.mxu0 %v7337_v2  ;;  %3192 = vmatprep.subr.bf16.mxu1 %v7340_v24 }
 0x76e   :  { %3152 = vmatpush1.bf16.msra.mxu0 %v8579_v26  ;;  %3193 = vmatpush1.bf16.msra.mxu1 %v8580_v19 }
 0x76f   :  { %3153 = vmatprep.subr.bf16.mxu0 %v8581_v39  ;;  %3194 = vmatprep.subr.bf16.mxu1 %v8582_v53 }
 0x772   :  { %3154 = vmatpush1.bf16.msra.mxu0 %v8583_v9  ;;  %3195 = vmatpush1.bf16.msra.mxu1 %v8584_v54 }
 0x773   :  { %3155 = vmatprep.subr.bf16.mxu0 %v8585_v4  ;;  %3196 = vmatprep.subr.bf16.mxu1 %v8586_v33 }
 0x776   :  { %3156 = vmatpush1.bf16.msra.mxu0 %v7367_v15  ;;  %3197 = vmatpush1.bf16.msra.mxu1 %v7370_v63 }
 0x777   :  { %3157 = vmatprep.subr.bf16.mxu0 %v7373_v31  ;;  %3198 = vmatprep.subr.bf16.mxu1 %v7376_v42 }
 0x77a   :  { %3158 = vmatpush1.bf16.msra.mxu0 %v7379_v44  ;;  %3199 = vmatpush1.bf16.msra.mxu1 %v7382_v46 }
 0x77b   :  { %3266 = vmatprep.subr.bf16.mxu0 %v7065_v62  ;;  %3307 = vmatprep.subr.bf16.mxu1 %v7068_v61  ;;  %v8587_v62 = vld [vmem:[#allocation29_spill] sm:$0xff] }
 0x77c   :  { %v8588_v61 = vld [vmem:[#allocation97_spill] sm:$0xff] }
 0x77d   :  { %3176 = vmatmul.mubr.bf16.vlgmr.msra.gmra.mrb[80].mxu0 %v7435_v22  ;;  %3217 = vmatmul.mubr.bf16.vlgmr.msra.gmra.mrb[80].mxu1 %v7435_v22  ;;  %v8591_v22 = vld [vmem:[#allocation53_spill] sm:$0xff] }
 0x77e   :  { %3267 = vmatpush1.bf16.msra.mxu0 %v7073_v55  ;;  %3308 = vmatpush1.bf16.msra.mxu1 %v7076_v43  ;;  %v1103_v55 = vadd.f32 %v8588_v61, %v8587_v62  ;;  %v8589_v43 = vld [vmem:[#allocation30_spill] sm:$0xff] }
 0x77f   :  { %3268 = vmatprep.subr.bf16.mxu0 %v7079_v25  ;;  %3309 = vmatprep.subr.bf16.mxu1 %v7082_v10  ;;  %v8590_v25 = vld [vmem:[#allocation98_spill] sm:$0xff] }
 0x780   :  { %3298 = vmatprep.mubr.bf16.mxu0 %v8320_v57  ;;  %3339 = vmatprep.mubr.bf16.mxu1 %v8320_v57  ;;  %v1176_v10 = vadd.f32 %v8590_v25, %v8589_v43 }
 0x782   :  { %3269 = vmatpush1.bf16.msra.mxu0 %v7087_v0  ;;  %3310 = vmatpush1.bf16.msra.mxu1 %v7090_v14  ;;  %v8593_v0 = vld [vmem:[#allocation28_spill] sm:$0xff]  ;;  %v8594_v14 = vld [vmem:[#allocation99_spill] sm:$0xff] }
 0x783   :  { %3270 = vmatprep.subr.bf16.mxu0 %v7093_v51  ;;  %3311 = vmatprep.subr.bf16.mxu1 %v7096_v18  ;;  %v1105_v27 = vadd.f32 %v8594_v14, %v8593_v0  ;;  %v8595_v51 = vld [vmem:[#allocation31_spill] sm:$0xff] }
 0x784   :  { %v1178_v18 = vadd.f32 %v8596_v47, %v8595_v51  ;;  %v8604_v47 = vld [vmem:[#allocation64_spill] sm:$0xff] }
 0x786   :  { %3271 = vmatpush1.bf16.msra.mxu0 %v7099_v5  ;;  %3312 = vmatpush1.bf16.msra.mxu1 %v7102_v50 }
 0x787   :  { %3272 = vmatprep.subr.bf16.mxu0 %v8591_v22  ;;  %3313 = vmatprep.subr.bf16.mxu1 %v8592_v16  ;;  %v8599_v22 = vld [vmem:[#allocation59_spill] sm:$0xff]  ;;  %v8600_v16 = vld [vmem:[#allocation60_spill] sm:$0xff] }
 0x788   :  { %v3008_v48 = vpop.f32.mrb[72].mxu0  ;;  %v3049_v5 = vpop.f32.mrb[72].mxu1 }
 0x789   :  { %v3056_v21 = vadd.f32 %v3008_v48, %v1103_v55  ;;  %v3058_v50 = vadd.f32 %v3049_v5, %v1176_v10  ;;  %v3010_v12 = vpop.f32.mrb[73].mxu0  ;;  %v3051_v13 = vpop.f32.mrb[73].mxu1  ;;  %v8601_v55 = vld [vmem:[#allocation61_spill] sm:$0xff]  ;;  %v8602_v10 = vld [vmem:[#allocation62_spill] sm:$0xff]  ;;  %v8606_v48 = vld [vmem:[#allocation75_spill] sm:$0xff] }
 0x78a   :  { %v3057_v29 = vadd.f32 %v3010_v12, %v1105_v27  ;;  %v3059_v23 = vadd.f32 %v3051_v13, %v1178_v18  ;;  %v3012_v58 = vpop.f32.mrb[74].mxu0  ;;  %v3053_v3 = vpop.f32.mrb[74].mxu1  ;;  %3273 = vmatpush1.bf16.msra.mxu0 %v8597_v32  ;;  %3314 = vmatpush1.bf16.msra.mxu1 %v8598_v41  ;;  %v8603_v27 = vld [vmem:[#allocation63_spill] sm:$0xff]  ;;  %v8605_v18 = vld [vmem:[#allocation74_spill] sm:$0xff]  ;;  %v8607_v5 = vld [vmem:[#allocation76_spill] sm:$0xff] }
 0x78b   :  { %v3229_v6 = vmul.f32 0.5, %v3056_v21  ;;  %v3013_v61 = vpop.f32.mrb[75].mxu0  ;;  %v3054_v25 = vpop.f32.mrb[75].mxu1  ;;  %3274 = vmatprep.subr.bf16.mxu0 %v8599_v22  ;;  %3315 = vmatprep.subr.bf16.mxu1 %v8600_v16  ;;  %v8608_v21 = vld [vmem:[#allocation77_spill] sm:$0xff]  ;;  %v8609_v13 = vld [vmem:[#allocation78_spill] sm:$0xff]  ;;  %v8611_v3 = vld [vmem:[#allocation80_spill] sm:$0xff] }
 0x78c   :  { %v3233_v14 = vmul.f32 0.5, %v3057_v29  ;;  %v3238_v12 = vmul.f32 0.5, %v3059_v23  ;;  %v8610_v29 = vld [vmem:[#allocation79_spill] sm:$0xff]  ;;  %v8612_v32 = vld [vmem:[#allocation81_spill] sm:$0xff]  ;;  %v8613_v25 = vld [vmem:[#allocation82_spill] sm:$0xff] }
 0x78d   :  { %5474 = vtanh.f32 %v3229_v6  ;;  %v8614_v22 = vld [vmem:[#allocation83_spill] sm:$0xff] }
 0x78e   :  { %5476 = vtanh.f32 %v3233_v14  ;;  %3275 = vmatpush1.bf16.msra.mxu0 %v8601_v55  ;;  %3316 = vmatpush1.bf16.msra.mxu1 %v8602_v10  ;;  %v8615_v14 = vld [vmem:[#allocation84_spill] sm:$0xff] }
 0x78f   :  { %3276 = vmatprep.subr.bf16.mxu0 %v8603_v27  ;;  %3317 = vmatprep.subr.bf16.mxu1 %v8604_v47  ;;  %5478 = vtanh.f32 %v3058_v50  ;;  %v8616_v55 = vld [vmem:[#allocation20_spill] sm:$0xff] }
 0x790   :  { %5480 = vtanh.f32 %v3238_v12 }
 0x792   :  { %3277 = vmatpush1.bf16.msra.mxu0 %v8605_v18  ;;  %3318 = vmatpush1.bf16.msra.mxu1 %v8606_v48 }
 0x793   :  { %3278 = vmatprep.subr.bf16.mxu0 %v8607_v5  ;;  %3319 = vmatprep.subr.bf16.mxu1 %v8608_v21 }
 0x796   :  { %3279 = vmatpush1.bf16.msra.mxu0 %v8609_v13  ;;  %3320 = vmatpush1.bf16.msra.mxu1 %v8610_v29  ;;  %v8617_v29 = vld [vmem:[#allocation21_spill] sm:$0xff] }
 0x797   :  { %v5475_v58 = vpop.eup %5474  ;;  %3280 = vmatprep.subr.bf16.mxu0 %v8611_v3  ;;  %3321 = vmatprep.subr.bf16.mxu1 %v8612_v32  ;;  %v8620_v3 = vld [vmem:[#allocation24_spill] sm:$0xff]  ;;  %v8621_v32 = vld [vmem:[#allocation25_spill] sm:$0xff] }
 0x798   :  { %v5477_v41 = vpop.eup %5476  ;;  %v3231_v50 = vadd.f32 1.0, %v5475_v58  ;;  %v8618_v58 = vld [vmem:[#allocation22_spill] sm:$0xff] }
 0x799   :  { %v3235_v6 = vadd.f32 1.0, %v5477_v41  ;;  %v5479_v16 = vpop.eup %5478  ;;  %v8622_v41 = vld [vmem:[#allocation85_spill] sm:$0xff] }
 0x79a   :  { %v3232_v61 = vmul.f32 0.5, %v3231_v50  ;;  %3281 = vmatpush1.bf16.msra.mxu0 %v8613_v25  ;;  %3322 = vmatpush1.bf16.msra.mxu1 %v8614_v22  ;;  %v5481_v18 = vpop.eup %5480  ;;  %v8623_v50 = vld [vmem:[#allocation86_spill] sm:$0xff]  ;;  %v8626_v25 = vld [vmem:[#allocation32_spill] sm:$0xff]  ;;  %v8627_v22 = vld [vmem:[#allocation33_spill] sm:$0xff] }
 0x79b   :  { %v3236_v23 = vmul.f32 0.5, %v3235_v6  ;;  %3353 = vmatprep.subr.bf16.mxu0 %v8615_v14  ;;  %3394 = vmatprep.subr.bf16.mxu1 %v8616_v55  ;;  %v3240_v48 = vadd.f32 1.0, %v5481_v18  ;;  %v8624_v6 = vld [vmem:[#allocation87_spill] sm:$0xff]  ;;  %v8630_v14 = vld [vmem:[#allocation36_spill] sm:$0xff]  ;;  %v8631_v55 = vld [vmem:[#allocation37_spill] sm:$0xff] }
 0x79c   :  { %v3243_v10 = vmul.f32 %v5479_v16, %v3232_v61  ;;  %v8625_v61 = vld [vmem:[#allocation88_spill] sm:$0xff]  ;;  %v8628_v16 = vld [vmem:[#allocation34_spill] sm:$0xff] }
 0x79d   :  { %v3242_v27 = vmul.f32 %v3236_v23, %v7432_v17  ;;  %v3241_v5 = vmul.f32 0.5, %v3240_v48  ;;  %v8619_v17 = vld [vmem:[#allocation23_spill] sm:$0xff]  ;;  %v8634_v18 = vld [vmem:[#allocation40_spill] sm:$0xff]  ;;  %v8635_v48 = vld [vmem:[#allocation41_spill] sm:$0xff] }
 0x79e   :  { %v8629_v23 = vld [vmem:[#allocation35_spill] sm:$0xff] }
 0x79f   :  { %v7560_v47 = vadd.f32 %v3243_v10, %v3242_v27  ;;  %v8632_v10 = vld [vmem:[#allocation38_spill] sm:$0xff]  ;;  %v8633_v27 = vld [vmem:[#allocation39_spill] sm:$0xff] }
 0x7a1   :  { %5482 = vtanh.f32 %v7560_v47 }
 0x7ab   :  { %v5483_v21 = vpop.eup %5482 }
 0x7ac   :  { %v3246_v12 = vmul.f32 %v5483_v21, %v3241_v5  ;;  %v8636_v5 = vld [vmem:[#allocation42_spill] sm:$0xff]  ;;  %v8637_v21 = vld [vmem:[#allocation43_spill] sm:$0xff] }
 0x7ae   :  { %v7563_v13 = vpack.c.bf16 %v3246_v12, %v3246_v12  ;;  %v8638_v12 = vld [vmem:[#allocation44_spill] sm:$0xff] }
 0x7b0   :  { %3299 = vmatmul.mubr.bf16.vlgmr.msra.gmra.mrb[84].mxu0 %v7563_v13  ;;  %3340 = vmatmul.mubr.bf16.vlgmr.msra.gmra.mrb[84].mxu1 %v7563_v13 }
 0x7b1   :  { %3354 = vmatpush1.bf16.msra.mxu0 %v8617_v29  ;;  %3395 = vmatpush1.bf16.msra.mxu1 %v8618_v58  ;;  %v8639_v29 = vld [vmem:[#allocation45_spill] sm:$0xff]  ;;  %v8640_v58 = vld [vmem:[#allocation46_spill] sm:$0xff] }
 0x7b2   :  { %3355 = vmatprep.subr.bf16.mxu0 %v8619_v17  ;;  %3396 = vmatprep.subr.bf16.mxu1 %v8620_v3  ;;  %v8641_v17 = vld [vmem:[#allocation47_spill] sm:$0xff]  ;;  %v8642_v3 = vld [vmem:[#allocation48_spill] sm:$0xff] }
 0x7b3   :  { %3385 = vmatprep.mubr.bf16.mxu0 %v8320_v57  ;;  %3426 = vmatprep.mubr.bf16.mxu1 %v8320_v57 }
 0x7b5   :  { %3356 = vmatpush1.bf16.msra.mxu0 %v8621_v32  ;;  %3397 = vmatpush1.bf16.msra.mxu1 %v8622_v41  ;;  %v8643_v32 = vld [vmem:[#allocation49_spill] sm:$0xff]  ;;  %v8644_v41 = vld [vmem:[#allocation50_spill] sm:$0xff] }
 0x7b6   :  { %3357 = vmatprep.subr.bf16.mxu0 %v8623_v50  ;;  %3398 = vmatprep.subr.bf16.mxu1 %v8624_v6  ;;  %v8645_v50 = vld [vmem:[#allocation51_spill] sm:$0xff]  ;;  %v8646_v6 = vld [vmem:[#allocation52_spill] sm:$0xff] }
 0x7b9   :  { %3358 = vmatpush1.bf16.msra.mxu0 %v8625_v61  ;;  %3399 = vmatpush1.bf16.msra.mxu1 %v8626_v25  ;;  %v8647_v61 = vld [vmem:[#allocation57_spill] sm:$0xff]  ;;  %v8648_v25 = vld [vmem:[#allocation58_spill] sm:$0xff] }
 0x7ba   :  { %3359 = vmatprep.subr.bf16.mxu0 %v8627_v22  ;;  %3400 = vmatprep.subr.bf16.mxu1 %v8628_v16 }
 0x7bd   :  { %3360 = vmatpush1.bf16.msra.mxu0 %v8629_v23  ;;  %3401 = vmatpush1.bf16.msra.mxu1 %v8630_v14 }
 0x7be   :  { %3361 = vmatprep.subr.bf16.mxu0 %v8631_v55  ;;  %3402 = vmatprep.subr.bf16.mxu1 %v8632_v10 }
 0x7c1   :  { %3362 = vmatpush1.bf16.msra.mxu0 %v8633_v27  ;;  %3403 = vmatpush1.bf16.msra.mxu1 %v8634_v18 }
 0x7c2   :  { %3363 = vmatprep.subr.bf16.mxu0 %v8635_v48  ;;  %3404 = vmatprep.subr.bf16.mxu1 %v8636_v5 }
 0x7c5   :  { %3364 = vmatpush1.bf16.msra.mxu0 %v8637_v21  ;;  %3405 = vmatpush1.bf16.msra.mxu1 %v8638_v12 }
 0x7c6   :  { %3365 = vmatprep.subr.bf16.mxu0 %v8639_v29  ;;  %3406 = vmatprep.subr.bf16.mxu1 %v8640_v58 }
 0x7c9   :  { %3366 = vmatpush1.bf16.msra.mxu0 %v8641_v17  ;;  %3407 = vmatpush1.bf16.msra.mxu1 %v8642_v3 }
 0x7ca   :  { %3367 = vmatprep.subr.bf16.mxu0 %v8643_v32  ;;  %3408 = vmatprep.subr.bf16.mxu1 %v8644_v41 }
 0x7cd   :  { %3368 = vmatpush1.bf16.msra.mxu0 %v8645_v50  ;;  %3409 = vmatpush1.bf16.msra.mxu1 %v8646_v6 }
 0x7ce   :  { %3435 = vmatprep.subr.bf16.mxu0 %v8647_v61  ;;  %3476 = vmatprep.subr.bf16.mxu1 %v8648_v25 }
 0x830   :  { %v3095_v22 = vpop.f32.mrb[76].mxu0  ;;  %v3136_v16 = vpop.f32.mrb[76].mxu1 }
 0x831   :  { %v3097_v23 = vpop.f32.mrb[77].mxu0  ;;  %v3138_v14 = vpop.f32.mrb[77].mxu1 }
 0x832   :  { %v3099_v55 = vpop.f32.mrb[78].mxu0  ;;  %v3140_v10 = vpop.f32.mrb[78].mxu1 }
 0x833   :  { %v3100_v27 = vpop.f32.mrb[79].mxu0  ;;  %v3141_v18 = vpop.f32.mrb[79].mxu1 }
 0x850   :  { %v3177_v48 = vpop.f32.mrb[80].mxu0  ;;  %v3218_v5 = vpop.f32.mrb[80].mxu1 }
 0x851   :  { %v3178_v21 = vadd.f32 %v3177_v48, %v3095_v22  ;;  %v3219_v12 = vadd.f32 %v3218_v5, %v3136_v16  ;;  %v3179_v29 = vpop.f32.mrb[81].mxu0  ;;  %v3220_v58 = vpop.f32.mrb[81].mxu1 }
 0x852   :  { %v3180_v17 = vadd.f32 %v3179_v29, %v3097_v23  ;;  %v3221_v3 = vadd.f32 %v3220_v58, %v3138_v14  ;;  %v3181_v32 = vpop.f32.mrb[82].mxu0  ;;  %v3222_v41 = vpop.f32.mrb[82].mxu1 }
 0x853   :  { %v3225_v50 = vadd.f32 %v3178_v21, %v8462_v60  ;;  %v3182_v6 = vpop.f32.mrb[83].mxu0  ;;  %v3223_v61 = vpop.f32.mrb[83].mxu1  ;;  %v3227_v27 = vadd.f32 %v3219_v12, %v6889_v52 }
 0x854   :  { %v3226_v25 = vadd.f32 %v3180_v17, %v8463_v8  ;;  %v3228_v22 = vadd.f32 %v3221_v3, %v6899_v1 }
 0x855   :  { %v3247_v55 = vmul.f32 0.5, %v3225_v50 }
 0x856   :  { %v3251_v10 = vmul.f32 0.5, %v3226_v25  ;;  %v3256_v16 = vmul.f32 0.5, %v3228_v22 }
 0x857   :  { %5484 = vtanh.f32 %v3247_v55  ;;  %v8652_v55 = vld [vmem:[#allocation104_spill] sm:$0xff] }
 0x858   :  { %5486 = vtanh.f32 %v3251_v10  ;;  %v1184_v10 = vadd.f32 %v8652_v55, %v8595_v51  ;;  %v5675_v55 = vld [vmem:[#allocation6 + $0xcc] ss:$16 sps:$4 sm:$0xff]  }
 0x859   :  { %5488 = vtanh.f32 %v3227_v27 }
 0x85a   :  { %5490 = vtanh.f32 %v3256_v16 }
 0x861   :  { %v5485_v23 = vpop.eup %5484 }
 0x862   :  { %v5487_v14 = vpop.eup %5486  ;;  %v3249_v18 = vadd.f32 1.0, %v5485_v23 }
 0x863   :  { %v3253_v48 = vadd.f32 1.0, %v5487_v14  ;;  %v5489_v21 = vpop.eup %5488 }
 0x864   :  { %v3250_v5 = vmul.f32 0.5, %v3249_v18  ;;  %v5491_v12 = vpop.eup %5490 }
 0x865   :  { %v3254_v29 = vmul.f32 0.5, %v3253_v48  ;;  %v3258_v41 = vadd.f32 1.0, %v5491_v12  ;;  %v5665_v12 = vld [vmem:[#allocation6 + $0x68] ss:$16 sps:$4 sm:$0xff]  }
 0x866   :  { %v3261_v58 = vmul.f32 %v5489_v21, %v3250_v5 }
 0x867   :  { %v3260_v17 = vmul.f32 %v3254_v29, %v7478_v7  ;;  %v3259_v50 = vmul.f32 0.5, %v3258_v41  ;;  %v5662_v29 = vld [vmem:[#allocation6 + $0x64] ss:$16 sps:$4 sm:$0xff]  }
 0x868   :  { %v5666_v41 = vld [vmem:[#allocation6 + $0x84] ss:$16 sps:$4 sm:$0xff]  }
 0x869   :  { %v7606_v32 = vadd.f32 %v3261_v58, %v3260_v17  ;;  %v5663_v58 = vld [vmem:[#allocation6 + $0x6c] ss:$16 sps:$4 sm:$0xff]   ;;  %v5664_v17 = vld [vmem:[#allocation6 + $0x60] ss:$16 sps:$4 sm:$0xff]  }
 0x86b   :  { %5492 = vtanh.f32 %v7606_v32 }
 0x875   :  { %v5493_v3 = vpop.eup %5492 }
 0x876   :  { %v3264_v6 = vmul.f32 %v5493_v3, %v3259_v50  ;;  %v5667_v50 = vld [vmem:[#allocation6 + $0x8c] ss:$16 sps:$4 sm:$0xff]  }
 0x878   :  { %v3352_v61 = vpack.c.bf16 %v3264_v6, %v3264_v6  ;;  %v5668_v6 = vld [vmem:[#allocation6 + $0x80] ss:$16 sps:$4 sm:$0xff]  }
 0x87a   :  { %3386 = vmatmul.mubr.bf16.vlgmr.msra.gmra.mrb[88].mxu0 %v3352_v61  ;;  %3427 = vmatmul.mubr.bf16.vlgmr.msra.gmra.mrb[88].mxu1 %v3352_v61  ;;  %v5669_v61 = vld [vmem:[#allocation6 + $0x88] ss:$16 sps:$4 sm:$0xff]  }
 0x87b   :  { %3436 = vmatpush1.bf16.msra.mxu0 %v7293_v28  ;;  %3477 = vmatpush1.bf16.msra.mxu1 %v7296_v38  ;;  %v8649_v28 = vld [vmem:[#allocation101_spill] sm:$0xff]  ;;  %v8650_v38 = vld [vmem:[#allocation102_spill] sm:$0xff] }
 0x87c   :  { %3437 = vmatprep.subr.bf16.mxu0 %v7299_v40  ;;  %3478 = vmatprep.subr.bf16.mxu1 %v7302_v36  ;;  %v1109_v7 = vadd.f32 %v8649_v28, %v8587_v62  ;;  %v1182_v40 = vadd.f32 %v8650_v38, %v8589_v43  ;;  %v8651_v36 = vld [vmem:[#allocation103_spill] sm:$0xff]  ;;  %v5670_v28 = vld [vmem:[#allocation6 + $0xa4] ss:$16 sps:$4 sm:$0xff]  }
 0x87d   :  { %3467 = vmatprep.mubr.bf16.mxu0 %v8320_v57  ;;  %3508 = vmatprep.mubr.bf16.mxu1 %v8320_v57  ;;  %v1111_v25 = vadd.f32 %v8651_v36, %v8593_v0  ;;  %v5673_v36 = vld [vmem:[#allocation6 + $0xa8] ss:$16 sps:$4 sm:$0xff]  }
 0x87f   :  { %3438 = vmatpush1.bf16.msra.mxu0 %v7307_v45  ;;  %3479 = vmatpush1.bf16.msra.mxu1 %v7310_v37 }
 0x880   :  { %3439 = vmatprep.subr.bf16.mxu0 %v7313_v49  ;;  %3480 = vmatprep.subr.bf16.mxu1 %v7316_v59 }
 0x883   :  { %3440 = vmatpush1.bf16.msra.mxu0 %v7319_v56  ;;  %3481 = vmatpush1.bf16.msra.mxu1 %v7322_v11  ;;  %v3300_v45 = vpop.f32.mrb[84].mxu0  ;;  %v3341_v37 = vpop.f32.mrb[84].mxu1 }
 0x884   :  { %3441 = vmatprep.subr.bf16.mxu0 %v7325_v34  ;;  %3482 = vmatprep.subr.bf16.mxu1 %v7328_v35  ;;  %v3348_v49 = vadd.f32 %v3300_v45, %v1109_v7  ;;  %v3350_v59 = vadd.f32 %v3341_v37, %v1182_v40  ;;  %v3302_v27 = vpop.f32.mrb[85].mxu0  ;;  %v3343_v22 = vpop.f32.mrb[85].mxu1  ;;  %v5671_v7 = vld [vmem:[#allocation6 + $0xac] ss:$16 sps:$4 sm:$0xff]   ;;  %v5672_v40 = vld [vmem:[#allocation6 + $0xa0] ss:$16 sps:$4 sm:$0xff]  }
 0x885   :  { %v3349_v16 = vadd.f32 %v3302_v27, %v1111_v25  ;;  %v3351_v23 = vadd.f32 %v3343_v22, %v1184_v10  ;;  %v3304_v14 = vpop.f32.mrb[86].mxu0  ;;  %v3345_v18 = vpop.f32.mrb[86].mxu1  ;;  %v5674_v25 = vld [vmem:[#allocation6 + $0xc4] ss:$16 sps:$4 sm:$0xff]   ;;  %v5676_v37 = vld [vmem:[#allocation6 + $0xc0] ss:$16 sps:$4 sm:$0xff]  }
 0x886   :  { %v3521_v48 = vmul.f32 0.5, %v3348_v49  ;;  %v3305_v5 = vpop.f32.mrb[87].mxu0  ;;  %v3346_v21 = vpop.f32.mrb[87].mxu1  ;;  %v5677_v49 = vld [vmem:[#allocation6 + $0xc8] ss:$16 sps:$4 sm:$0xff]  }
 0x887   :  { %3442 = vmatpush1.bf16.msra.mxu0 %v7331_v30  ;;  %3483 = vmatpush1.bf16.msra.mxu1 %v7334_v20  ;;  %v3525_v56 = vmul.f32 0.5, %v3349_v16  ;;  %v5678_v27 = vld [vmem:[#allocation6 + $0xe4] ss:$16 sps:$4 sm:$0xff]   ;;  %v5679_v22 = vld [vmem:[#allocation6 + $0xec] ss:$16 sps:$4 sm:$0xff]  }
 0x888   :  { %5494 = vtanh.f32 %v3521_v48  ;;  %3443 = vmatprep.subr.bf16.mxu0 %v7337_v2  ;;  %3484 = vmatprep.subr.bf16.mxu1 %v7340_v24  ;;  %v5680_v16 = vld [vmem:[#allocation6 + $0xe0] ss:$16 sps:$4 sm:$0xff]   ;;  %v7659_v18 = vld [vmem:[#allocation9 + $0x4] ss:$16 sps:$4 sm:$0xff]   ;;  %v7662_v48 = vld [vmem:[#allocation9 + $0xc] ss:$16 sps:$4 sm:$0xff]  }
 0x889   :  { %5496 = vtanh.f32 %v3525_v56  ;;  %v7667_v5 = vld [vmem:[#allocation9] ss:$16 sps:$4 sm:$0xff]   ;;  %v7670_v21 = vld [vmem:[#allocation9 + $0x8] ss:$16 sps:$4 sm:$0xff]   ;;  %v7673_v56 = vld [vmem:[#allocation9 + $0x24] ss:$16 sps:$4 sm:$0xff]  }
 0x88a   :  { %5498 = vtanh.f32 %v3350_v59 }
 0x88b   :  { %3444 = vmatpush1.bf16.msra.mxu0 %v8579_v26  ;;  %3485 = vmatpush1.bf16.msra.mxu1 %v8580_v19 }
 0x88c   :  { %3445 = vmatprep.subr.bf16.mxu0 %v8581_v39  ;;  %3486 = vmatprep.subr.bf16.mxu1 %v8582_v53  ;;  %v5650_v39 = vld [vmem:[#allocation6 + $0x4] ss:$16 sps:$4 sm:$0xff]  }
 0x88d   :  { %v5654_v53 = vld [vmem:[#allocation6 + $0x24] ss:$16 sps:$4 sm:$0xff]  }
 0x88f   :  { %3446 = vmatpush1.bf16.msra.mxu0 %v8583_v9  ;;  %3487 = vmatpush1.bf16.msra.mxu1 %v8584_v54  ;;  %v5656_v9 = vld [vmem:[#allocation6 + $0x20] ss:$16 sps:$4 sm:$0xff]   ;;  %v5657_v54 = vld [vmem:[#allocation6 + $0x28] ss:$16 sps:$4 sm:$0xff]  }
 0x890   :  { %3447 = vmatprep.subr.bf16.mxu0 %v8585_v4  ;;  %3488 = vmatprep.subr.bf16.mxu1 %v8586_v33  ;;  %v5658_v4 = vld [vmem:[#allocation6 + $0x44] ss:$16 sps:$4 sm:$0xff]   ;;  %v5659_v33 = vld [vmem:[#allocation6 + $0x4c] ss:$16 sps:$4 sm:$0xff]  }
 0x892   :  { %v5495_v11 = vpop.eup %5494 }
 0x893   :  { %v5497_v34 = vpop.eup %5496  ;;  %v3523_v35 = vadd.f32 1.0, %v5495_v11  ;;  %3448 = vmatpush1.bf16.msra.mxu0 %v7367_v15  ;;  %3489 = vmatpush1.bf16.msra.mxu1 %v7370_v63  ;;  %v5651_v15 = vld [vmem:[#allocation6 + $0xc] ss:$16 sps:$4 sm:$0xff]  }
 0x894   :  { %v3527_v30 = vadd.f32 1.0, %v5497_v34  ;;  %3449 = vmatprep.subr.bf16.mxu0 %v7373_v31  ;;  %3490 = vmatprep.subr.bf16.mxu1 %v7376_v42  ;;  %v5499_v2 = vpop.eup %5498  ;;  %v5652_v31 = vld [vmem:[#allocation6] ss:$16 sps:$4 sm:$0xff]   ;;  %v5653_v42 = vld [vmem:[#allocation6 + $0x8] ss:$16 sps:$4 sm:$0xff]  }
 0x895   :  { %v3524_v20 = vmul.f32 0.5, %v3523_v35  ;;  %v7676_v11 = vld [vmem:[#allocation9 + $0x2c] ss:$16 sps:$4 sm:$0xff]   ;;  %v7681_v34 = vld [vmem:[#allocation9 + $0x20] ss:$16 sps:$4 sm:$0xff]  }
 0x896   :  { %v3528_v24 = vmul.f32 0.5, %v3527_v30  ;;  %v7684_v35 = vld [vmem:[#allocation9 + $0x28] ss:$16 sps:$4 sm:$0xff]   ;;  %v7687_v30 = vld [vmem:[#allocation9 + $0x44] ss:$16 sps:$4 sm:$0xff]  }
 0x897   :  { %v3535_v26 = vmul.f32 %v5499_v2, %v3524_v20  ;;  %3450 = vmatpush1.bf16.msra.mxu0 %v7379_v44  ;;  %3491 = vmatpush1.bf16.msra.mxu1 %v7382_v46  ;;  %v5655_v44 = vld [vmem:[#allocation6 + $0x2c] ss:$16 sps:$4 sm:$0xff]   ;;  %v3530_v46 = vmul.f32 0.5, %v3351_v23  ;;  %v5681_v23 = vld [vmem:[#allocation6 + $0xe8] ss:$16 sps:$4 sm:$0xff]  }
 0x898   :  { %v3534_v19 = vmul.f32 %v3528_v24, %v7560_v47  ;;  %3558 = vmatprep.subr.bf16.mxu0 %v5650_v39  ;;  %3599 = vmatprep.subr.bf16.mxu1 %v5651_v15  ;;  %v5660_v47 = vld [vmem:[#allocation6 + $0x40] ss:$16 sps:$4 sm:$0xff]   ;;  %v7690_v20 = vld [vmem:[#allocation9 + $0x4c] ss:$16 sps:$4 sm:$0xff]   ;;  %v7696_v24 = vld [vmem:[#allocation9 + $0x48] ss:$16 sps:$4 sm:$0xff]  }
 0x899   :  { %5500 = vtanh.f32 %v3530_v46  ;;  %v7693_v2 = vld [vmem:[#allocation9 + $0x40] ss:$16 sps:$4 sm:$0xff]   ;;  %v7708_v15 = vld [vmem:[#allocation9 + $0x68] ss:$16 sps:$4 sm:$0xff]   ;;  %v7723_v46 = vld [vmem:[#allocation9 + $0xa4] ss:$16 sps:$4 sm:$0xff]  }
 0x89a   :  { %v7650_v63 = vadd.f32 %v3535_v26, %v3534_v19  ;;  %3468 = vmatmul.mubr.bf16.vlgmr.msra.gmra.mrb[92].mxu0 %v7563_v13  ;;  %3509 = vmatmul.mubr.bf16.vlgmr.msra.gmra.mrb[92].mxu1 %v7563_v13  ;;  %v5661_v13 = vld [vmem:[#allocation6 + $0x48] ss:$16 sps:$4 sm:$0xff]   ;;  %v7699_v26 = vld [vmem:[#allocation9 + $0x64] ss:$16 sps:$4 sm:$0xff]   ;;  %v7702_v19 = vld [vmem:[#allocation9 + $0x6c] ss:$16 sps:$4 sm:$0xff]  }
 0x89b   :  { %3559 = vmatpush1.bf16.msra.mxu0 %v5652_v31  ;;  %3600 = vmatpush1.bf16.msra.mxu1 %v5653_v42  ;;  %v7705_v39 = vld [vmem:[#allocation9 + $0x60] ss:$16 sps:$4 sm:$0xff]   ;;  %v7711_v31 = vld [vmem:[#allocation9 + $0x84] ss:$16 sps:$4 sm:$0xff]   ;;  %v7714_v42 = vld [vmem:[#allocation9 + $0x8c] ss:$16 sps:$4 sm:$0xff]  }
 0x89c   :  { %3560 = vmatprep.subr.bf16.mxu0 %v5654_v53  ;;  %3601 = vmatprep.subr.bf16.mxu1 %v5655_v44  ;;  %5502 = vtanh.f32 %v7650_v63  ;;  %v7717_v53 = vld [vmem:[#allocation9 + $0x80] ss:$16 sps:$4 sm:$0xff]   ;;  %v7720_v44 = vld [vmem:[#allocation9 + $0x88] ss:$16 sps:$4 sm:$0xff]  }
 0x89d   :  { %3590 = vmatprep.mubr.bf16.mxu0 %v8320_v57  ;;  %3631 = vmatprep.mubr.bf16.mxu1 %v8320_v57 }
 0x89f   :  { %3561 = vmatpush1.bf16.msra.mxu0 %v5656_v9  ;;  %3602 = vmatpush1.bf16.msra.mxu1 %v5657_v54  ;;  %v7726_v9 = vld [vmem:[#allocation9 + $0xac] ss:$16 sps:$4 sm:$0xff]   ;;  %v7729_v54 = vld [vmem:[#allocation9 + $0xa0] ss:$16 sps:$4 sm:$0xff]  }
 0x8a0   :  { %3562 = vmatprep.subr.bf16.mxu0 %v5658_v4  ;;  %3603 = vmatprep.subr.bf16.mxu1 %v5659_v33  ;;  %v7732_v4 = vld [vmem:[#allocation9 + $0xa8] ss:$16 sps:$4 sm:$0xff]   ;;  %v7735_v33 = vld [vmem:[#allocation9 + $0xc4] ss:$16 sps:$4 sm:$0xff]  }
 0x8a3   :  { %3563 = vmatpush1.bf16.msra.mxu0 %v5660_v47  ;;  %3604 = vmatpush1.bf16.msra.mxu1 %v5661_v13  ;;  %v5501_v3 = vpop.eup %5500  ;;  %v7738_v47 = vld [vmem:[#allocation9 + $0xcc] ss:$16 sps:$4 sm:$0xff]   ;;  %v7741_v13 = vld [vmem:[#allocation9 + $0xc0] ss:$16 sps:$4 sm:$0xff]  }
 0x8a4   :  { %3564 = vmatprep.subr.bf16.mxu0 %v5662_v29  ;;  %3605 = vmatprep.subr.bf16.mxu1 %v5663_v58  ;;  %v3532_v38 = vadd.f32 1.0, %v5501_v3  ;;  %v7744_v29 = vld [vmem:[#allocation9 + $0xc8] ss:$16 sps:$4 sm:$0xff]   ;;  %v7747_v58 = vld [vmem:[#allocation9 + $0xe4] ss:$16 sps:$4 sm:$0xff]  }
 0x8a5   :  { %v7762_v3 = vld [vmem:[#allocation7 + $0xc] ss:$16 sps:$4 sm:$0xff]  }
 0x8a6   :  { %v5503_v10 = vpop.eup %5502  ;;  %v3533_v45 = vmul.f32 0.5, %v3532_v38  ;;  %8656 = vst [vmem:[#allocation89_spill] sm:$0xff] %v7762_v3 }
 0x8a7   :  { %3565 = vmatpush1.bf16.msra.mxu0 %v5664_v17  ;;  %3606 = vmatpush1.bf16.msra.mxu1 %v5665_v12  ;;  %v7750_v17 = vld [vmem:[#allocation9 + $0xec] ss:$16 sps:$4 sm:$0xff]   ;;  %v7753_v12 = vld [vmem:[#allocation9 + $0xe0] ss:$16 sps:$4 sm:$0xff]  }
 0x8a8   :  { %3566 = vmatprep.subr.bf16.mxu0 %v5666_v41  ;;  %3607 = vmatprep.subr.bf16.mxu1 %v5667_v50  ;;  %v3538_v59 = vmul.f32 %v5503_v10, %v3533_v45  ;;  %8653 = vst [vmem:[#allocation71_spill] sm:$0xff] %v7753_v12  ;;  %v7756_v41 = vld [vmem:[#allocation9 + $0xe8] ss:$16 sps:$4 sm:$0xff]   ;;  %v7759_v50 = vld [vmem:[#allocation7 + $0x4] ss:$16 sps:$4 sm:$0xff]  }
 0x8a9   :  { %8654 = vst [vmem:[#allocation72_spill] sm:$0xff] %v7756_v41  ;;  %8655 = vst [vmem:[#allocation73_spill] sm:$0xff] %v7759_v50 }
 0x8aa   :  { %v7657_v14 = vpack.c.bf16 %v3538_v59, %v3538_v59 }
 0x8ab   :  { %3567 = vmatpush1.bf16.msra.mxu0 %v5668_v6  ;;  %3608 = vmatpush1.bf16.msra.mxu1 %v5669_v61 }
 0x8ac   :  { %3568 = vmatprep.subr.bf16.mxu0 %v5670_v28  ;;  %3609 = vmatprep.subr.bf16.mxu1 %v5671_v7 }
 0x8af   :  { %3569 = vmatpush1.bf16.msra.mxu0 %v5672_v40  ;;  %3610 = vmatpush1.bf16.msra.mxu1 %v5673_v36 }
 0x8b0   :  { %3570 = vmatprep.subr.bf16.mxu0 %v5674_v25  ;;  %3611 = vmatprep.subr.bf16.mxu1 %v5675_v55 }
 0x8b3   :  { %3571 = vmatpush1.bf16.msra.mxu0 %v5676_v37  ;;  %3612 = vmatpush1.bf16.msra.mxu1 %v5677_v49 }
 0x8b4   :  { %3572 = vmatprep.subr.bf16.mxu0 %v5678_v27  ;;  %3613 = vmatprep.subr.bf16.mxu1 %v5679_v22 }
 0x8b7   :  { %3573 = vmatpush1.bf16.msra.mxu0 %v5680_v16  ;;  %3614 = vmatpush1.bf16.msra.mxu1 %v5681_v23 }
 0x8b8   :  { %3645 = vmatprep.subr.bf16.mxu0 %v7659_v18  ;;  %3686 = vmatprep.subr.bf16.mxu1 %v7662_v48 }
 0x8ba   :  { %3591 = vmatmul.mubr.bf16.vlgmr.msra.gmra.mrb[96].mxu0 %v7657_v14  ;;  %3632 = vmatmul.mubr.bf16.vlgmr.msra.gmra.mrb[96].mxu1 %v7657_v14 }
 0x8bb   :  { %3646 = vmatpush1.bf16.msra.mxu0 %v7667_v5  ;;  %3687 = vmatpush1.bf16.msra.mxu1 %v7670_v21 }
 0x8bc   :  { %3647 = vmatprep.subr.bf16.mxu0 %v7673_v56  ;;  %3688 = vmatprep.subr.bf16.mxu1 %v7676_v11 }
 0x8bd   :  { %3677 = vmatprep.mubr.bf16.mxu0 %v8320_v57  ;;  %3718 = vmatprep.mubr.bf16.mxu1 %v8320_v57 }
 0x8bf   :  { %3648 = vmatpush1.bf16.msra.mxu0 %v7681_v34  ;;  %3689 = vmatpush1.bf16.msra.mxu1 %v7684_v35 }
 0x8c0   :  { %3649 = vmatprep.subr.bf16.mxu0 %v7687_v30  ;;  %3690 = vmatprep.subr.bf16.mxu1 %v7690_v20 }
 0x8c3   :  { %3650 = vmatpush1.bf16.msra.mxu0 %v7693_v2  ;;  %3691 = vmatpush1.bf16.msra.mxu1 %v7696_v24 }
 0x8c4   :  { %3651 = vmatprep.subr.bf16.mxu0 %v7699_v26  ;;  %3692 = vmatprep.subr.bf16.mxu1 %v7702_v19 }
 0x8c7   :  { %3652 = vmatpush1.bf16.msra.mxu0 %v7705_v39  ;;  %3693 = vmatpush1.bf16.msra.mxu1 %v7708_v15 }
 0x8c8   :  { %3653 = vmatprep.subr.bf16.mxu0 %v7711_v31  ;;  %3694 = vmatprep.subr.bf16.mxu1 %v7714_v42 }
 0x8cb   :  { %3654 = vmatpush1.bf16.msra.mxu0 %v7717_v53  ;;  %3695 = vmatpush1.bf16.msra.mxu1 %v7720_v44 }
 0x8cc   :  { %3655 = vmatprep.subr.bf16.mxu0 %v7723_v46  ;;  %3696 = vmatprep.subr.bf16.mxu1 %v7726_v9 }
 0x8cf   :  { %3656 = vmatpush1.bf16.msra.mxu0 %v7729_v54  ;;  %3697 = vmatpush1.bf16.msra.mxu1 %v7732_v4 }
 0x8d0   :  { %3657 = vmatprep.subr.bf16.mxu0 %v7735_v33  ;;  %3698 = vmatprep.subr.bf16.mxu1 %v7738_v47 }
 0x8d3   :  { %3658 = vmatpush1.bf16.msra.mxu0 %v7741_v13  ;;  %3699 = vmatpush1.bf16.msra.mxu1 %v7744_v29 }
 0x8d4   :  { %3659 = vmatprep.subr.bf16.mxu0 %v7747_v58  ;;  %3700 = vmatprep.subr.bf16.mxu1 %v7750_v17 }
 0x8d7   :  { %3660 = vmatpush1.bf16.msra.mxu0 %v7753_v12  ;;  %3701 = vmatpush1.bf16.msra.mxu1 %v7756_v41 }
 0x8d8   :  { %3727 = vmatprep.subr.bf16.mxu0 %v7759_v50  ;;  %3768 = vmatprep.subr.bf16.mxu1 %v7762_v3 }
 0x94d   :  { %v3387_v6 = vpop.f32.mrb[88].mxu0  ;;  %v3428_v61 = vpop.f32.mrb[88].mxu1 }
 0x94e   :  { %v3389_v28 = vpop.f32.mrb[89].mxu0  ;;  %v3430_v7 = vpop.f32.mrb[89].mxu1 }
 0x94f   :  { %v3391_v38 = vpop.f32.mrb[90].mxu0  ;;  %v3432_v40 = vpop.f32.mrb[90].mxu1 }
 0x950   :  { %v3392_v36 = vpop.f32.mrb[91].mxu0  ;;  %v3433_v25 = vpop.f32.mrb[91].mxu1 }
 0x96d   :  { %v3469_v55 = vpop.f32.mrb[92].mxu0  ;;  %v3510_v10 = vpop.f32.mrb[92].mxu1 }
 0x96e   :  { %v3470_v45 = vadd.f32 %v3469_v55, %v3387_v6  ;;  %v3511_v37 = vadd.f32 %v3510_v10, %v3428_v61  ;;  %v3471_v49 = vpop.f32.mrb[93].mxu0  ;;  %v3512_v59 = vpop.f32.mrb[93].mxu1 }
 0x96f   :  { %v3472_v27 = vadd.f32 %v3471_v49, %v3389_v28  ;;  %v3513_v22 = vadd.f32 %v3512_v59, %v3430_v7  ;;  %v3473_v16 = vpop.f32.mrb[94].mxu0  ;;  %v3514_v23 = vpop.f32.mrb[94].mxu1  ;;  %v8657_v49 = vld [vmem:[#allocation105_spill] sm:$0xff] }
 0x970   :  { %v3517_v3 = vadd.f32 %v3470_v45, %v8462_v60  ;;  %v3474_v50 = vpop.f32.mrb[95].mxu0  ;;  %v3515_v41 = vpop.f32.mrb[95].mxu1  ;;  %v3519_v36 = vadd.f32 %v3511_v37, %v6889_v52  ;;  %v1113_v59 = vadd.f32 %v8657_v49, %v8587_v62  ;;  %v8659_v16 = vld [vmem:[#allocation107_spill] sm:$0xff] }
 0x971   :  { %v3518_v12 = vadd.f32 %v3472_v27, %v8463_v8  ;;  %v3520_v6 = vadd.f32 %v3513_v22, %v6899_v1  ;;  %v8658_v27 = vld [vmem:[#allocation106_spill] sm:$0xff]  ;;  %v1115_v23 = vadd.f32 %v8659_v16, %v8593_v0  ;;  %v7790_v16 = vld [vmem:[#allocation7 + $0x2c] ss:$16 sps:$4 sm:$0xff]  }
 0x972   :  { %v3539_v38 = vmul.f32 0.5, %v3517_v3  ;;  %v1186_v22 = vadd.f32 %v8658_v27, %v8589_v43  ;;  %v7784_v27 = vld [vmem:[#allocation7 + $0x8] ss:$16 sps:$4 sm:$0xff]  }
 0x973   :  { %v3543_v40 = vmul.f32 0.5, %v3518_v12  ;;  %v3548_v61 = vmul.f32 0.5, %v3520_v6 }
 0x974   :  { %5504 = vtanh.f32 %v3539_v38  ;;  %v8660_v38 = vld [vmem:[#allocation108_spill] sm:$0xff] }
 0x975   :  { %5506 = vtanh.f32 %v3543_v40  ;;  %v1188_v40 = vadd.f32 %v8660_v38, %v8595_v51 }
 0x976   :  { %5508 = vtanh.f32 %v3519_v36 }
 0x977   :  { %5510 = vtanh.f32 %v3548_v61 }
 0x97e   :  { %v5505_v28 = vpop.eup %5504 }
 0x97f   :  { %v5507_v7 = vpop.eup %5506  ;;  %v3541_v25 = vadd.f32 1.0, %v5505_v28 }
 0x980   :  { %v3545_v55 = vadd.f32 1.0, %v5507_v7  ;;  %v5509_v50 = vpop.eup %5508 }
 0x981   :  { %v3542_v10 = vmul.f32 0.5, %v3541_v25  ;;  %v5511_v37 = vpop.eup %5510 }
 0x982   :  { %v3546_v41 = vmul.f32 0.5, %v3545_v55  ;;  %v3550_v36 = vadd.f32 1.0, %v5511_v37 }
 0x983   :  { %v3553_v45 = vmul.f32 %v5509_v50, %v3542_v10 }
 0x984   :  { %v3552_v3 = vmul.f32 %v3546_v41, %v7606_v32 }
 0x986   :  { %v7770_v12 = vadd.f32 %v3553_v45, %v3552_v3  ;;  %v3551_v3 = vmul.f32 0.5, %v3550_v36  ;;  %v7798_v36 = vld [vmem:[#allocation7 + $0x28] ss:$16 sps:$4 sm:$0xff]  }
 0x988   :  { %5512 = vtanh.f32 %v7770_v12 }
 0x98d   :  { %v3592_v6 = vpop.f32.mrb[96].mxu0  ;;  %v3633_v32 = vpop.f32.mrb[96].mxu1 }
 0x98e   :  { %v3640_v61 = vadd.f32 %v3592_v6, %v1113_v59  ;;  %v3642_v28 = vadd.f32 %v3633_v32, %v1186_v22  ;;  %v3594_v7 = vpop.f32.mrb[97].mxu0  ;;  %v3635_v25 = vpop.f32.mrb[97].mxu1  ;;  %v7781_v59 = vld [vmem:[#allocation7] ss:$16 sps:$4 sm:$0xff]   ;;  %v7787_v22 = vld [vmem:[#allocation7 + $0x24] ss:$16 sps:$4 sm:$0xff]  }
 0x98f   :  { %v3641_v55 = vadd.f32 %v3594_v7, %v1115_v23  ;;  %v3643_v10 = vadd.f32 %v3635_v25, %v1188_v40  ;;  %v3596_v50 = vpop.f32.mrb[98].mxu0  ;;  %v3637_v62 = vpop.f32.mrb[98].mxu1  ;;  %v7795_v40 = vld [vmem:[#allocation7 + $0x20] ss:$16 sps:$4 sm:$0xff]  }
 0x990   :  { %v3813_v41 = vmul.f32 0.5, %v3640_v61  ;;  %v3597_v45 = vpop.f32.mrb[99].mxu0  ;;  %v3638_v43 = vpop.f32.mrb[99].mxu1  ;;  %v7801_v61 = vld [vmem:[#allocation7 + $0x44] ss:$16 sps:$4 sm:$0xff]  }
 0x991   :  { %v3817_v49 = vmul.f32 0.5, %v3641_v55  ;;  %v3822_v23 = vmul.f32 0.5, %v3643_v10  ;;  %v7807_v50 = vld [vmem:[#allocation7 + $0x40] ss:$16 sps:$4 sm:$0xff]   ;;  %v7810_v62 = vld [vmem:[#allocation7 + $0x48] ss:$16 sps:$4 sm:$0xff]  }
 0x992   :  { %v5513_v0 = vpop.eup %5512  ;;  %5514 = vtanh.f32 %v3813_v41  ;;  %v7813_v45 = vld [vmem:[#allocation7 + $0x64] ss:$16 sps:$4 sm:$0xff]   ;;  %v7816_v43 = vld [vmem:[#allocation7 + $0x6c] ss:$16 sps:$4 sm:$0xff]  }
 0x993   :  { %5516 = vtanh.f32 %v3817_v49  ;;  %v3556_v51 = vmul.f32 %v5513_v0, %v3551_v3  ;;  %v7820_v0 = vld [vmem:[#allocation7 + $0x60] ss:$16 sps:$4 sm:$0xff]  }
 0x994   :  { %5518 = vtanh.f32 %v3642_v28  ;;  %v7804_v28 = vld [vmem:[#allocation7 + $0x4c] ss:$16 sps:$4 sm:$0xff]  }
 0x995   :  { %v3644_v37 = vpack.c.bf16 %v3556_v51, %v3556_v51  ;;  %5520 = vtanh.f32 %v3822_v23  ;;  %v7823_v51 = vld [vmem:[#allocation7 + $0x68] ss:$16 sps:$4 sm:$0xff]   ;;  %v7829_v23 = vld [vmem:[#allocation7 + $0x8c] ss:$16 sps:$4 sm:$0xff]  }
 0x997   :  { %3678 = vmatmul.mubr.bf16.vlgmr.msra.gmra.mrb[100].mxu0 %v3644_v37  ;;  %3719 = vmatmul.mubr.bf16.vlgmr.msra.gmra.mrb[100].mxu1 %v3644_v37  ;;  %v7826_v37 = vld [vmem:[#allocation7 + $0x84] ss:$16 sps:$4 sm:$0xff]  }
 0x998   :  { %3728 = vmatpush1.bf16.msra.mxu0 %v7781_v59  ;;  %3769 = vmatpush1.bf16.msra.mxu1 %v7784_v27 }
 0x999   :  { %3729 = vmatprep.subr.bf16.mxu0 %v7787_v22  ;;  %3770 = vmatprep.subr.bf16.mxu1 %v7790_v16 }
 0x99a   :  { %3759 = vmatprep.mubr.bf16.mxu0 %v8320_v57  ;;  %3800 = vmatprep.mubr.bf16.mxu1 %v8320_v57 }
 0x99c   :  { %v5515_v38 = vpop.eup %5514  ;;  %3730 = vmatpush1.bf16.msra.mxu0 %v7795_v40  ;;  %3771 = vmatpush1.bf16.msra.mxu1 %v7798_v36 }
 0x99d   :  { %v5517_v6 = vpop.eup %5516  ;;  %v3815_v32 = vadd.f32 1.0, %v5515_v38  ;;  %3731 = vmatprep.subr.bf16.mxu0 %v7801_v61  ;;  %3772 = vmatprep.subr.bf16.mxu1 %v7804_v28 }
 0x99e   :  { %v3819_v7 = vadd.f32 1.0, %v5517_v6  ;;  %v5519_v55 = vpop.eup %5518  ;;  %v7835_v6 = vld [vmem:[#allocation7 + $0x88] ss:$16 sps:$4 sm:$0xff]  }
 0x99f   :  { %v3816_v25 = vmul.f32 0.5, %v3815_v32  ;;  %v5521_v38 = vpop.eup %5520  ;;  %v7838_v32 = vld [vmem:[#allocation7 + $0xa4] ss:$16 sps:$4 sm:$0xff]  }
 0x9a0   :  { %v3820_v10 = vmul.f32 0.5, %v3819_v7  ;;  %3732 = vmatpush1.bf16.msra.mxu0 %v7807_v50  ;;  %3773 = vmatpush1.bf16.msra.mxu1 %v7810_v62  ;;  %8661 = vst [vmem:[#allocation90_spill] sm:$0xff] %v7838_v32  ;;  %v7841_v7 = vld [vmem:[#allocation7 + $0xac] ss:$16 sps:$4 sm:$0xff]  }
 0x9a1   :  { %v3827_v41 = vmul.f32 %v5519_v55, %v3816_v25  ;;  %3733 = vmatprep.subr.bf16.mxu0 %v7813_v45  ;;  %3774 = vmatprep.subr.bf16.mxu1 %v7816_v43  ;;  %8662 = vst [vmem:[#allocation91_spill] sm:$0xff] %v7841_v7  ;;  %v3824_v25 = vadd.f32 1.0, %v5521_v38  ;;  %v7844_v55 = vld [vmem:[#allocation7 + $0xa0] ss:$16 sps:$4 sm:$0xff]  }
 0x9a2   :  { %v3826_v3 = vmul.f32 %v3820_v10, %v7650_v63  ;;  %v7832_v63 = vld [vmem:[#allocation7 + $0x80] ss:$16 sps:$4 sm:$0xff]   ;;  %8663 = vst [vmem:[#allocation92_spill] sm:$0xff] %v7844_v55  ;;  %v7847_v10 = vld [vmem:[#allocation7 + $0xa8] ss:$16 sps:$4 sm:$0xff]  }
 0x9a3   :  { %8664 = vst [vmem:[#allocation93_spill] sm:$0xff] %v7847_v10  ;;  %v7858_v38 = vld [vmem:[#allocation7 + $0xc0] ss:$16 sps:$4 sm:$0xff]  }
 0x9a4   :  { %v3828_v49 = vadd.f32 %v3827_v41, %v3826_v3  ;;  %3734 = vmatpush1.bf16.msra.mxu0 %v7820_v0  ;;  %3775 = vmatpush1.bf16.msra.mxu1 %v7823_v51  ;;  %v7850_v41 = vld [vmem:[#allocation7 + $0xc4] ss:$16 sps:$4 sm:$0xff]   ;;  %v7853_v3 = vld [vmem:[#allocation7 + $0xcc] ss:$16 sps:$4 sm:$0xff]   ;;  %8666 = vst [vmem:[#allocation95_spill] sm:$0xff] %v7858_v38 }
 0x9a5   :  { %3735 = vmatprep.subr.bf16.mxu0 %v7826_v37  ;;  %3776 = vmatprep.subr.bf16.mxu1 %v7829_v23  ;;  %8665 = vst [vmem:[#allocation94_spill] sm:$0xff] %v7850_v41 }
 0x9a6   :  { %5522 = vtanh.f32 %v3828_v49  ;;  %v3825_v49 = vmul.f32 0.5, %v3824_v25  ;;  %v7873_v25 = vld [vmem:[#allocation7 + $0xe0] ss:$16 sps:$4 sm:$0xff]  }
 0x9a8   :  { %3736 = vmatpush1.bf16.msra.mxu0 %v7832_v63  ;;  %3777 = vmatpush1.bf16.msra.mxu1 %v7835_v6 }
 0x9a9   :  { %3737 = vmatprep.subr.bf16.mxu0 %v7838_v32  ;;  %3778 = vmatprep.subr.bf16.mxu1 %v7841_v7  ;;  %v7867_v7 = vld [vmem:[#allocation7 + $0xe4] ss:$16 sps:$4 sm:$0xff]  }
 0x9ac   :  { %3738 = vmatpush1.bf16.msra.mxu0 %v7844_v55  ;;  %3779 = vmatpush1.bf16.msra.mxu1 %v7847_v10  ;;  %v7861_v55 = vld [vmem:[#allocation7 + $0xc8] ss:$16 sps:$4 sm:$0xff]  }
 0x9ad   :  { %3739 = vmatprep.subr.bf16.mxu0 %v7850_v41  ;;  %3780 = vmatprep.subr.bf16.mxu1 %v7853_v3  ;;  %v7870_v41 = vld [vmem:[#allocation7 + $0xec] ss:$16 sps:$4 sm:$0xff]  }
 0x9b0   :  { %v7856_v32 = vpop.eup %5522  ;;  %3740 = vmatpush1.bf16.msra.mxu0 %v7858_v38  ;;  %3781 = vmatpush1.bf16.msra.mxu1 %v7861_v55  ;;  %v7876_v38 = vld [vmem:[#allocation7 + $0xe8] ss:$16 sps:$4 sm:$0xff]  }
 0x9b1   :  { %v7865_v10 = vmul.f32 %v7856_v32, %v3825_v49  ;;  %3741 = vmatprep.subr.bf16.mxu0 %v7867_v7  ;;  %3782 = vmatprep.subr.bf16.mxu1 %v7870_v41 }
 0x9b4   :  { %3742 = vmatpush1.bf16.msra.mxu0 %v7873_v25  ;;  %3783 = vmatpush1.bf16.msra.mxu1 %v7876_v38 }
 0x9b5   :  { %3851 = vmatprep.subr.bf16.mxu0 %v7659_v18  ;;  %3892 = vmatprep.subr.bf16.mxu1 %v7662_v48  ;;  %v8668_v18 = vld [vmem:[#allocation72_spill] sm:$0xff]  ;;  %v8669_v48 = vld [vmem:[#allocation73_spill] sm:$0xff] }
 0x9b7   :  { %3760 = vmatmul.mubr.bf16.vlgmr.msra.gmra.mrb[104].mxu0 %v7657_v14  ;;  %3801 = vmatmul.mubr.bf16.vlgmr.msra.gmra.mrb[104].mxu1 %v7657_v14  ;;  %v8667_v14 = vld [vmem:[#allocation71_spill] sm:$0xff] }
 0x9b8   :  { %3852 = vmatpush1.bf16.msra.mxu0 %v7667_v5  ;;  %3893 = vmatpush1.bf16.msra.mxu1 %v7670_v21  ;;  %v8670_v5 = vld [vmem:[#allocation89_spill] sm:$0xff] }
 0x9b9   :  { %3853 = vmatprep.subr.bf16.mxu0 %v7673_v56  ;;  %3894 = vmatprep.subr.bf16.mxu1 %v7676_v11 }
 0x9ba   :  { %3883 = vmatprep.mubr.bf16.mxu0 %v8320_v57  ;;  %3924 = vmatprep.mubr.bf16.mxu1 %v8320_v57 }
 0x9bc   :  { %3854 = vmatpush1.bf16.msra.mxu0 %v7681_v34  ;;  %3895 = vmatpush1.bf16.msra.mxu1 %v7684_v35 }
 0x9bd   :  { %3855 = vmatprep.subr.bf16.mxu0 %v7687_v30  ;;  %3896 = vmatprep.subr.bf16.mxu1 %v7690_v20 }
 0x9c0   :  { %3856 = vmatpush1.bf16.msra.mxu0 %v7693_v2  ;;  %3897 = vmatpush1.bf16.msra.mxu1 %v7696_v24 }
 0x9c1   :  { %3857 = vmatprep.subr.bf16.mxu0 %v7699_v26  ;;  %3898 = vmatprep.subr.bf16.mxu1 %v7702_v19 }
 0x9c4   :  { %3858 = vmatpush1.bf16.msra.mxu0 %v7705_v39  ;;  %3899 = vmatpush1.bf16.msra.mxu1 %v7708_v15 }
 0x9c5   :  { %3859 = vmatprep.subr.bf16.mxu0 %v7711_v31  ;;  %3900 = vmatprep.subr.bf16.mxu1 %v7714_v42 }
 0x9c8   :  { %3860 = vmatpush1.bf16.msra.mxu0 %v7717_v53  ;;  %3901 = vmatpush1.bf16.msra.mxu1 %v7720_v44 }
 0x9c9   :  { %3861 = vmatprep.subr.bf16.mxu0 %v7723_v46  ;;  %3902 = vmatprep.subr.bf16.mxu1 %v7726_v9 }
 0x9cc   :  { %3862 = vmatpush1.bf16.msra.mxu0 %v7729_v54  ;;  %3903 = vmatpush1.bf16.msra.mxu1 %v7732_v4 }
 0x9cd   :  { %3863 = vmatprep.subr.bf16.mxu0 %v7735_v33  ;;  %3904 = vmatprep.subr.bf16.mxu1 %v7738_v47 }
 0x9d0   :  { %3864 = vmatpush1.bf16.msra.mxu0 %v7741_v13  ;;  %3905 = vmatpush1.bf16.msra.mxu1 %v7744_v29 }
 0x9d1   :  { %3865 = vmatprep.subr.bf16.mxu0 %v7747_v58  ;;  %3906 = vmatprep.subr.bf16.mxu1 %v7750_v17 }
 0x9d4   :  { %3866 = vmatpush1.bf16.msra.mxu0 %v8667_v14  ;;  %3907 = vmatpush1.bf16.msra.mxu1 %v8668_v18 }
 0x9d5   :  { %3933 = vmatprep.subr.bf16.mxu0 %v8669_v48  ;;  %3974 = vmatprep.subr.bf16.mxu1 %v8670_v5 }
 0xa6a   :  { %v3679_v21 = vpop.f32.mrb[100].mxu0  ;;  %v3720_v56 = vpop.f32.mrb[100].mxu1 }
 0xa6b   :  { %v3681_v11 = vpop.f32.mrb[101].mxu0  ;;  %v3722_v34 = vpop.f32.mrb[101].mxu1 }
 0xa6c   :  { %v3683_v35 = vpop.f32.mrb[102].mxu0  ;;  %v3724_v30 = vpop.f32.mrb[102].mxu1 }
 0xa6d   :  { %v3684_v20 = vpop.f32.mrb[103].mxu0  ;;  %v3725_v2 = vpop.f32.mrb[103].mxu1 }
 0xa8a   :  { %v3761_v24 = vpop.f32.mrb[104].mxu0  ;;  %v3802_v26 = vpop.f32.mrb[104].mxu1 }
 0xa8b   :  { %v3762_v19 = vadd.f32 %v3761_v24, %v3679_v21  ;;  %v3803_v39 = vadd.f32 %v3802_v26, %v3720_v56  ;;  %v3763_v15 = vpop.f32.mrb[105].mxu0  ;;  %v3804_v31 = vpop.f32.mrb[105].mxu1 }
 0xa8c   :  { %v3764_v42 = vadd.f32 %v3763_v15, %v3681_v11  ;;  %v3805_v53 = vadd.f32 %v3804_v31, %v3722_v34  ;;  %v3765_v44 = vpop.f32.mrb[106].mxu0  ;;  %v3806_v46 = vpop.f32.mrb[106].mxu1  ;;  %v5338_v15 = vld [vmem:[#allocation10 + $0xc8] sm:$0xff]  }
 0xa8d   :  { %v3809_v9 = vadd.f32 %v3762_v19, %v8462_v60  ;;  %v3766_v54 = vpop.f32.mrb[107].mxu0  ;;  %v3807_v4 = vpop.f32.mrb[107].mxu1  ;;  %v3811_v29 = vadd.f32 %v3803_v39, %v6889_v52  ;;  %v5337_v39 = vld [vmem:[#allocation10 + $0x80] sm:$0xff]   ;;  %v5339_v31 = vld [vmem:[#allocation10 + $0x88] sm:$0xff]   ;;  %v5342_v44 = vld [vmem:[#allocation10 + $0xd8] sm:$0xff]  }
 0xa8e   :  { %v3810_v33 = vadd.f32 %v3764_v42, %v8463_v8  ;;  %v3812_v58 = vadd.f32 %v3805_v53, %v6899_v1  ;;  %v5340_v42 = vld [vmem:[#allocation10 + $0xd0] sm:$0xff]   ;;  %v5343_v46 = vld [vmem:[#allocation10 + $0x98] sm:$0xff]   ;;  %v5345_v54 = vld [vmem:[#allocation10 + $0xa0] sm:$0xff]  }
 0xa8f   :  { %v3831_v47 = vmul.f32 0.5, %v3809_v9  ;;  %v5341_v53 = vld [vmem:[#allocation10 + $0x90] sm:$0xff]   ;;  %v5344_v9 = vld [vmem:[#allocation10 + $0xe0] sm:$0xff]   ;;  %v5346_v4 = vld [vmem:[#allocation10 + $0xe8] sm:$0xff]  }
 0xa90   :  { %v3835_v13 = vmul.f32 0.5, %v3810_v33  ;;  %v3840_v17 = vmul.f32 0.5, %v3812_v58  ;;  %v5347_v33 = vld [vmem:[#allocation10 + $0xa8] sm:$0xff]   ;;  %v5351_v58 = vld [vmem:[#allocation10 + $0xb8] sm:$0xff]  }
 0xa91   :  { %5524 = vtanh.f32 %v3831_v47  ;;  %v5348_v47 = vld [vmem:[#allocation10 + $0xf0] sm:$0xff]  }
 0xa92   :  { %5526 = vtanh.f32 %v3835_v13  ;;  %v5349_v13 = vld [vmem:[#allocation10 + $0xb0] sm:$0xff]  }
 0xa93   :  { %5528 = vtanh.f32 %v3811_v29  ;;  %v5350_v29 = vld [vmem:[#allocation10 + $0xf8] sm:$0xff]  }
 0xa94   :  { %5530 = vtanh.f32 %v3840_v17  ;;  %v5352_v17 = vld [vmem:[#allocation12] sm:$0xff]  }
 0xa9b   :  { %v5525_v49 = vpop.eup %5524 }
 0xa9c   :  { %v5527_v14 = vpop.eup %5526  ;;  %v3833_v18 = vadd.f32 1.0, %v5525_v49  ;;  %v5353_v49 = vld [vmem:[#allocation12 + $0x8] sm:$0xff]  }
 0xa9d   :  { %v3837_v48 = vadd.f32 1.0, %v5527_v14  ;;  %v5529_v21 = vpop.eup %5528  ;;  %v5354_v14 = vld [vmem:[#allocation12 + $0x10] sm:$0xff]  }
 0xa9e   :  { %v3834_v5 = vmul.f32 0.5, %v3833_v18  ;;  %v5531_v30 = vpop.eup %5530 }
 0xa9f   :  { %v3838_v56 = vmul.f32 0.5, %v3837_v48  ;;  %v3842_v20 = vadd.f32 1.0, %v5531_v30 }
 0xaa0   :  { %v3845_v11 = vmul.f32 %v5529_v21, %v3834_v5 }
 0xaa1   :  { %v3844_v34 = vmul.f32 %v3838_v56, %v7770_v12  ;;  %v3843_v2 = vmul.f32 0.5, %v3842_v20  ;;  %v8672_v12 = vld [vmem:[#allocation91_spill] sm:$0xff] }
 0xaa3   :  { %v7922_v35 = vadd.f32 %v3845_v11, %v3844_v34 }
 0xaa5   :  { %5532 = vtanh.f32 %v7922_v35 }
 0xaa6   :  { %5534 = vtanh.f32 %v7865_v10 }
 0xaaf   :  { %v5533_v24 = vpop.eup %5532 }
 0xab0   :  { %v3848_v26 = vmul.f32 %v5533_v24, %v3843_v2 }
 0xab2   :  { %v3850_v19 = vpack.c.bf16 %v3848_v26, %v3848_v26 }
 0xab4   :  { %3884 = vmatmul.mubr.bf16.vlgmr.msra.gmra.mrb[108].mxu0 %v3850_v19  ;;  %3925 = vmatmul.mubr.bf16.vlgmr.msra.gmra.mrb[108].mxu1 %v3850_v19 }
 0xab5   :  { %3934 = vmatpush1.bf16.msra.mxu0 %v7781_v59  ;;  %3975 = vmatpush1.bf16.msra.mxu1 %v7784_v27  ;;  %v8673_v59 = vld [vmem:[#allocation92_spill] sm:$0xff]  ;;  %v8674_v27 = vld [vmem:[#allocation93_spill] sm:$0xff] }
 0xab6   :  { %3935 = vmatprep.subr.bf16.mxu0 %v7787_v22  ;;  %3976 = vmatprep.subr.bf16.mxu1 %v7790_v16  ;;  %v8675_v22 = vld [vmem:[#allocation94_spill] sm:$0xff]  ;;  %v8676_v16 = vld [vmem:[#allocation95_spill] sm:$0xff] }
 0xab7   :  { %3965 = vmatprep.mubr.bf16.mxu0 %v8320_v57  ;;  %4006 = vmatprep.mubr.bf16.mxu1 %v8320_v57  ;;  %v8671_v57 = vld [vmem:[#allocation90_spill] sm:$0xff] }
 0xab9   :  { %3936 = vmatpush1.bf16.msra.mxu0 %v7795_v40  ;;  %3977 = vmatpush1.bf16.msra.mxu1 %v7798_v36  ;;  %v5320_v40 = vld [vmem:[#allocation10 + $0x40] sm:$0xff]  }
 0xaba   :  { %3937 = vmatprep.subr.bf16.mxu0 %v7801_v61  ;;  %3978 = vmatprep.subr.bf16.mxu1 %v7804_v28  ;;  %v5321_v36 = vld [vmem:[#allocation10] sm:$0xff]   ;;  %v3849_v61 = vpack.c.bf16 %v7865_v10, %v7865_v10  ;;  %v5322_v28 = vld [vmem:[#allocation10 + $0x48] sm:$0xff]  }
 0xabb   :  { %v5336_v10 = vld [vmem:[#allocation10 + $0xc0] sm:$0xff]  }
 0xabd   :  { %3938 = vmatpush1.bf16.msra.mxu0 %v7807_v50  ;;  %3979 = vmatpush1.bf16.msra.mxu1 %v7810_v62  ;;  %v4104_v50 = vpack.c.bf16 %v7856_v32, %v7856_v32  ;;  %v5323_v62 = vld [vmem:[#allocation10 + $0x8] sm:$0xff]   ;;  %v5332_v32 = vld [vmem:[#allocation10 + $0x70] sm:$0xff]  }
 0xabe   :  { %3939 = vmatprep.subr.bf16.mxu0 %v7813_v45  ;;  %3980 = vmatprep.subr.bf16.mxu1 %v7816_v43  ;;  %v5324_v45 = vld [vmem:[#allocation10 + $0x50] sm:$0xff]  }
 0xabf   :  { %v5325_v43 = vld [vmem:[#allocation10 + $0x10] sm:$0xff]  }
 0xac1   :  { %3940 = vmatpush1.bf16.msra.mxu0 %v7820_v0  ;;  %3981 = vmatpush1.bf16.msra.mxu1 %v7823_v51  ;;  %v5326_v0 = vld [vmem:[#allocation10 + $0x58] sm:$0xff]  }
 0xac2   :  { %3941 = vmatprep.subr.bf16.mxu0 %v7826_v37  ;;  %3982 = vmatprep.subr.bf16.mxu1 %v7829_v23  ;;  %v5327_v51 = vld [vmem:[#allocation10 + $0x18] sm:$0xff]   ;;  %v5328_v37 = vld [vmem:[#allocation10 + $0x60] sm:$0xff]  }
 0xac3   :  { %v5329_v23 = vld [vmem:[#allocation10 + $0x20] sm:$0xff]  }
 0xac5   :  { %3942 = vmatpush1.bf16.msra.mxu0 %v7832_v63  ;;  %3983 = vmatpush1.bf16.msra.mxu1 %v7835_v6  ;;  %v5330_v63 = vld [vmem:[#allocation10 + $0x68] sm:$0xff]  }
 0xac6   :  { %3943 = vmatprep.subr.bf16.mxu0 %v8671_v57  ;;  %3984 = vmatprep.subr.bf16.mxu1 %v8672_v12  ;;  %v5331_v6 = vld [vmem:[#allocation10 + $0x28] sm:$0xff]  }
 0xac9   :  { %3944 = vmatpush1.bf16.msra.mxu0 %v8673_v59  ;;  %3985 = vmatpush1.bf16.msra.mxu1 %v8674_v27 }
 0xaca   :  { %3945 = vmatprep.subr.bf16.mxu0 %v8675_v22  ;;  %3986 = vmatprep.subr.bf16.mxu1 %v7853_v3  ;;  %v5535_v3 = vpop.eup %5534 }
 0xacd   :  { %3946 = vmatpush1.bf16.msra.mxu0 %v8676_v16  ;;  %3987 = vmatpush1.bf16.msra.mxu1 %v7861_v55  ;;  %v5334_v55 = vld [vmem:[#allocation10 + $0x78] sm:$0xff]  }
 0xace   :  { %3947 = vmatprep.subr.bf16.mxu0 %v7867_v7  ;;  %3988 = vmatprep.subr.bf16.mxu1 %v7870_v41  ;;  %v5333_v7 = vld [vmem:[#allocation10 + $0x30] sm:$0xff]   ;;  %v5335_v41 = vld [vmem:[#allocation10 + $0x38] sm:$0xff]  }
 0xad1   :  { %3948 = vmatpush1.bf16.msra.mxu0 %v7873_v25  ;;  %3989 = vmatpush1.bf16.msra.mxu1 %v7876_v38  ;;  %v4103_v38 = vpack.c.bf16 %v5535_v3, %v5535_v3  ;;  %v8677_v25 = vmov 0.0  }
 0xad2   :  { %4935 = vmatprep.subr.bf16.mxu0 %v5320_v40  ;;  %4957 = vmatprep.subr.bf16.mxu1 %v5336_v10 }
 0xad4   :  { %3966 = vmatmul.mubr.bf16.vlgmr.msra.gmra.mrb[112].mxu0 %v3849_v61  ;;  %4007 = vmatmul.mubr.bf16.vlgmr.msra.gmra.mrb[112].mxu1 %v3849_v61 }
 0xad5   :  { %4936 = vmatpush3.bf16.msra.mxu0 %v5321_v36  ;;  %4338 = vmatprep.mubr.bf16.mxu0 %v4104_v50 }
 0xad6   :  { %4937 = vmatprep.subr.bf16.mxu0 %v5322_v28  ;;  %4958 = vmatpush3.bf16.msra.mxu1 %v5337_v39 }
 0xad7   :  { %4959 = vmatprep.subr.bf16.mxu1 %v5338_v15 }
 0xad9   :  { %4938 = vmatpush3.bf16.msra.mxu0 %v5323_v62 }
 0xada   :  { %4939 = vmatprep.subr.bf16.mxu0 %v5324_v45  ;;  %4960 = vmatpush3.bf16.msra.mxu1 %v5339_v31 }
 0xadb   :  { %4961 = vmatprep.subr.bf16.mxu1 %v5340_v42 }
 0xadd   :  { %4940 = vmatpush3.bf16.msra.mxu0 %v5325_v43 }
 0xade   :  { %4941 = vmatprep.subr.bf16.mxu0 %v5326_v0  ;;  %4962 = vmatpush3.bf16.msra.mxu1 %v5341_v53 }
 0xadf   :  { %4963 = vmatprep.subr.bf16.mxu1 %v5342_v44 }
 0xae1   :  { %4942 = vmatpush3.bf16.msra.mxu0 %v5327_v51 }
 0xae2   :  { %4943 = vmatprep.subr.bf16.mxu0 %v5328_v37  ;;  %4964 = vmatpush3.bf16.msra.mxu1 %v5343_v46  ;;  %v5356_v46 = vld [vmem:[#allocation12 + $0x20] sm:$0xff]  }
 0xae3   :  { %4965 = vmatprep.subr.bf16.mxu1 %v5344_v9  ;;  %v5357_v9 = vld [vmem:[#allocation12 + $0x28] sm:$0xff]  }
 0xae5   :  { %4944 = vmatpush3.bf16.msra.mxu0 %v5329_v23 }
 0xae6   :  { %4945 = vmatprep.subr.bf16.mxu0 %v5330_v63  ;;  %4966 = vmatpush3.bf16.msra.mxu1 %v5345_v54  ;;  %v5358_v54 = vld [vmem:[#allocation12 + $0x30] sm:$0xff]  }
 0xae7   :  { %4967 = vmatprep.subr.bf16.mxu1 %v5346_v4  ;;  %v5359_v4 = vld [vmem:[#allocation12 + $0x38] sm:$0xff]  }
 0xae9   :  { %4946 = vmatpush3.bf16.msra.mxu0 %v5331_v6 }
 0xaea   :  { %4947 = vmatprep.subr.bf16.mxu0 %v5332_v32  ;;  %4968 = vmatpush3.bf16.msra.mxu1 %v5347_v33  ;;  %v5360_v33 = vld [vmem:[#allocation13] sm:$0xff]  }
 0xaeb   :  { %4969 = vmatprep.subr.bf16.mxu1 %v5348_v47  ;;  %v5361_v47 = vld [vmem:[#allocation13 + $0x8] sm:$0xff]  }
 0xaed   :  { %4948 = vmatpush3.bf16.msra.mxu0 %v5333_v7 }
 0xaee   :  { %4949 = vmatprep.subr.bf16.mxu0 %v5334_v55  ;;  %4970 = vmatpush3.bf16.msra.mxu1 %v5349_v13  ;;  %v5362_v13 = vld [vmem:[#allocation13 + $0x10] sm:$0xff]  }
 0xaef   :  { %4971 = vmatprep.subr.bf16.mxu1 %v5350_v29  ;;  %v5363_v29 = vld [vmem:[#allocation13 + $0x18] sm:$0xff]  }
 0xaf1   :  { %4950 = vmatpush3.bf16.msra.mxu0 %v5335_v41 }
 0xaf2   :  { %5017 = vmatprep.subr.bf16.mxu0 %v8677_v25  ;;  %4972 = vmatpush3.bf16.msra.mxu1 %v5351_v58  ;;  %v806_v58 = vpop.xlane.xlu0 %805 }
 0xaf3   :  { %5037 = vmatprep.subr.bf16.mxu1 %v8677_v25 }
 0xaf4   :  { %4339 = vmatmul.mubr.bf16.vlgmr.msra.gmra.mrb[116].mxu0 %v4103_v38 }
 0xaf5   :  { %5033 = vmatprep.mubr.msk.bf16.mxu0 %vm5945_vm0, %v8677_v25  ;;  %5018 = vmatpush3.bf16.msra.mxu0 %v5352_v17  ;;  %v807_v17 = vadd.f32 1e-12, %v806_v58 }
 0xaf6   :  { %5019 = vmatprep.subr.bf16.mxu0 %v8677_v25 }
 0xaf9   :  { %5020 = vmatpush3.bf16.msra.mxu0 %v5353_v49  ;;  %v4809_v49 = vld [vmem:[%s8013_s13] ss:$0 sm:$0xff] }
 0xafa   :  { %5021 = vmatprep.subr.bf16.mxu0 %v8677_v25 }
 0xafd   :  { %5022 = vmatpush3.bf16.msra.mxu0 %v5354_v14 }
 0xafe   :  { %5023 = vmatprep.subr.bf16.mxu0 %v8677_v25 }
 0xb87   :  { %v3885_v18 = vpop.f32.mrb[108].mxu0  ;;  %v3926_v48 = vpop.f32.mrb[108].mxu1 }
 0xb88   :  { %v3887_v5 = vpop.f32.mrb[109].mxu0  ;;  %v3928_v21 = vpop.f32.mrb[109].mxu1 }
 0xb89   :  { %v3889_v56 = vpop.f32.mrb[110].mxu0  ;;  %v3930_v11 = vpop.f32.mrb[110].mxu1 }
 0xb8a   :  { %v3890_v34 = vpop.f32.mrb[111].mxu0  ;;  %v3931_v30 = vpop.f32.mrb[111].mxu1 }
 0xb8b   :  { %v8678_v34 = vld [vmem:[#allocation26_spill] sm:$0xff] }
 0xba7   :  { %v3967_v20 = vpop.f32.mrb[112].mxu0  ;;  %v4008_v2 = vpop.f32.mrb[112].mxu1 }
 0xba8   :  { %v3968_v24 = vadd.f32 %v3967_v20, %v3885_v18  ;;  %v4009_v26 = vadd.f32 %v4008_v2, %v3926_v48  ;;  %v3969_v19 = vpop.f32.mrb[113].mxu0  ;;  %v4010_v57 = vpop.f32.mrb[113].mxu1 }
 0xba9   :  { %v3970_v12 = vadd.f32 %v3969_v19, %v3887_v5  ;;  %v4011_v59 = vadd.f32 %v4010_v57, %v3928_v21  ;;  %v3971_v27 = vpop.f32.mrb[114].mxu0  ;;  %v4012_v22 = vpop.f32.mrb[114].mxu1  ;;  %v5364_v19 = vld [vmem:[#allocation13 + $0x20] sm:$0xff]   ;;  %v5365_v57 = vld [vmem:[#allocation13 + $0x28] sm:$0xff]  }
 0xbaa   :  { %v4015_v16 = vadd.f32 %v3968_v24, %v8462_v60  ;;  %v3972_v40 = vpop.f32.mrb[115].mxu0  ;;  %v4013_v36 = vpop.f32.mrb[115].mxu1  ;;  %v4017_v62 = vadd.f32 %v4009_v26, %v6889_v52  ;;  %v4842_v27 = vld [vmem:[%s8015_s15] ss:$0 sm:$0xff] }
 0xbab   :  { %v4016_v61 = vadd.f32 %v3970_v12, %v8463_v8  ;;  %v4018_v45 = vadd.f32 %v4011_v59, %v6899_v1  ;;  %v5366_v12 = vld [vmem:[#allocation13 + $0x30] sm:$0xff]   ;;  %v5367_v59 = vld [vmem:[#allocation13 + $0x38] sm:$0xff]  }
 0xbac   :  { %v4019_v28 = vmul.f32 0.5, %v4015_v16 }
 0xbad   :  { %v4023_v50 = vmul.f32 0.5, %v4016_v61  ;;  %v4028_v43 = vmul.f32 0.5, %v4018_v45 }
 0xbae   :  { %5536 = vtanh.f32 %v4019_v28 }
 0xbaf   :  { %5538 = vtanh.f32 %v4023_v50 }
 0xbb0   :  { %5540 = vtanh.f32 %v4017_v62  ;;  %v4851_v62 = vld [vmem:[%s8017_s17] ss:$0 sm:$0xff] }
 0xbb1   :  { %5542 = vtanh.f32 %v4028_v43 }
 0xbb8   :  { %v5537_v0 = vpop.eup %5536 }
 0xbb9   :  { %v5539_v51 = vpop.eup %5538  ;;  %v4021_v37 = vadd.f32 1.0, %v5537_v0 }
 0xbba   :  { %v4025_v23 = vadd.f32 1.0, %v5539_v51  ;;  %v5541_v63 = vpop.eup %5540 }
 0xbbb   :  { %v4022_v60 = vmul.f32 0.5, %v4021_v37  ;;  %v5543_v55 = vpop.eup %5542 }
 0xbbc   :  { %v4026_v6 = vmul.f32 0.5, %v4025_v23  ;;  %v4030_v52 = vadd.f32 1.0, %v5543_v55 }
 0xbbd   :  { %v4033_v32 = vmul.f32 %v5541_v63, %v4022_v60 }
 0xbbe   :  { %v4032_v8 = vmul.f32 %v4026_v6, %v7922_v35  ;;  %v4031_v39 = vmul.f32 0.5, %v4030_v52  ;;  %v5355_v35 = vld [vmem:[#allocation12 + $0x18] sm:$0xff]  }
 0xbbf   :  { %5024 = vmatpush3.bf16.msra.mxu0 %v5355_v35 }
 0xbc0   :  { %v4034_v7 = vadd.f32 %v4033_v32, %v4032_v8  ;;  %5025 = vmatprep.subr.bf16.mxu0 %v8677_v25 }
 0xbc2   :  { %5544 = vtanh.f32 %v4034_v7 }
 0xbc3   :  { %5026 = vmatpush3.bf16.msra.mxu0 %v5356_v46 }
 0xbc4   :  { %5027 = vmatprep.subr.bf16.mxu0 %v8677_v25 }
 0xbc7   :  { %v4951_v41 = vpop.f32.mrb[116].mxu0  ;;  %5028 = vmatpush3.bf16.msra.mxu0 %v5357_v9 }
 0xbc8   :  { %v4952_v3 = vpop.f32.mrb[117].mxu0  ;;  %5029 = vmatprep.subr.bf16.mxu0 %v8677_v25 }
 0xbc9   :  { %v4953_v38 = vadd.f32 %v4952_v3, %v4951_v41  ;;  %v4954_v1 = vpop.f32.mrb[118].mxu0 }
 0xbca   :  { %v4955_v10 = vpop.f32.mrb[119].mxu0 }
 0xbcb   :  { %5030 = vmatpush3.bf16.msra.mxu0 %v5358_v54  ;;  %v4341_v5 = vadd.f32 %v4953_v38, %v4809_v49 }
 0xbcc   :  { %v5545_v15 = vpop.eup %5544  ;;  %5031 = vmatprep.subr.bf16.mxu0 %v8677_v25 }
 0xbcd   :  { %v4036_v31 = vmul.f32 %v5545_v15, %v4031_v39  ;;  %v4106_v42 = vpack.c.bf16 %v5545_v15, %v5545_v15 }
 0xbcf   :  { %5546 = vtanh.f32 %v4036_v31  ;;  %4378 = vmatprep.mubr.bf16.mxu1 %v4106_v42  ;;  %5032 = vmatpush3.bf16.msra.mxu0 %v5359_v4 }
 0xbd0   :  { %5548 = vrsqrt.f32 %v807_v17 }
 0xbd9   :  { %v5547_v53 = vpop.eup %5546 }
 0xbda   :  { %v4105_v44 = vpack.c.bf16 %v5547_v53, %v5547_v53  ;;  %v5549_v18 = vpop.eup %5548 }
 0xbdb   :  { %v809_v30 = vmul.f32 %v5549_v18, %v8678_v34 }
 0xbdc   :  { %4379 = vmatmul.mubr.bf16.vlgmr.msra.gmra.mrb[116].mxu1 %v4105_v44 }
 0xbdd   :  { %5053 = vmatprep.mubr.msk.bf16.mxu1 %vm5945_vm0, %v8677_v25  ;;  %5038 = vmatpush3.bf16.msra.mxu1 %v5360_v33 }
 0xbde   :  { %5039 = vmatprep.subr.bf16.mxu1 %v8677_v25 }
 0xbe1   :  { %5040 = vmatpush3.bf16.msra.mxu1 %v5361_v47 }
 0xbe2   :  { %5041 = vmatprep.subr.bf16.mxu1 %v8677_v25 }
 0xbe5   :  { %5042 = vmatpush3.bf16.msra.mxu1 %v5362_v13 }
 0xbe6   :  { %5043 = vmatprep.subr.bf16.mxu1 %v8677_v25 }
 0xbe9   :  { %5044 = vmatpush3.bf16.msra.mxu1 %v5363_v29 }
 0xbea   :  { %5045 = vmatprep.subr.bf16.mxu1 %v8677_v25 }
 0xbed   :  { %5046 = vmatpush3.bf16.msra.mxu1 %v5364_v19 }
 0xbee   :  { %5047 = vmatprep.subr.bf16.mxu1 %v8677_v25 }
 0xbf1   :  { %5048 = vmatpush3.bf16.msra.mxu1 %v5365_v57 }
 0xbf2   :  { %5049 = vmatprep.subr.bf16.mxu1 %v8677_v25 }
 0xbf5   :  { %5050 = vmatpush3.bf16.msra.mxu1 %v5366_v12 }
 0xbf6   :  { %5051 = vmatprep.subr.bf16.mxu1 %v8677_v25 }
 0xbf9   :  { %5052 = vmatpush3.bf16.msra.mxu1 %v5367_v59 }
 0xcaf   :  { %v4973_v14 = vpop.f32.mrb[116].mxu1 }
 0xcb0   :  { %v4974_v48 = vpop.f32.mrb[117].mxu1 }
 0xcb1   :  { %v4975_v21 = vadd.f32 %v4974_v48, %v4973_v14  ;;  %v4976_v56 = vpop.f32.mrb[118].mxu1 }
 0xcb2   :  { %v4977_v11 = vpop.f32.mrb[119].mxu1 }
 0xcb3   :  { %v4381_v20 = vadd.f32 %v4975_v21, %v4341_v5 }
 0xcb5   :  { %v4386_v2 = vmul.f32 %v4381_v20, %v809_v30 }
 0xcb7   :  { %5550 = vtanh.f32 %v4386_v2 }
 0xcc1   :  { %v5551_v24 = vpop.eup %5550 }
 0xcc2   :  { %v4404_v26 = vpack.c.bf16 %v5551_v24, %v5551_v24 }
 0xcc4   :  { %5034 = vmatmul.mubr.bf16.vlgmr.msra.gmra.mrb[120].mxu0 %v4404_v26 }
 0xd97   :  { %v4494_v22 = vpop.f32.mrb[120].mxu0 }
 0xd98   :  { %v4495_v16 = vadd.f32 %v4842_v27, %v4494_v22  ;;  %v5035_v40 = vpop.f32.mrb[121].mxu0 }
 0xd99   :  { %v4497_v36 = vpop.f32.mrb[122].mxu0 }
 0xd9a   :  { %5552 = vtanh.f32 %v4495_v16  ;;  %v5036_v61 = vpop.f32.mrb[123].mxu0 }
 0xda4   :  { %v5553_v28 = vpop.eup %5552 }
 0xda5   :  { %v4517_v50 = vpack.c.bf16 %v5553_v28, %v5553_v28 }
 0xda7   :  { %5054 = vmatmul.mubr.bf16.vlgmr.msra.gmra.mrb[120].mxu1 %v4517_v50 }
 0xe7a   :  { %v4607_v25 = vpop.f32.mrb[120].mxu1 }
 0xe7b   :  { %v4608_v45 = vadd.f32 %v4851_v62, %v4607_v25  ;;  %v5055_v43 = vpop.f32.mrb[121].mxu1 }
 0xe7c   :  { %v4610_v0 = vpop.f32.mrb[122].mxu1 }
 0xe7d   :  { %4613 = vst [vmem:[%s8018_s18] sm:$0xff] %v4608_v45  ;;  %v5056_v51 = vpop.f32.mrb[123].mxu1 }
 0xe7e   :  { %4618 = vsyncpa [#allocation3], 1 }
 0xe7f   :  { %4619 = vsyncpa [#allocation5], 1 }
 0xe80   :  { %4620 = vsyncpa [#allocation8], 1 }
 0xe81   :  { %4621 = vsyncpa [#allocation11], 1 }
 0xe82   :  { %4622 = vsyncpa [#allocation14], 1 }

</bundles_post_ra>
